<compile_context>
chip_gen: v5e
topology: v5e:2x2
jax: 0.10.0
libtpu: 0.0.40
codegen_flags: <defaults>
</compile_context>

<pallas_src>
import functools

import jax
import jax.numpy as jnp
from jax.experimental import pallas as pl
from jax.experimental.pallas import tpu as pltpu


_VMEM_SPEC = pl.BlockSpec(memory_space=pltpu.MemorySpace.VMEM)
_B_PAD = 8          # batch padded to one sublane tile


# ----------------------------------------------------------------------------
# Fused PointerNet kernel
# ----------------------------------------------------------------------------
def _pointer_net_kernel(lens1_ref, lens2_ref, x_ref,
                        w_in_ref, b_in_ref, w_rec_ref,
                        w_fc_h_ref, w_fc_c_ref, b_fc_ref, w_q_ref,
                        w_att_f_ref, w_att_b_ref, v_row_ref,
                        out_ref):
    """Fused forward: bi-LSTM enc1 + bi-LSTM enc2 + fc1/fc2 + 2x ptr-attention.

    lens*_ref : [1, Bp] int32      sequence lengths (batch in lanes)
    x_ref     : [T*Bp, 2(I1+I2)]   bf16, rows = time-major, batch padded to Bp
                                   feature cols = [x1(t)|x2(t)|x1(rev)|x2(rev)]
    w_in_ref  : [2(I1+I2), 16H]    bf16, gate-major [i|f|o|g], dir order
                                   [e1f|e2f|e1b|e2b] inside every gate block
    b_in_ref  : [1, 16H]           f32
    w_rec_ref : [4H, 16H]          f32, block-diag recurrent weights
    w_fc_h/c  : [4H, 4H]           f32, fc output cols [htF|htB|ctF|ctB]
    b_fc_ref  : [1, 4H]            f32  = [b1|b1|b2|b2]
    w_q_ref   : [4H, 2H]           f32, rows 0:H = [wq1|wq2]
    w_att_f/b : [4H, 2H]           bf16, fwd-row / bwd-row attention blocks
    v_row_ref : [1, 2H]            f32  = [v1|v2]
    out_ref   : [Bp+T, 4H]         f32 slab:
                rows 0:Bp          = relu(fc)  cols [htF|htB|ctF|ctB]
                rows Bp:Bp+T       = probs1 (cols 0:Bp), probs2 (cols Bp:2Bp),
                                     layout [t, b]
    """
    TB = x_ref.shape[0]
    Bp = lens1_ref.shape[1]
    T = TB // Bp
    G = w_rec_ref.shape[1]        # 16H
    H4 = G // 4                   # 4H (merged state lane width, 128 for H=32)
    H = H4 // 4

    # ---- (1) hoisted input projection: ONE bf16 matmul for every timestep and
    #          all four LSTM directions; bias added here, not per step.
    xg = (jnp.dot(x_ref[...], w_in_ref[...],
                  preferred_element_type=jnp.float32)
          + b_in_ref[...])                                    # [T*Bp, 16H] f32

    # ---- (2) merged, fully unrolled recurrence (f32 elementwise).
    #          State columns: [e1_fwd | e2_fwd | e1_bwd | e2_bwd], each H wide.
    w_rec = w_rec_ref[...]
    h = jnp.zeros((Bp, H4), jnp.float32)
    c = jnp.zeros((Bp, H4), jnp.float32)
    hs = []
    for t in range(T):
        gates = (xg[t * Bp:(t + 1) * Bp, :]                   # sublane-aligned
                 + jnp.dot(h, w_rec, preferred_element_type=jnp.float32))
        sg = jax.nn.sigmoid(gates[:, 0:3 * H4])               # one chain: [i|f|o]
        gg = jnp.tanh(gates[:, 3 * H4:4 * H4])
        c = sg[:, H4:2 * H4] * c + sg[:, 0:H4] * gg
        h = sg[:, 2 * H4:3 * H4] * jnp.tanh(c)
        hs.append(h)

    # ---- (3) fc1 / fc2 without any lane concats: two block-packed matmuls.
    #          fc_all cols: [h_t_fwd | h_t_bwd | c_t_fwd | c_t_bwd]
    fc_all = jnp.maximum(
        jnp.dot(h, w_fc_h_ref[...], preferred_element_type=jnp.float32)
        + jnp.dot(c, w_fc_c_ref[...], preferred_element_type=jnp.float32)
        + b_fc_ref[...], 0.0)                                 # [Bp, 4H]

    # ---- (4) pointer attention for BOTH heads.
    #          Encoder output at time t = [h_fwd(t) | h_bwd(T-1-t)]; realignment
    #          is a free Python-list reversal (loop is unrolled).
    hs16 = [v.astype(jnp.bfloat16) for v in hs]
    hf = jnp.concatenate(hs16, axis=0)                        # [T*Bp, 4H] fwd order
    hb = jnp.concatenate(hs16[::-1], axis=0)                  # [T*Bp, 4H] rev order
    e = (jnp.dot(hf, w_att_f_ref[...], preferred_element_type=jnp.float32)
         + jnp.dot(hb, w_att_b_ref[...], preferred_element_type=jnp.float32))
    dq = jnp.dot(fc_all, w_q_ref[...],
                 preferred_element_type=jnp.float32)          # [Bp, 2H] (q = h_t[0])
    u = jnp.tanh(e.reshape(T, Bp, 2 * H) + dq[None])          # [T, Bp, 2H]

    # logits via VPU multiply + lane reduce (no 2-lane matmul, no transposes)
    prod = u * v_row_ref[...]                                 # [T, Bp, 2H]
    logits1 = jnp.sum(prod[..., 0:H], axis=-1)                # [T, Bp]
    logits2 = jnp.sum(prod[..., H:2 * H], axis=-1)            # [T, Bp]

    def _masked_softmax_tb(scores_tb, lens_ref):
        # softmax over time (axis 0); batch sits in lanes
        pos = jax.lax.broadcasted_iota(jnp.int32, scores_tb.shape, 0)
        x = jnp.where(pos < lens_ref[...], scores_tb, -1e30)  # finite floor: no NaN
        m = jnp.max(x, axis=0, keepdims=True)
        ex = jnp.exp(x - m)
        s = jnp.sum(ex, axis=0, keepdims=True)
        return ex * pl.reciprocal(s, approx=True)

    p1 = _masked_softmax_tb(logits1, lens1_ref)               # [T, Bp]
    p2 = _masked_softmax_tb(logits2, lens2_ref)               # [T, Bp]

    # ---- (5) single lane-dense output slab (one write-back DMA).
    out_ref[0:Bp, :] = fc_all
    out_ref[Bp:Bp + T, :] = jnp.zeros((T, H4), jnp.float32)
    out_ref[Bp:Bp + T, 0:Bp] = p1
    out_ref[Bp:Bp + T, Bp:2 * Bp] = p2


# ----------------------------------------------------------------------------
# Parameter init + packing into the fused block layout
# ----------------------------------------------------------------------------
def _init_lstm(key, in_size, hidden):
    k1, k2, k3 = jax.random.split(key, 3)
    return {
        'wih': 0.1 * jax.random.normal(k1, (in_size, 4 * hidden), jnp.float32),
        'whh': 0.1 * jax.random.normal(k2, (hidden, 4 * hidden), jnp.float32),
        'b': 0.1 * jax.random.normal(k3, (1, 4 * hidden), jnp.float32),
    }


def init_params(key, in_sizes, hidden):
    keys = jax.random.split(key, 14)
    return {
        'enc1': {'fwd': _init_lstm(keys[0], in_sizes[0], hidden),
                 'bwd': _init_lstm(keys[1], in_sizes[0], hidden)},
        'enc2': {'fwd': _init_lstm(keys[2], in_sizes[1], hidden),
                 'bwd': _init_lstm(keys[3], in_sizes[1], hidden)},
        'fc1_w': 0.1 * jax.random.normal(keys[4], (2 * hidden, hidden), jnp.float32),
        'fc1_b': 0.1 * jax.random.normal(keys[5], (1, hidden), jnp.float32),
        'fc2_w': 0.1 * jax.random.normal(keys[6], (2 * hidden, hidden), jnp.float32),
        'fc2_b': 0.1 * jax.random.normal(keys[7], (1, hidden), jnp.float32),
        'dec1': {'wenc': 0.1 * jax.random.normal(keys[8], (2 * hidden, hidden), jnp.float32),
                 'wq': 0.1 * jax.random.normal(keys[9], (hidden, hidden), jnp.float32),
                 'v': 0.1 * jax.random.normal(keys[10], (hidden, 1), jnp.float32)},
        'dec2': {'wenc': 0.1 * jax.random.normal(keys[11], (2 * hidden, hidden), jnp.float32),
                 'wq': 0.1 * jax.random.normal(keys[12], (hidden, hidden), jnp.float32),
                 'v': 0.1 * jax.random.normal(keys[13], (hidden, 1), jnp.float32)},
    }


def pack_params(params, in_sizes, hidden):
    """One-time repack into the gate-major / block-diagonal fused layout."""
    H = hidden
    I1, I2 = in_sizes
    H4 = 4 * H
    F = 2 * (I1 + I2)

    # fused gate-major order [i | f | o | g]; per-direction source order is i,f,g,o
    gate_src = [0, 1, 3, 2]
    # direction order d = 0:e1_fwd, 1:e2_fwd, 2:e1_bwd, 3:e2_bwd
    dirs = [params['enc1']['fwd'], params['enc2']['fwd'],
            params['enc1']['bwd'], params['enc2']['bwd']]
    # x_comb feature blocks: [x1(t) | x2(t) | x1(T-1-t) | x2(T-1-t)]
    row_blocks = [slice(0, I1), slice(I1, I1 + I2),
                  slice(I1 + I2, 2 * I1 + I2), slice(2 * I1 + I2, F)]

    w_in = jnp.zeros((F, 4 * H4), jnp.float32)
    b_in = jnp.zeros((1, 4 * H4), jnp.float32)
    w_rec = jnp.zeros((H4, 4 * H4), jnp.float32)
    for d, p in enumerate(dirs):
        for gg, gs in enumerate(gate_src):
            src = slice(gs * H, (gs + 1) * H)
            dst = slice(gg * H4 + d * H, gg * H4 + (d + 1) * H)
            w_in = w_in.at[row_blocks[d], dst].set(p['wih'][:, src])
            b_in = b_in.at[:, dst].set(p['b'][:, src])
            w_rec = w_rec.at[d * H:(d + 1) * H, dst].set(p['whh'][:, src])

    # fused fc: fc_all = relu(h @ Wfc_h + c @ Wfc_c + b_fc)
    # h/c cols [h1f|h2f|h1b|h2b]; out cols [htF | htB | ctF | ctB]
    w_fc_h = jnp.zeros((H4, H4), jnp.float32)
    w_fc_c = jnp.zeros((H4, H4), jnp.float32)
    w_fc_h = w_fc_h.at[0:2 * H, 0:H].set(params['fc1_w'])
    w_fc_h = w_fc_h.at[2 * H:4 * H, H:2 * H].set(params['fc1_w'])
    w_fc_c = w_fc_c.at[0:2 * H, 2 * H:3 * H].set(params['fc2_w'])
    w_fc_c = w_fc_c.at[2 * H:4 * H, 3 * H:4 * H].set(params['fc2_w'])
    b_fc = jnp.concatenate([params['fc1_b'], params['fc1_b'],
                            params['fc2_b'], params['fc2_b']], axis=1)

    # fused attention: split into fwd-row and bwd-row blocks so the bwd time
    # realignment happens on the (free) Python list, not via iota/where.
    # out cols 0:H = dec1 head, H:2H = dec2 head.
    w_att_f = jnp.zeros((H4, 2 * H), jnp.float32)
    w_att_b = jnp.zeros((H4, 2 * H), jnp.float32)
    w_att_f = w_att_f.at[0:H, 0:H].set(params['dec1']['wenc'][0:H])
    w_att_f = w_att_f.at[H:2 * H, H:2 * H].set(params['dec2']['wenc'][0:H])
    w_att_b = w_att_b.at[2 * H:3 * H, 0:H].set(params['dec1']['wenc'][H:2 * H])
    w_att_b = w_att_b.at[3 * H:4 * H, H:2 * H].set(params['dec2']['wenc'][H:2 * H])

    # query projection reads q = h_t[0] = fc_all[:, 0:H]; other rows zero.
    w_q = jnp.zeros((H4, 2 * H), jnp.float32)
    w_q = w_q.at[0:H, 0:H].set(params['dec1']['wq'])
    w_q = w_q.at[0:H, H:2 * H].set(params['dec2']['wq'])

    v_row = jnp.concatenate([params['dec1']['v'].reshape(1, H),
                             params['dec2']['v'].reshape(1, H)], axis=1)

    return dict(w_in=w_in.astype(jnp.bfloat16), b_in=b_in, w_rec=w_rec,
                w_fc_h=w_fc_h, w_fc_c=w_fc_c, b_fc=b_fc, w_q=w_q,
                w_att_f=w_att_f.astype(jnp.bfloat16),
                w_att_b=w_att_b.astype(jnp.bfloat16),
                v_row=v_row)


# ----------------------------------------------------------------------------
# PointerNet forward (single fused pallas_call)
# ----------------------------------------------------------------------------
@functools.partial(jax.jit, static_argnums=(0,))
def pointer_net_forward(date, inp1, inp_len1, inp2, inp_len2, packed):
    del date   # only consumed by the untranslated autoregressive decoder
    B = inp1.shape[0]
    T1, T2 = inp1.shape[1], inp2.shape[1]
    assert T1 == T2, "fused kernel expects both encoders to share max_seq_len"
    T = T1
    Bp = _B_PAD
    assert B <= Bp and T <= Bp
    H4 = packed['w_q'].shape[0]
    H = H4 // 4
    assert 2 * Bp <= H4

    # PyTorch: inp = inp.transpose(0, 1) -> time-major; combine both encoders'
    # inputs plus time-reversed copies; pad batch to a full sublane tile and
    # pre-flatten so every in-kernel slice is (8,128)-aligned.
    x1 = jnp.transpose(inp1, (1, 0, 2))
    x2 = jnp.transpose(inp2, (1, 0, 2))
    x_comb = jnp.concatenate([x1, x2, x1[::-1], x2[::-1]], axis=-1)  # [T, B, F]
    x_comb = jnp.pad(x_comb, ((0, 0), (0, Bp - B), (0, 0)))
    x_flat = x_comb.reshape(T * Bp, -1).astype(jnp.bfloat16)

    def _lens_row(l):   # [B,1] -> [1,Bp] (batch in lanes; pad rows marked full-length)
        l = l.reshape(-1).astype(jnp.int32)
        return jnp.pad(l, (0, Bp - B), constant_values=T).reshape(1, Bp)

    l1 = _lens_row(inp_len1)
    l2 = _lens_row(inp_len2)

    slab = pl.pallas_call(
        _pointer_net_kernel,
        out_shape=jax.ShapeDtypeStruct((Bp + T, H4), jnp.float32),
        in_specs=[_VMEM_SPEC] * 13,
        out_specs=_VMEM_SPEC,
    )(l1, l2, x_flat,
      packed['w_in'], packed['b_in'], packed['w_rec'],
      packed['w_fc_h'], packed['w_fc_c'], packed['b_fc'], packed['w_q'],
      packed['w_att_f'], packed['w_att_b'], packed['v_row'])

    # Unpack the slab (tiny host-side slices/transposes handled by XLA).
    probs1 = slab[Bp:Bp + T, 0:Bp].T[:B]          # [B, T]
    probs2 = slab[Bp:Bp + T, Bp:2 * Bp].T[:B]     # [B, T]
    # h_t / c_t (decoder init state) live in slab[:Bp, :] as [htF|htB|ctF|ctB];
    # only needed by the untranslated autoregressive decoder.
    _h_t = slab[:B, 0:2 * H]
    _c_t = slab[:B, 2 * H:4 * H]

    action_idxs1 = jnp.argmax(probs1, axis=-1)
    action_idxs2 = jnp.argmax(probs2, axis=-1)

    # TODO(synk): PointerNetRNNDecoder's autoregressive sampling loop, date
    #             handling and dict bookkeeping, and the MatchSolver ILP have
    #             no Pallas equivalent; R is returned as zeros.
    R = jnp.zeros((B,), jnp.float32)
    return R, probs1, probs2, action_idxs1, action_idxs2


# ----------------------------------------------------------------------------
if __name__ == "__main__":
    B = 2          # batch
    T1, T2 = 8, 8  # sequence lengths
    I1, I2 = 4, 6  # encoder_input_size = [4, 6]
    H = 32         # rnn_hidden_size

    key = jax.random.PRNGKey(0)
    k_par, k_i1, k_i2 = jax.random.split(key, 3)

    params = init_params(k_par, (I1, I2), H)
    packed = pack_params(params, (I1, I2), H)

    inp1 = jax.random.normal(k_i1, (B, T1, I1), jnp.float32)
    inp2 = jax.random.normal(k_i2, (B, T2, I2), jnp.float32)
    inp_len1 = jnp.array([[T1], [T1 - 2]], jnp.int32)   # [B, 1]
    inp_len2 = jnp.array([[T2 - 1], [T2]], jnp.int32)   # [B, 1]
    date = 20240101

    out = pointer_net_forward(date, inp1, inp_len1, inp2, inp_len2, packed)
    out = jax.block_until_ready(out)

    R, p1, p2, a1, a2 = out
    assert p1.shape == (B, T1) and p2.shape == (B, T2)
    assert bool(jnp.all(jnp.isfinite(p1))) and bool(jnp.all(jnp.isfinite(p2)))
    # masked softmax rows sum to ~1 (approx reciprocal in the epilogue)
    assert bool(jnp.allclose(jnp.sum(p1, axis=-1), 1.0, atol=5e-3))
    assert bool(jnp.allclose(jnp.sum(p2, axis=-1), 1.0, atol=5e-3))
    # positions beyond inp_len carry ~zero probability
    assert float(p1[1, T1 - 1]) < 1e-6 and float(p1[1, T1 - 2]) < 1e-6
    assert float(p2[0, T2 - 1]) < 1e-6
    print("KERNEL_OK")
</pallas_src>

<mosaic_0001>
module attributes {stable_mosaic.version = 11 : i64} {
  func.func @_pointer_net_kernel(%arg0: memref<1x8xi32, #tpu.memory_space<vmem>>, %arg1: memref<1x8xi32, #tpu.memory_space<vmem>>, %arg2: memref<64x20xbf16, #tpu.memory_space<vmem>>, %arg3: memref<20x512xbf16, #tpu.memory_space<vmem>>, %arg4: memref<1x512xf32, #tpu.memory_space<vmem>>, %arg5: memref<128x512xf32, #tpu.memory_space<vmem>>, %arg6: memref<128x128xf32, #tpu.memory_space<vmem>>, %arg7: memref<128x128xf32, #tpu.memory_space<vmem>>, %arg8: memref<1x128xf32, #tpu.memory_space<vmem>>, %arg9: memref<128x64xf32, #tpu.memory_space<vmem>>, %arg10: memref<128x64xbf16, #tpu.memory_space<vmem>>, %arg11: memref<128x64xbf16, #tpu.memory_space<vmem>>, %arg12: memref<1x64xf32, #tpu.memory_space<vmem>>, %arg13: memref<16x128xf32, #tpu.memory_space<vmem>>) attributes {dimension_semantics = [], scalar_prefetch = 0 : i64, scratch_operands = 0 : i64, tpu.core_type = #tpu.core_type<tc>} {
    %c0 = arith.constant 0 : index
    %c0_0 = arith.constant 0 : index
    %0 = vector.load %arg2[%c0, %c0_0] : memref<64x20xbf16, #tpu.memory_space<vmem>>, vector<64x20xbf16>
    %c0_1 = arith.constant 0 : index
    %c0_2 = arith.constant 0 : index
    %1 = vector.load %arg3[%c0_1, %c0_2] : memref<20x512xbf16, #tpu.memory_space<vmem>>, vector<20x512xbf16>
    %cst = arith.constant dense<0.000000e+00> : vector<64x512xf32>
    %2 = tpu.matmul %0, %1, %cst {dimension_numbers = #tpu.dot_dimension_numbers<[1], [0], [0], [1], [0, 0, 1, 1], [], []>} : vector<64x20xbf16>, vector<20x512xbf16>, vector<64x512xf32> -> vector<64x512xf32>
    %c0_3 = arith.constant 0 : index
    %c0_4 = arith.constant 0 : index
    %3 = vector.load %arg4[%c0_3, %c0_4] : memref<1x512xf32, #tpu.memory_space<vmem>>, vector<1x512xf32>
    %4 = vector.broadcast %3 : vector<1x512xf32> to vector<64x512xf32>
    %5 = arith.addf %2, %4 : vector<64x512xf32>
    %c0_5 = arith.constant 0 : index
    %c0_6 = arith.constant 0 : index
    %6 = vector.load %arg5[%c0_5, %c0_6] : memref<128x512xf32, #tpu.memory_space<vmem>>, vector<128x512xf32>
    %cst_7 = arith.constant 0.000000e+00 : f32
    %7 = vector.broadcast %cst_7 : f32 to vector<8x128xf32>
    %cst_8 = arith.constant 0.000000e+00 : f32
    %8 = vector.broadcast %cst_8 : f32 to vector<8x128xf32>
    %9 = vector.extract_strided_slice %5 {offsets = [0, 0], sizes = [8, 512], strides = [1, 1]} : vector<64x512xf32> to vector<8x512xf32>
    %cst_9 = arith.constant dense<0.000000e+00> : vector<8x512xf32>
    %10 = tpu.matmul %7, %6, %cst_9 {dimension_numbers = #tpu.dot_dimension_numbers<[1], [0], [0], [1], [0, 0, 1, 1], [], []>} : vector<8x128xf32>, vector<128x512xf32>, vector<8x512xf32> -> vector<8x512xf32>
    %11 = arith.addf %9, %10 : vector<8x512xf32>
    %12 = vector.extract_strided_slice %11 {offsets = [0, 0], sizes = [8, 384], strides = [1, 1]} : vector<8x512xf32> to vector<8x384xf32>
    %13 = arith.negf %12 : vector<8x384xf32>
    %14 = math.exp %13 : vector<8x384xf32>
    %cst_10 = arith.constant 1.000000e+00 : f32
    %15 = vector.broadcast %cst_10 : f32 to vector<8x384xf32>
    %16 = arith.addf %15, %14 : vector<8x384xf32>
    %17 = arith.divf %15, %16 : vector<8x384xf32>
    %18 = vector.extract_strided_slice %11 {offsets = [0, 384], sizes = [8, 128], strides = [1, 1]} : vector<8x512xf32> to vector<8x128xf32>
    %19 = math.tanh %18 : vector<8x128xf32>
    %20 = vector.extract_strided_slice %17 {offsets = [0, 128], sizes = [8, 128], strides = [1, 1]} : vector<8x384xf32> to vector<8x128xf32>
    %21 = arith.mulf %20, %8 : vector<8x128xf32>
    %22 = vector.extract_strided_slice %17 {offsets = [0, 0], sizes = [8, 128], strides = [1, 1]} : vector<8x384xf32> to vector<8x128xf32>
    %23 = arith.mulf %22, %19 : vector<8x128xf32>
    %24 = arith.addf %21, %23 : vector<8x128xf32>
    %25 = vector.extract_strided_slice %17 {offsets = [0, 256], sizes = [8, 128], strides = [1, 1]} : vector<8x384xf32> to vector<8x128xf32>
    %26 = math.tanh %24 : vector<8x128xf32>
    %27 = arith.mulf %25, %26 : vector<8x128xf32>
    %28 = vector.extract_strided_slice %5 {offsets = [8, 0], sizes = [8, 512], strides = [1, 1]} : vector<64x512xf32> to vector<8x512xf32>
    %cst_11 = arith.constant dense<0.000000e+00> : vector<8x512xf32>
    %29 = tpu.matmul %27, %6, %cst_11 {dimension_numbers = #tpu.dot_dimension_numbers<[1], [0], [0], [1], [0, 0, 1, 1], [], []>} : vector<8x128xf32>, vector<128x512xf32>, vector<8x512xf32> -> vector<8x512xf32>
    %30 = arith.addf %28, %29 : vector<8x512xf32>
    %31 = vector.extract_strided_slice %30 {offsets = [0, 0], sizes = [8, 384], strides = [1, 1]} : vector<8x512xf32> to vector<8x384xf32>
    %32 = arith.negf %31 : vector<8x384xf32>
    %33 = math.exp %32 : vector<8x384xf32>
    %cst_12 = arith.constant 1.000000e+00 : f32
    %34 = vector.broadcast %cst_12 : f32 to vector<8x384xf32>
    %35 = arith.addf %34, %33 : vector<8x384xf32>
    %36 = arith.divf %34, %35 : vector<8x384xf32>
    %37 = vector.extract_strided_slice %30 {offsets = [0, 384], sizes = [8, 128], strides = [1, 1]} : vector<8x512xf32> to vector<8x128xf32>
    %38 = math.tanh %37 : vector<8x128xf32>
    %39 = vector.extract_strided_slice %36 {offsets = [0, 128], sizes = [8, 128], strides = [1, 1]} : vector<8x384xf32> to vector<8x128xf32>
    %40 = arith.mulf %39, %24 : vector<8x128xf32>
    %41 = vector.extract_strided_slice %36 {offsets = [0, 0], sizes = [8, 128], strides = [1, 1]} : vector<8x384xf32> to vector<8x128xf32>
    %42 = arith.mulf %41, %38 : vector<8x128xf32>
    %43 = arith.addf %40, %42 : vector<8x128xf32>
    %44 = vector.extract_strided_slice %36 {offsets = [0, 256], sizes = [8, 128], strides = [1, 1]} : vector<8x384xf32> to vector<8x128xf32>
    %45 = math.tanh %43 : vector<8x128xf32>
    %46 = arith.mulf %44, %45 : vector<8x128xf32>
    %47 = vector.extract_strided_slice %5 {offsets = [16, 0], sizes = [8, 512], strides = [1, 1]} : vector<64x512xf32> to vector<8x512xf32>
    %cst_13 = arith.constant dense<0.000000e+00> : vector<8x512xf32>
    %48 = tpu.matmul %46, %6, %cst_13 {dimension_numbers = #tpu.dot_dimension_numbers<[1], [0], [0], [1], [0, 0, 1, 1], [], []>} : vector<8x128xf32>, vector<128x512xf32>, vector<8x512xf32> -> vector<8x512xf32>
    %49 = arith.addf %47, %48 : vector<8x512xf32>
    %50 = vector.extract_strided_slice %49 {offsets = [0, 0], sizes = [8, 384], strides = [1, 1]} : vector<8x512xf32> to vector<8x384xf32>
    %51 = arith.negf %50 : vector<8x384xf32>
    %52 = math.exp %51 : vector<8x384xf32>
    %cst_14 = arith.constant 1.000000e+00 : f32
    %53 = vector.broadcast %cst_14 : f32 to vector<8x384xf32>
    %54 = arith.addf %53, %52 : vector<8x384xf32>
    %55 = arith.divf %53, %54 : vector<8x384xf32>
    %56 = vector.extract_strided_slice %49 {offsets = [0, 384], sizes = [8, 128], strides = [1, 1]} : vector<8x512xf32> to vector<8x128xf32>
    %57 = math.tanh %56 : vector<8x128xf32>
    %58 = vector.extract_strided_slice %55 {offsets = [0, 128], sizes = [8, 128], strides = [1, 1]} : vector<8x384xf32> to vector<8x128xf32>
    %59 = arith.mulf %58, %43 : vector<8x128xf32>
    %60 = vector.extract_strided_slice %55 {offsets = [0, 0], sizes = [8, 128], strides = [1, 1]} : vector<8x384xf32> to vector<8x128xf32>
    %61 = arith.mulf %60, %57 : vector<8x128xf32>
    %62 = arith.addf %59, %61 : vector<8x128xf32>
    %63 = vector.extract_strided_slice %55 {offsets = [0, 256], sizes = [8, 128], strides = [1, 1]} : vector<8x384xf32> to vector<8x128xf32>
    %64 = math.tanh %62 : vector<8x128xf32>
    %65 = arith.mulf %63, %64 : vector<8x128xf32>
    %66 = vector.extract_strided_slice %5 {offsets = [24, 0], sizes = [8, 512], strides = [1, 1]} : vector<64x512xf32> to vector<8x512xf32>
    %cst_15 = arith.constant dense<0.000000e+00> : vector<8x512xf32>
    %67 = tpu.matmul %65, %6, %cst_15 {dimension_numbers = #tpu.dot_dimension_numbers<[1], [0], [0], [1], [0, 0, 1, 1], [], []>} : vector<8x128xf32>, vector<128x512xf32>, vector<8x512xf32> -> vector<8x512xf32>
    %68 = arith.addf %66, %67 : vector<8x512xf32>
    %69 = vector.extract_strided_slice %68 {offsets = [0, 0], sizes = [8, 384], strides = [1, 1]} : vector<8x512xf32> to vector<8x384xf32>
    %70 = arith.negf %69 : vector<8x384xf32>
    %71 = math.exp %70 : vector<8x384xf32>
    %cst_16 = arith.constant 1.000000e+00 : f32
    %72 = vector.broadcast %cst_16 : f32 to vector<8x384xf32>
    %73 = arith.addf %72, %71 : vector<8x384xf32>
    %74 = arith.divf %72, %73 : vector<8x384xf32>
    %75 = vector.extract_strided_slice %68 {offsets = [0, 384], sizes = [8, 128], strides = [1, 1]} : vector<8x512xf32> to vector<8x128xf32>
    %76 = math.tanh %75 : vector<8x128xf32>
    %77 = vector.extract_strided_slice %74 {offsets = [0, 128], sizes = [8, 128], strides = [1, 1]} : vector<8x384xf32> to vector<8x128xf32>
    %78 = arith.mulf %77, %62 : vector<8x128xf32>
    %79 = vector.extract_strided_slice %74 {offsets = [0, 0], sizes = [8, 128], strides = [1, 1]} : vector<8x384xf32> to vector<8x128xf32>
    %80 = arith.mulf %79, %76 : vector<8x128xf32>
    %81 = arith.addf %78, %80 : vector<8x128xf32>
    %82 = vector.extract_strided_slice %74 {offsets = [0, 256], sizes = [8, 128], strides = [1, 1]} : vector<8x384xf32> to vector<8x128xf32>
    %83 = math.tanh %81 : vector<8x128xf32>
    %84 = arith.mulf %82, %83 : vector<8x128xf32>
    %85 = vector.extract_strided_slice %5 {offsets = [32, 0], sizes = [8, 512], strides = [1, 1]} : vector<64x512xf32> to vector<8x512xf32>
    %cst_17 = arith.constant dense<0.000000e+00> : vector<8x512xf32>
    %86 = tpu.matmul %84, %6, %cst_17 {dimension_numbers = #tpu.dot_dimension_numbers<[1], [0], [0], [1], [0, 0, 1, 1], [], []>} : vector<8x128xf32>, vector<128x512xf32>, vector<8x512xf32> -> vector<8x512xf32>
    %87 = arith.addf %85, %86 : vector<8x512xf32>
    %88 = vector.extract_strided_slice %87 {offsets = [0, 0], sizes = [8, 384], strides = [1, 1]} : vector<8x512xf32> to vector<8x384xf32>
    %89 = arith.negf %88 : vector<8x384xf32>
    %90 = math.exp %89 : vector<8x384xf32>
    %cst_18 = arith.constant 1.000000e+00 : f32
    %91 = vector.broadcast %cst_18 : f32 to vector<8x384xf32>
    %92 = arith.addf %91, %90 : vector<8x384xf32>
    %93 = arith.divf %91, %92 : vector<8x384xf32>
    %94 = vector.extract_strided_slice %87 {offsets = [0, 384], sizes = [8, 128], strides = [1, 1]} : vector<8x512xf32> to vector<8x128xf32>
    %95 = math.tanh %94 : vector<8x128xf32>
    %96 = vector.extract_strided_slice %93 {offsets = [0, 128], sizes = [8, 128], strides = [1, 1]} : vector<8x384xf32> to vector<8x128xf32>
    %97 = arith.mulf %96, %81 : vector<8x128xf32>
    %98 = vector.extract_strided_slice %93 {offsets = [0, 0], sizes = [8, 128], strides = [1, 1]} : vector<8x384xf32> to vector<8x128xf32>
    %99 = arith.mulf %98, %95 : vector<8x128xf32>
    %100 = arith.addf %97, %99 : vector<8x128xf32>
    %101 = vector.extract_strided_slice %93 {offsets = [0, 256], sizes = [8, 128], strides = [1, 1]} : vector<8x384xf32> to vector<8x128xf32>
    %102 = math.tanh %100 : vector<8x128xf32>
    %103 = arith.mulf %101, %102 : vector<8x128xf32>
    %104 = vector.extract_strided_slice %5 {offsets = [40, 0], sizes = [8, 512], strides = [1, 1]} : vector<64x512xf32> to vector<8x512xf32>
    %cst_19 = arith.constant dense<0.000000e+00> : vector<8x512xf32>
    %105 = tpu.matmul %103, %6, %cst_19 {dimension_numbers = #tpu.dot_dimension_numbers<[1], [0], [0], [1], [0, 0, 1, 1], [], []>} : vector<8x128xf32>, vector<128x512xf32>, vector<8x512xf32> -> vector<8x512xf32>
    %106 = arith.addf %104, %105 : vector<8x512xf32>
    %107 = vector.extract_strided_slice %106 {offsets = [0, 0], sizes = [8, 384], strides = [1, 1]} : vector<8x512xf32> to vector<8x384xf32>
    %108 = arith.negf %107 : vector<8x384xf32>
    %109 = math.exp %108 : vector<8x384xf32>
    %cst_20 = arith.constant 1.000000e+00 : f32
    %110 = vector.broadcast %cst_20 : f32 to vector<8x384xf32>
    %111 = arith.addf %110, %109 : vector<8x384xf32>
    %112 = arith.divf %110, %111 : vector<8x384xf32>
    %113 = vector.extract_strided_slice %106 {offsets = [0, 384], sizes = [8, 128], strides = [1, 1]} : vector<8x512xf32> to vector<8x128xf32>
    %114 = math.tanh %113 : vector<8x128xf32>
    %115 = vector.extract_strided_slice %112 {offsets = [0, 128], sizes = [8, 128], strides = [1, 1]} : vector<8x384xf32> to vector<8x128xf32>
    %116 = arith.mulf %115, %100 : vector<8x128xf32>
    %117 = vector.extract_strided_slice %112 {offsets = [0, 0], sizes = [8, 128], strides = [1, 1]} : vector<8x384xf32> to vector<8x128xf32>
    %118 = arith.mulf %117, %114 : vector<8x128xf32>
    %119 = arith.addf %116, %118 : vector<8x128xf32>
    %120 = vector.extract_strided_slice %112 {offsets = [0, 256], sizes = [8, 128], strides = [1, 1]} : vector<8x384xf32> to vector<8x128xf32>
    %121 = math.tanh %119 : vector<8x128xf32>
    %122 = arith.mulf %120, %121 : vector<8x128xf32>
    %123 = vector.extract_strided_slice %5 {offsets = [48, 0], sizes = [8, 512], strides = [1, 1]} : vector<64x512xf32> to vector<8x512xf32>
    %cst_21 = arith.constant dense<0.000000e+00> : vector<8x512xf32>
    %124 = tpu.matmul %122, %6, %cst_21 {dimension_numbers = #tpu.dot_dimension_numbers<[1], [0], [0], [1], [0, 0, 1, 1], [], []>} : vector<8x128xf32>, vector<128x512xf32>, vector<8x512xf32> -> vector<8x512xf32>
    %125 = arith.addf %123, %124 : vector<8x512xf32>
    %126 = vector.extract_strided_slice %125 {offsets = [0, 0], sizes = [8, 384], strides = [1, 1]} : vector<8x512xf32> to vector<8x384xf32>
    %127 = arith.negf %126 : vector<8x384xf32>
    %128 = math.exp %127 : vector<8x384xf32>
    %cst_22 = arith.constant 1.000000e+00 : f32
    %129 = vector.broadcast %cst_22 : f32 to vector<8x384xf32>
    %130 = arith.addf %129, %128 : vector<8x384xf32>
    %131 = arith.divf %129, %130 : vector<8x384xf32>
    %132 = vector.extract_strided_slice %125 {offsets = [0, 384], sizes = [8, 128], strides = [1, 1]} : vector<8x512xf32> to vector<8x128xf32>
    %133 = math.tanh %132 : vector<8x128xf32>
    %134 = vector.extract_strided_slice %131 {offsets = [0, 128], sizes = [8, 128], strides = [1, 1]} : vector<8x384xf32> to vector<8x128xf32>
    %135 = arith.mulf %134, %119 : vector<8x128xf32>
    %136 = vector.extract_strided_slice %131 {offsets = [0, 0], sizes = [8, 128], strides = [1, 1]} : vector<8x384xf32> to vector<8x128xf32>
    %137 = arith.mulf %136, %133 : vector<8x128xf32>
    %138 = arith.addf %135, %137 : vector<8x128xf32>
    %139 = vector.extract_strided_slice %131 {offsets = [0, 256], sizes = [8, 128], strides = [1, 1]} : vector<8x384xf32> to vector<8x128xf32>
    %140 = math.tanh %138 : vector<8x128xf32>
    %141 = arith.mulf %139, %140 : vector<8x128xf32>
    %142 = vector.extract_strided_slice %5 {offsets = [56, 0], sizes = [8, 512], strides = [1, 1]} : vector<64x512xf32> to vector<8x512xf32>
    %cst_23 = arith.constant dense<0.000000e+00> : vector<8x512xf32>
    %143 = tpu.matmul %141, %6, %cst_23 {dimension_numbers = #tpu.dot_dimension_numbers<[1], [0], [0], [1], [0, 0, 1, 1], [], []>} : vector<8x128xf32>, vector<128x512xf32>, vector<8x512xf32> -> vector<8x512xf32>
    %144 = arith.addf %142, %143 : vector<8x512xf32>
    %145 = vector.extract_strided_slice %144 {offsets = [0, 0], sizes = [8, 384], strides = [1, 1]} : vector<8x512xf32> to vector<8x384xf32>
    %146 = arith.negf %145 : vector<8x384xf32>
    %147 = math.exp %146 : vector<8x384xf32>
    %cst_24 = arith.constant 1.000000e+00 : f32
    %148 = vector.broadcast %cst_24 : f32 to vector<8x384xf32>
    %149 = arith.addf %148, %147 : vector<8x384xf32>
    %150 = arith.divf %148, %149 : vector<8x384xf32>
    %151 = vector.extract_strided_slice %144 {offsets = [0, 384], sizes = [8, 128], strides = [1, 1]} : vector<8x512xf32> to vector<8x128xf32>
    %152 = math.tanh %151 : vector<8x128xf32>
    %153 = vector.extract_strided_slice %150 {offsets = [0, 128], sizes = [8, 128], strides = [1, 1]} : vector<8x384xf32> to vector<8x128xf32>
    %154 = arith.mulf %153, %138 : vector<8x128xf32>
    %155 = vector.extract_strided_slice %150 {offsets = [0, 0], sizes = [8, 128], strides = [1, 1]} : vector<8x384xf32> to vector<8x128xf32>
    %156 = arith.mulf %155, %152 : vector<8x128xf32>
    %157 = arith.addf %154, %156 : vector<8x128xf32>
    %158 = vector.extract_strided_slice %150 {offsets = [0, 256], sizes = [8, 128], strides = [1, 1]} : vector<8x384xf32> to vector<8x128xf32>
    %159 = math.tanh %157 : vector<8x128xf32>
    %160 = arith.mulf %158, %159 : vector<8x128xf32>
    %c0_25 = arith.constant 0 : index
    %c0_26 = arith.constant 0 : index
    %161 = vector.load %arg6[%c0_25, %c0_26] : memref<128x128xf32, #tpu.memory_space<vmem>>, vector<128x128xf32>
    %cst_27 = arith.constant dense<0.000000e+00> : vector<8x128xf32>
    %162 = tpu.matmul %160, %161, %cst_27 {dimension_numbers = #tpu.dot_dimension_numbers<[1], [0], [0], [1], [0, 0, 1, 1], [], []>} : vector<8x128xf32>, vector<128x128xf32>, vector<8x128xf32> -> vector<8x128xf32>
    %c0_28 = arith.constant 0 : index
    %c0_29 = arith.constant 0 : index
    %163 = vector.load %arg7[%c0_28, %c0_29] : memref<128x128xf32, #tpu.memory_space<vmem>>, vector<128x128xf32>
    %cst_30 = arith.constant dense<0.000000e+00> : vector<8x128xf32>
    %164 = tpu.matmul %157, %163, %cst_30 {dimension_numbers = #tpu.dot_dimension_numbers<[1], [0], [0], [1], [0, 0, 1, 1], [], []>} : vector<8x128xf32>, vector<128x128xf32>, vector<8x128xf32> -> vector<8x128xf32>
    %165 = arith.addf %162, %164 : vector<8x128xf32>
    %c0_31 = arith.constant 0 : index
    %c0_32 = arith.constant 0 : index
    %166 = vector.load %arg8[%c0_31, %c0_32] : memref<1x128xf32, #tpu.memory_space<vmem>>, vector<1x128xf32>
    %167 = vector.broadcast %166 : vector<1x128xf32> to vector<8x128xf32>
    %168 = arith.addf %165, %167 : vector<8x128xf32>
    %cst_33 = arith.constant 0.000000e+00 : f32
    %169 = vector.broadcast %cst_33 : f32 to vector<8x128xf32>
    %170 = arith.maximumf %168, %169 : vector<8x128xf32>
    %171 = arith.truncf %27 : vector<8x128xf32> to vector<8x128xbf16>
    %172 = arith.truncf %46 : vector<8x128xf32> to vector<8x128xbf16>
    %173 = arith.truncf %65 : vector<8x128xf32> to vector<8x128xbf16>
    %174 = arith.truncf %84 : vector<8x128xf32> to vector<8x128xbf16>
    %175 = arith.truncf %103 : vector<8x128xf32> to vector<8x128xbf16>
    %176 = arith.truncf %122 : vector<8x128xf32> to vector<8x128xbf16>
    %177 = arith.truncf %141 : vector<8x128xf32> to vector<8x128xbf16>
    %178 = arith.truncf %160 : vector<8x128xf32> to vector<8x128xbf16>
    %179 = tpu.concatenate %171, %172, %173, %174, %175, %176, %177, %178 in 0 : vector<8x128xbf16>, vector<8x128xbf16>, vector<8x128xbf16>, vector<8x128xbf16>, vector<8x128xbf16>, vector<8x128xbf16>, vector<8x128xbf16>, vector<8x128xbf16> -> vector<64x128xbf16>
    %180 = tpu.concatenate %178, %177, %176, %175, %174, %173, %172, %171 in 0 : vector<8x128xbf16>, vector<8x128xbf16>, vector<8x128xbf16>, vector<8x128xbf16>, vector<8x128xbf16>, vector<8x128xbf16>, vector<8x128xbf16>, vector<8x128xbf16> -> vector<64x128xbf16>
    %c0_34 = arith.constant 0 : index
    %c0_35 = arith.constant 0 : index
    %181 = vector.load %arg10[%c0_34, %c0_35] : memref<128x64xbf16, #tpu.memory_space<vmem>>, vector<128x64xbf16>
    %cst_36 = arith.constant dense<0.000000e+00> : vector<64x64xf32>
    %182 = tpu.matmul %179, %181, %cst_36 {dimension_numbers = #tpu.dot_dimension_numbers<[1], [0], [0], [1], [0, 0, 1, 1], [], []>} : vector<64x128xbf16>, vector<128x64xbf16>, vector<64x64xf32> -> vector<64x64xf32>
    %c0_37 = arith.constant 0 : index
    %c0_38 = arith.constant 0 : index
    %183 = vector.load %arg11[%c0_37, %c0_38] : memref<128x64xbf16, #tpu.memory_space<vmem>>, vector<128x64xbf16>
    %cst_39 = arith.constant dense<0.000000e+00> : vector<64x64xf32>
    %184 = tpu.matmul %180, %183, %cst_39 {dimension_numbers = #tpu.dot_dimension_numbers<[1], [0], [0], [1], [0, 0, 1, 1], [], []>} : vector<64x128xbf16>, vector<128x64xbf16>, vector<64x64xf32> -> vector<64x64xf32>
    %185 = arith.addf %182, %184 : vector<64x64xf32>
    %c0_40 = arith.constant 0 : index
    %c0_41 = arith.constant 0 : index
    %186 = vector.load %arg9[%c0_40, %c0_41] : memref<128x64xf32, #tpu.memory_space<vmem>>, vector<128x64xf32>
    %cst_42 = arith.constant dense<0.000000e+00> : vector<8x64xf32>
    %187 = tpu.matmul %170, %186, %cst_42 {dimension_numbers = #tpu.dot_dimension_numbers<[1], [0], [0], [1], [0, 0, 1, 1], [], []>} : vector<8x128xf32>, vector<128x64xf32>, vector<8x64xf32> -> vector<8x64xf32>
    %188 = vector.shape_cast %185 : vector<64x64xf32> to vector<8x8x64xf32>
    %189 = vector.shape_cast %187 : vector<8x64xf32> to vector<1x8x64xf32>
    %190 = vector.broadcast %189 : vector<1x8x64xf32> to vector<8x8x64xf32>
    %191 = arith.addf %188, %190 : vector<8x8x64xf32>
    %192 = math.tanh %191 : vector<8x8x64xf32>
    %c0_43 = arith.constant 0 : index
    %c0_44 = arith.constant 0 : index
    %193 = vector.load %arg12[%c0_43, %c0_44] : memref<1x64xf32, #tpu.memory_space<vmem>>, vector<1x64xf32>
    %194 = vector.shape_cast %193 : vector<1x64xf32> to vector<1x1x64xf32>
    %195 = vector.broadcast %194 : vector<1x1x64xf32> to vector<8x8x64xf32>
    %196 = arith.mulf %192, %195 : vector<8x8x64xf32>
    %197 = vector.extract_strided_slice %196 {offsets = [0, 0, 0], sizes = [8, 8, 32], strides = [1, 1, 1]} : vector<8x8x64xf32> to vector<8x8x32xf32>
    %cst_45 = arith.constant dense<0.000000e+00> : vector<8x8xf32>
    %198 = vector.multi_reduction <add>, %197, %cst_45 [2] : vector<8x8x32xf32> to vector<8x8xf32>
    %199 = vector.extract_strided_slice %196 {offsets = [0, 0, 32], sizes = [8, 8, 32], strides = [1, 1, 1]} : vector<8x8x64xf32> to vector<8x8x32xf32>
    %cst_46 = arith.constant dense<0.000000e+00> : vector<8x8xf32>
    %200 = vector.multi_reduction <add>, %199, %cst_46 [2] : vector<8x8x32xf32> to vector<8x8xf32>
    %201 = tpu.iota {dimensions = array<i32: 0>} : vector<8x8xi32>
    %c0_47 = arith.constant 0 : index
    %c0_48 = arith.constant 0 : index
    %202 = vector.load %arg0[%c0_47, %c0_48] : memref<1x8xi32, #tpu.memory_space<vmem>>, vector<1x8xi32>
    %203 = vector.broadcast %202 : vector<1x8xi32> to vector<8x8xi32>
    %204 = arith.cmpi slt, %201, %203 : vector<8x8xi32>
    %cst_49 = arith.constant -1.000000e+30 : f32
    %205 = vector.broadcast %cst_49 : f32 to vector<8x8xf32>
    %206 = arith.select %204, %198, %205 : vector<8x8xi1>, vector<8x8xf32>
    %cst_50 = arith.constant dense<0xFF800000> : vector<8xf32>
    %207 = vector.multi_reduction <maximumf>, %206, %cst_50 [0] : vector<8x8xf32> to vector<8xf32>
    %208 = vector.shape_cast %207 : vector<8xf32> to vector<1x8xf32>
    %209 = vector.broadcast %208 : vector<1x8xf32> to vector<8x8xf32>
    %210 = arith.subf %206, %209 : vector<8x8xf32>
    %211 = math.exp %210 : vector<8x8xf32>
    %cst_51 = arith.constant dense<0.000000e+00> : vector<8xf32>
    %212 = vector.multi_reduction <add>, %211, %cst_51 [0] : vector<8x8xf32> to vector<8xf32>
    %213 = vector.shape_cast %212 : vector<8xf32> to vector<1x8xf32>
    %214 = tpu.reciprocal %213 {approx = true} : vector<1x8xf32> -> vector<1x8xf32>
    %215 = vector.broadcast %214 : vector<1x8xf32> to vector<8x8xf32>
    %216 = arith.mulf %211, %215 : vector<8x8xf32>
    %217 = tpu.iota {dimensions = array<i32: 0>} : vector<8x8xi32>
    %c0_52 = arith.constant 0 : index
    %c0_53 = arith.constant 0 : index
    %218 = vector.load %arg1[%c0_52, %c0_53] : memref<1x8xi32, #tpu.memory_space<vmem>>, vector<1x8xi32>
    %219 = vector.broadcast %218 : vector<1x8xi32> to vector<8x8xi32>
    %220 = arith.cmpi slt, %217, %219 : vector<8x8xi32>
    %cst_54 = arith.constant -1.000000e+30 : f32
    %221 = vector.broadcast %cst_54 : f32 to vector<8x8xf32>
    %222 = arith.select %220, %200, %221 : vector<8x8xi1>, vector<8x8xf32>
    %cst_55 = arith.constant dense<0xFF800000> : vector<8xf32>
    %223 = vector.multi_reduction <maximumf>, %222, %cst_55 [0] : vector<8x8xf32> to vector<8xf32>
    %224 = vector.shape_cast %223 : vector<8xf32> to vector<1x8xf32>
    %225 = vector.broadcast %224 : vector<1x8xf32> to vector<8x8xf32>
    %226 = arith.subf %222, %225 : vector<8x8xf32>
    %227 = math.exp %226 : vector<8x8xf32>
    %cst_56 = arith.constant dense<0.000000e+00> : vector<8xf32>
    %228 = vector.multi_reduction <add>, %227, %cst_56 [0] : vector<8x8xf32> to vector<8xf32>
    %229 = vector.shape_cast %228 : vector<8xf32> to vector<1x8xf32>
    %230 = tpu.reciprocal %229 {approx = true} : vector<1x8xf32> -> vector<1x8xf32>
    %231 = vector.broadcast %230 : vector<1x8xf32> to vector<8x8xf32>
    %232 = arith.mulf %227, %231 : vector<8x8xf32>
    %c0_57 = arith.constant 0 : index
    %c0_58 = arith.constant 0 : index
    %233 = vector.load %arg13[%c0_57, %c0_58] : memref<16x128xf32, #tpu.memory_space<vmem>>, vector<8x128xf32>
    tpu.vector_store %arg13[%c0_57, %c0_58], %170 {strides = array<i32>} : memref<16x128xf32, #tpu.memory_space<vmem>>, vector<8x128xf32>,
    %cst_59 = arith.constant 0.000000e+00 : f32
    %234 = vector.broadcast %cst_59 : f32 to vector<8x128xf32>
    %c8 = arith.constant 8 : index
    %c0_60 = arith.constant 0 : index
    %235 = vector.load %arg13[%c8, %c0_60] : memref<16x128xf32, #tpu.memory_space<vmem>>, vector<8x128xf32>
    tpu.vector_store %arg13[%c8, %c0_60], %234 {strides = array<i32>} : memref<16x128xf32, #tpu.memory_space<vmem>>, vector<8x128xf32>,
    %c8_61 = arith.constant 8 : index
    %c0_62 = arith.constant 0 : index
    %236 = vector.load %arg13[%c8_61, %c0_62] : memref<16x128xf32, #tpu.memory_space<vmem>>, vector<8x8xf32>
    tpu.vector_store %arg13[%c8_61, %c0_62], %216 {strides = array<i32>} : memref<16x128xf32, #tpu.memory_space<vmem>>, vector<8x8xf32>,
    %c8_63 = arith.constant 8 : index
    %c8_64 = arith.constant 8 : index
    %237 = vector.load %arg13[%c8_63, %c8_64] : memref<16x128xf32, #tpu.memory_space<vmem>>, vector<8x8xf32>
    tpu.vector_store %arg13[%c8_63, %c8_64], %232 {strides = array<i32>} : memref<16x128xf32, #tpu.memory_space<vmem>>, vector<8x8xf32>,
    return
  }
}

</mosaic_0001>

<bundles_post_ra>
// kernel: pointer_net_forward.1
= control target key start
LH: loop header
LB: loop body
LE: loop exit
PB: predicated region body
PF: predicated region fallthrough
CT: control target
= control target key end

     0   :  { %18 = vsyncpa [#allocation3], 0  ;;  %s2533_s28 = smov [#allocation2]   ;;  %s2534_s30 = smov 512   ;;  %s4005_s0 = inlined_call_operand.vmem [shape: s32[1,8], index: 0, kind: input, shape index: {}]   ;;  %s4006_s1 = inlined_call_operand.vmem [shape: s32[1,8], index: 1, kind: input, shape index: {}]   ;;  %s4007_s2 = inlined_call_operand.vmem [shape: bf16[64,20], index: 2, kind: input, shape index: {}]   ;;  %s4008_s3 = inlined_call_operand.vmem [shape: bf16[20,512], index: 3, kind: input, shape index: {}]   ;;  %s4009_s4 = inlined_call_operand.vmem [shape: f32[1,512], index: 4, kind: input, shape index: {}]   ;;  %s4010_s5 = inlined_call_operand.hbm [shape: f32[128,512], index: 5, kind: input, shape index: {}]   ;;  %s4011_s6 = inlined_call_operand.vmem [shape: f32[128,128], index: 6, kind: input, shape index: {}]   ;;  %s4012_s7 = inlined_call_operand.vmem [shape: f32[128,128], index: 7, kind: input, shape index: {}]   ;;  %s4013_s8 = inlined_call_operand.vmem [shape: f32[1,128], index: 8, kind: input, shape index: {}]   ;;  %s4014_s9 = inlined_call_operand.vmem [shape: f32[128,64], index: 9, kind: input, shape index: {}]   ;;  %s4015_s10 = inlined_call_operand.vmem [shape: bf16[128,64], index: 10, kind: input, shape index: {}]   ;;  %s4016_s11 = inlined_call_operand.vmem [shape: bf16[128,64], index: 11, kind: input, shape index: {}]   ;;  %s4017_s12 = inlined_call_operand.vmem [shape: f32[1,64], index: 12, kind: input, shape index: {}]   ;;  %s4018_s13 = inlined_call_operand.vmem [shape: f32[16,128], index: 13, kind: output, shape index: {}]  }
   0x1   :  { %s33_s27 = sshll.u32 %s4010_s5, 4  ;;  %s35_s29 = sshll.u32 %s2533_s28, 4  ;;  %s34_s27 = int_to_ptr.hbm [resolvable:$true] %s33_s27  ;;  %s36_s29 = int_to_ptr.vmem [resolvable:$true] %s35_s29 }
   0x2   :  { %s2535_s14 = smov 32  }
   0x3   :  { %41 = dma.hbm_to_vmem [thread:$0]  %s34_s27, 8192, %s36_s29, [#allocation3], %s2534_s30, %s2534_s30, %s2535_s14  }
   0x4   :  { %2531 = dma.done.wait [#allocation3], 8192  }
   0x5   :  { %2532 = vsyncadd [#allocation3], 4294959104  ;;  %v73_v0 = vld [vmem:[%s4008_s3 + $0x20] sm:$0x33]  ;;  %v74_v1 = vld [vmem:[%s4008_s3 + $0x28] sm:$0x33] }
   0x6   :  { %v119_v2 = vunpack.c.l.b16 %v73_v0  ;;  %v120_v3 = vunpack.c.h.b16 %v73_v0  ;;  %v122_v4 = vunpack.c.h.b16 %v74_v1  ;;  %v121_v5 = vunpack.c.l.b16 %v74_v1  ;;  %v2129_v6 = vld [vmem:[%s4008_s3] sm:$0xf]  ;;  %v2253_v7 = vld [vmem:[%s4008_s3 + $0xc] sm:$0xf0]  ;;  %v2251_v11 = vld [vmem:[%s4008_s3 + $0x4] sm:$0xf] }
   0x7   :  { %vm148_vm0 = vcmask 1041408   ;;  %v2131_v12 = vld [vmem:[%s4008_s3 + $0x10] sm:$0xf0]  ;;  %v2252_v13 = vld [vmem:[%s4008_s3 + $0xc] sm:$0xf]  ;;  %v2130_v21 = vor.u32 %v2253_v7, %v2129_v6  ;;  %v2649_v26 = vld [vmem:[%s4007_s2] sm:$0xff] }
   0x8   :  { %v127_v8 = vpack.c.b16 %v119_v2, %v119_v2  ;;  %v128_v9 = vpack.c.b16 %v120_v3, %v120_v3  ;;  %v130_v10 = vpack.c.b16 %v122_v4, %v122_v4  ;;  %v2139_v14 = vld [vmem:[%s4008_s3 + $0x18] sm:$0xf0]  ;;  %v129_v15 = vpack.c.b16 %v121_v5, %v121_v5  ;;  %v2137_v16 = vld [vmem:[%s4008_s3 + $0x8] sm:$0xf]  ;;  %v2254_v17 = vld [vmem:[%s4008_s3 + $0x14] sm:$0xf0] }
   0x9   :  { %v2134_v22 = vor.u32 %v2251_v11, %v2131_v12  ;;  %v2142_v24 = vor.u32 %v2252_v13, %v2139_v14  ;;  %v2138_v25 = vor.u32 %v2254_v17, %v2137_v16  ;;  %vm135_vm1 = vcmask 162816   ;;  %v2654_v27 = vld [vmem:[%s4007_s2 + $0x10] sm:$0xff]  ;;  %v2667_v30 = vld [vmem:[#allocation2 + $0x1e0] sm:$0xff]  ;;  %v2669_v31 = vld [vmem:[#allocation2 + $0x1f8] sm:$0xff] }
   0xa   :  { %v150_v18 = vsel %vm148_vm0, %v127_v8, 0  ;;  %v153_v19 = vsel %vm148_vm0, %v128_v9, 0  ;;  %v159_v20 = vsel %vm148_vm0, %v130_v10, 0  ;;  %v156_v23 = vsel %vm148_vm0, %v129_v15, 0  ;;  %v2656_v28 = vld [vmem:[#allocation2 + $0x1f0] sm:$0xff]  ;;  %v2675_v33 = vld [vmem:[#allocation2 + $0x1c0] sm:$0xff] }
   0xb   :  { %167 = vmatpush.bf16.msra.mxu0 %v150_v18  ;;  %196 = vmatpush.bf16.msra.mxu1 %v153_v19  ;;  %v2662_v29 = vld [vmem:[#allocation2 + $0x1d0] sm:$0xff]  ;;  %v2679_v34 = vld [vmem:[#allocation2 + $0x1d8] sm:$0xff]  ;;  %v2684_v36 = vld [vmem:[#allocation2 + $0x1a0] sm:$0xff]  ;;  %v4019_v58 = vmov 0.0  }
   0xc   :  { %254 = vmatpush.bf16.msra.mxu3 %v159_v20  ;;  %2271 = vmatpush.bf16.msra.mxu2 %v156_v23  ;;  %v2673_v32 = vld [vmem:[#allocation2 + $0x1b0] sm:$0xff]  ;;  %v2688_v37 = vld [vmem:[#allocation2 + $0x1b8] sm:$0xff]  ;;  %v2693_v39 = vld [vmem:[#allocation2 + $0x180] sm:$0xff]  ;;  %2098 = vst [vmem:[%s4018_s13 + $0x8] sm:$0xff] %v4019_v58 }
   0xd   :  { %v2682_v35 = vld [vmem:[#allocation2 + $0x190] sm:$0xff]  ;;  %v2697_v40 = vld [vmem:[#allocation2 + $0x198] sm:$0xff]  ;;  %v2702_v42 = vld [vmem:[#allocation2 + $0x160] sm:$0xff] }
   0xe   :  { %v2691_v38 = vld [vmem:[#allocation2 + $0x170] sm:$0xff]  ;;  %v2706_v43 = vld [vmem:[#allocation2 + $0x178] sm:$0xff]  ;;  %v2711_v45 = vld [vmem:[#allocation2 + $0x140] sm:$0xff] }
   0xf   :  { %168 = vmatpush.bf16.msra.mxu0 %v2130_v21  ;;  %197 = vmatpush.bf16.msra.mxu1 %v2134_v22  ;;  %v2700_v41 = vld [vmem:[#allocation2 + $0x150] sm:$0xff]  ;;  %v2715_v46 = vld [vmem:[#allocation2 + $0x158] sm:$0xff]  ;;  %v2720_v47 = vld [vmem:[%s4007_s2 + $0x8] sm:$0xff] }
  0x10   :  { %255 = vmatpush.bf16.msra.mxu3 %v2142_v24  ;;  %2272 = vmatpush.bf16.msra.mxu2 %v2138_v25  ;;  %v2709_v44 = vld [vmem:[#allocation2 + $0x130] sm:$0xff]  ;;  %v2725_v49 = vld [vmem:[#allocation2 + $0x120] sm:$0xff]  ;;  %v2733_v50 = vld [vmem:[%s4007_s2 + $0x18] sm:$0xff] }
  0x11   :  { %v2723_v48 = vld [vmem:[#allocation2 + $0x110] sm:$0xff]  ;;  %v2739_v52 = vld [vmem:[#allocation2 + $0x138] sm:$0xff]  ;;  %v2745_v53 = vld [vmem:[#allocation2 + $0x100] sm:$0xff] }
  0x12   :  { %2143 = vmatmul.msk.bf16.vlgmr.msra.gmra.mxu0 %vm135_vm1, %v2649_v26  ;;  %2147 = vmatmul.msk.bf16.vlgmr.msra.gmra.mxu1 %vm135_vm1, %v2649_v26  ;;  %4116 = vst [vmem:[#allocation5_spill] sm:$0xff] %v2723_v48  ;;  %v2735_v51 = vld [vmem:[#allocation2 + $0xf0] sm:$0xff]  ;;  %v2752_v55 = vld [vmem:[#allocation2 + $0x118] sm:$0xff]  ;;  %v2757_v56 = vld [vmem:[#allocation2 + $0xe0] sm:$0xff] }
  0x13   :  { %225 = vmatpush.bf16.msrb.mxu1 %v156_v23  ;;  %2155 = vmatmul.msk.bf16.vlgmr.msra.gmra.mxu3 %vm135_vm1, %v2649_v26  ;;  %v2747_v54 = vld [vmem:[#allocation2 + $0xd0] sm:$0xff]  ;;  %4117 = vst [vmem:[#allocation6_spill] sm:$0xff] %v2757_v56  ;;  %v2767_v59 = vld [vmem:[#allocation2 + $0xf8] sm:$0xff]  ;;  %v2770_v60 = vld [vmem:[#allocation2 + $0xc0] sm:$0xff] }
  0x14   :  { %381 = vmatpush.msrb.mxu2 %v2656_v28  ;;  %341 = vmatpush.msrb.mxu0 %v2667_v30  ;;  %v2759_v57 = vld [vmem:[#allocation2 + $0xb0] sm:$0xff]  ;;  %4119 = vst [vmem:[#allocation8_spill] sm:$0xff] %v2770_v60  ;;  %v2776_v62 = vld [vmem:[#allocation2 + $0xd8] sm:$0xff]  ;;  %v2779_v63 = vld [vmem:[#allocation2 + $0xa0] sm:$0xff] }
  0x15   :  { %2153 = vmatmul.msk.bf16.vlgmr.msra.gmra.mxu2 %vm135_vm1, %v2654_v27  ;;  %401 = vmatpush.msrb.mxu3 %v2669_v31  ;;  %4118 = vst [vmem:[#allocation7_spill] sm:$0xff] %v2759_v57  ;;  %v2772_v61 = vld [vmem:[#allocation2 + $0x90] sm:$0xff]  ;;  %v2785_v1 = vld [vmem:[#allocation2 + $0xb8] sm:$0xff]  ;;  %v2788_v2 = vld [vmem:[#allocation2 + $0x80] sm:$0xff] }
  0x16   :  { %382 = vmatpush.msrb.mxu2 %v2662_v29  ;;  %342 = vmatpush.msrb.mxu0 %v2675_v33  ;;  %4120 = vst [vmem:[#allocation9_spill] sm:$0xff] %v2772_v61  ;;  %v2781_v0 = vld [vmem:[#allocation2 + $0x70] sm:$0xff]  ;;  %v2794_v4 = vld [vmem:[#allocation2 + $0x98] sm:$0xff]  ;;  %v2797_v5 = vld [vmem:[#allocation2 + $0x60] sm:$0xff] }
  0x17   :  { %226 = vmatpush.bf16.msrb.mxu1 %v2138_v25  ;;  %402 = vmatpush.msrb.mxu3 %v2679_v34  ;;  %4121 = vst [vmem:[#allocation10_spill] sm:$0xff] %v2776_v62  ;;  %v2790_v3 = vld [vmem:[#allocation2 + $0x50] sm:$0xff]  ;;  %v2803_v7 = vld [vmem:[#allocation2 + $0x78] sm:$0xff]  ;;  %v2806_v8 = vld [vmem:[#allocation2 + $0x40] sm:$0xff] }
  0x18   :  { %383 = vmatpush.msrb.mxu2 %v2673_v32  ;;  %343 = vmatpush.msrb.mxu0 %v2684_v36  ;;  %4122 = vst [vmem:[#allocation11_spill] sm:$0xff] %v2779_v63  ;;  %v2799_v6 = vld [vmem:[#allocation2 + $0x30] sm:$0xff]  ;;  %v2813_v10 = vld [vmem:[#allocation2 + $0x20] sm:$0xff]  ;;  %v2817_v11 = vld [vmem:[#allocation2 + $0x58] sm:$0xff] }
  0x19   :  { %403 = vmatpush.msrb.mxu3 %v2688_v37  ;;  %4123 = vst [vmem:[#allocation12_spill] sm:$0xff] %v2781_v0  ;;  %v2808_v9 = vld [vmem:[#allocation2 + $0x10] sm:$0xff]  ;;  %v2823_v12 = vld [vmem:[#allocation2] sm:$0xff]  ;;  %v2825_v13 = vld [vmem:[#allocation2 + $0x1e8] sm:$0xff] }
  0x1a   :  { %384 = vmatpush.msrb.mxu2 %v2682_v35  ;;  %344 = vmatpush.msrb.mxu0 %v2693_v39  ;;  %4124 = vst [vmem:[#allocation13_spill] sm:$0xff] %v2785_v1  ;;  %v2830_v14 = vld [vmem:[#allocation2 + $0x38] sm:$0xff]  ;;  %v2834_v15 = vld [vmem:[#allocation2 + $0x1c8] sm:$0xff] }
  0x1b   :  { %404 = vmatpush.msrb.mxu3 %v2697_v40  ;;  %4125 = vst [vmem:[#allocation14_spill] sm:$0xff] %v2788_v2  ;;  %v2837_v16 = vld [vmem:[#allocation2 + $0x18] sm:$0xff]  ;;  %361 = vmatpush.msra.mxu1 %v2825_v13  ;;  %v2841_v17 = vld [vmem:[#allocation2 + $0x1a8] sm:$0xff] }
  0x1c   :  { %385 = vmatpush.msrb.mxu2 %v2691_v38  ;;  %345 = vmatpush.msrb.mxu0 %v2702_v42  ;;  %4126 = vst [vmem:[#allocation15_spill] sm:$0xff] %v2790_v3  ;;  %v2847_v18 = vld [vmem:[#allocation2 + $0x188] sm:$0xff] }
  0x1d   :  { %405 = vmatpush.msrb.mxu3 %v2706_v43  ;;  %4127 = vst [vmem:[#allocation16_spill] sm:$0xff] %v2794_v4  ;;  %362 = vmatpush.msra.mxu1 %v2834_v15  ;;  %v2852_v19 = vld [vmem:[#allocation2 + $0x168] sm:$0xff] }
  0x1e   :  { %386 = vmatpush.msrb.mxu2 %v2700_v41  ;;  %346 = vmatpush.msrb.mxu0 %v2711_v45  ;;  %4128 = vst [vmem:[#allocation17_spill] sm:$0xff] %v2797_v5  ;;  %v2858_v20 = vld [vmem:[#allocation2 + $0x148] sm:$0xff] }
  0x1f   :  { %406 = vmatpush.msrb.mxu3 %v2715_v46  ;;  %4129 = vst [vmem:[#allocation18_spill] sm:$0xff] %v2799_v6  ;;  %363 = vmatpush.msra.mxu1 %v2841_v17  ;;  %v2864_v21 = vld [vmem:[#allocation2 + $0x128] sm:$0xff] }
  0x20   :  { %387 = vmatpush.msrb.mxu2 %v2709_v44  ;;  %347 = vmatpush.msrb.mxu0 %v2725_v49  ;;  %4130 = vst [vmem:[#allocation19_spill] sm:$0xff] %v2803_v7  ;;  %v2870_v22 = vld [vmem:[#allocation2 + $0x108] sm:$0xff] }
  0x21   :  { %407 = vmatpush.msrb.mxu3 %v2739_v52  ;;  %4131 = vst [vmem:[#allocation20_spill] sm:$0xff] %v2806_v8  ;;  %364 = vmatpush.msra.mxu1 %v2847_v18  ;;  %v2880_v23 = vld [vmem:[#allocation2 + $0xe8] sm:$0xff] }
  0x22   :  { %388 = vmatpush.msrb.mxu2 %v2723_v48  ;;  %2144 = vmatmul.msk.bf16.gmra.mxu0 %vm135_vm1, %v2720_v47  ;;  %4132 = vst [vmem:[#allocation21_spill] sm:$0xff] %v2808_v9  ;;  %v2885_v24 = vld [vmem:[#allocation2 + $0xc8] sm:$0xff] }
  0x23   :  { %2148 = vmatmul.msk.bf16.gmra.mxu1 %vm135_vm1, %v2720_v47  ;;  %2156 = vmatmul.msk.bf16.gmra.mxu3 %vm135_vm1, %v2720_v47  ;;  %4133 = vst [vmem:[#allocation22_spill] sm:$0xff] %v2813_v10  ;;  %v2891_v25 = vld [vmem:[#allocation2 + $0xa8] sm:$0xff] }
  0x24   :  { %389 = vmatpush.msrb.mxu2 %v2735_v51  ;;  %348 = vmatpush.msrb.mxu0 %v2745_v53  ;;  %4134 = vst [vmem:[#allocation23_spill] sm:$0xff] %v2817_v11 }
  0x25   :  { %2154 = vmatmul.msk.bf16.gmra.mxu2 %vm135_vm1, %v2733_v50  ;;  %408 = vmatpush.msrb.mxu3 %v2752_v55  ;;  %4135 = vst [vmem:[#allocation24_spill] sm:$0xff] %v2823_v12 }
  0x26   :  { %390 = vmatpush.msrb.mxu2 %v2747_v54  ;;  %349 = vmatpush.msrb.mxu0 %v2757_v56  ;;  %4136 = vst [vmem:[#allocation25_spill] sm:$0xff] %v2830_v14 }
  0x27   :  { %409 = vmatpush.msrb.mxu3 %v2767_v59  ;;  %4137 = vst [vmem:[#allocation26_spill] sm:$0xff] %v2837_v16  ;;  %365 = vmatpush.msra.mxu1 %v2852_v19 }
  0x28   :  { %391 = vmatpush.msrb.mxu2 %v2759_v57  ;;  %350 = vmatpush.msrb.mxu0 %v2770_v60  ;;  %4138 = vst [vmem:[#allocation27_spill] sm:$0xff] %v2891_v25 }
  0x29   :  { %410 = vmatpush.msrb.mxu3 %v2776_v62  ;;  %366 = vmatpush.msra.mxu1 %v2858_v20 }
  0x2a   :  { %392 = vmatpush.msrb.mxu2 %v2772_v61  ;;  %351 = vmatpush.msrb.mxu0 %v2779_v63 }
  0x2b   :  { %411 = vmatpush.msrb.mxu3 %v2785_v1  ;;  %367 = vmatpush.msra.mxu1 %v2864_v21 }
  0x2c   :  { %393 = vmatpush.msrb.mxu2 %v2781_v0  ;;  %352 = vmatpush.msrb.mxu0 %v2788_v2 }
  0x2d   :  { %412 = vmatpush.msrb.mxu3 %v2794_v4  ;;  %368 = vmatpush.msra.mxu1 %v2870_v22 }
  0x2e   :  { %394 = vmatpush.msrb.mxu2 %v2790_v3  ;;  %353 = vmatpush.msrb.mxu0 %v2797_v5 }
  0x2f   :  { %413 = vmatpush.msrb.mxu3 %v2803_v7  ;;  %369 = vmatpush.msra.mxu1 %v2880_v23 }
  0x30   :  { %395 = vmatpush.msrb.mxu2 %v2799_v6  ;;  %354 = vmatpush.msrb.mxu0 %v2806_v8 }
  0x31   :  { %414 = vmatpush.msrb.mxu3 %v2817_v11  ;;  %370 = vmatpush.msra.mxu1 %v2885_v24 }
  0x32   :  { %396 = vmatpush.msrb.mxu2 %v2808_v9  ;;  %2145 = vmatmul.msk.bf16.gmra.mxu0 %vm135_vm1, %v2654_v27 }
  0x33   :  { %2149 = vmatmul.msk.bf16.gmra.mxu1 %vm135_vm1, %v2654_v27  ;;  %2157 = vmatmul.msk.bf16.gmra.mxu3 %vm135_vm1, %v2654_v27  ;;  %v2897_v27 = vld [vmem:[#allocation2 + $0x88] sm:$0xff] }
  0x34   :  { %355 = vmatpush.msrb.mxu0 %v2813_v10  ;;  %415 = vmatpush.msrb.mxu3 %v2830_v14  ;;  %4139 = vst [vmem:[#allocation28_spill] sm:$0xff] %v2897_v27 }
  0x35   :  { %397 = vmatmul.f32.vlgmr.msrb.gmra.mxu2 %v4019_v58  ;;  %371 = vmatpush.msra.mxu1 %v2891_v25  ;;  %v2909_v58 = vld [vmem:[#allocation2 + $0x48] sm:$0xff] }
  0x36   :  { %356 = vmatpush.msrb.mxu0 %v2823_v12  ;;  %528 = vmatpush.msra.mxu2 %v2656_v28  ;;  %4141 = vst [vmem:[#allocation30_spill] sm:$0xff] %v2909_v58 }
  0x37   :  { %416 = vmatpush.msrb.mxu3 %v2837_v16  ;;  %372 = vmatpush.msra.mxu1 %v2897_v27 }
  0x38   :  { %488 = vmatpush.msra.mxu0 %v2667_v30  ;;  %529 = vmatpush.msra.mxu2 %v2662_v29 }
  0x39   :  { %548 = vmatpush.msra.mxu3 %v2669_v31 }
  0x3a   :  { %489 = vmatpush.msra.mxu0 %v2675_v33  ;;  %530 = vmatpush.msra.mxu2 %v2673_v32 }
  0x3b   :  { %549 = vmatpush.msra.mxu3 %v2679_v34 }
  0x3c   :  { %490 = vmatpush.msra.mxu0 %v2684_v36  ;;  %531 = vmatpush.msra.mxu2 %v2682_v35 }
  0x3d   :  { %550 = vmatpush.msra.mxu3 %v2688_v37 }
  0x3e   :  { %491 = vmatpush.msra.mxu0 %v2693_v39  ;;  %532 = vmatpush.msra.mxu2 %v2691_v38 }
  0x3f   :  { %551 = vmatpush.msra.mxu3 %v2697_v40 }
  0x40   :  { %492 = vmatpush.msra.mxu0 %v2702_v42  ;;  %533 = vmatpush.msra.mxu2 %v2700_v41 }
  0x41   :  { %552 = vmatpush.msra.mxu3 %v2706_v43 }
  0x42   :  { %493 = vmatpush.msra.mxu0 %v2711_v45  ;;  %534 = vmatpush.msra.mxu2 %v2709_v44 }
  0x43   :  { %2146 = vmatmul.msk.bf16.gmra.mxu0 %vm135_vm1, %v2733_v50  ;;  %2150 = vmatmul.msk.bf16.gmra.mxu1 %vm135_vm1, %v2733_v50 }
  0x44   :  { %2158 = vmatmul.msk.bf16.gmra.mxu3 %vm135_vm1, %v2733_v50  ;;  %494 = vmatpush.msra.mxu0 %v2725_v49  ;;  %v2903_v50 = vld [vmem:[#allocation2 + $0x68] sm:$0xff] }
  0x45   :  { %553 = vmatpush.msra.mxu3 %v2715_v46  ;;  %535 = vmatpush.msra.mxu2 %v2723_v48  ;;  %4140 = vst [vmem:[#allocation29_spill] sm:$0xff] %v2903_v50 }
  0x46   :  { %495 = vmatpush.msra.mxu0 %v2745_v53  ;;  %373 = vmatpush.msra.mxu1 %v2903_v50 }
  0x47   :  { %554 = vmatpush.msra.mxu3 %v2739_v52  ;;  %536 = vmatpush.msra.mxu2 %v2735_v51 }
  0x48   :  { %496 = vmatpush.msra.mxu0 %v2757_v56  ;;  %v2915_v56 = vld [vmem:[#allocation2 + $0x28] sm:$0xff]  ;;  %374 = vmatpush.msra.mxu1 %v2909_v58 }
  0x49   :  { %555 = vmatpush.msra.mxu3 %v2752_v55  ;;  %537 = vmatpush.msra.mxu2 %v2747_v54  ;;  %4142 = vst [vmem:[#allocation31_spill] sm:$0xff] %v2915_v56 }
  0x4a   :  { %497 = vmatpush.msra.mxu0 %v2770_v60  ;;  %v2921_v60 = vld [vmem:[#allocation2 + $0x8] sm:$0xff]  ;;  %375 = vmatpush.msra.mxu1 %v2915_v56 }
  0x4b   :  { %556 = vmatpush.msra.mxu3 %v2767_v59  ;;  %538 = vmatpush.msra.mxu2 %v2759_v57  ;;  %4143 = vst [vmem:[#allocation32_spill] sm:$0xff] %v2921_v60  ;;  %v4144_v57 = vmov 0.0  }
  0x4c   :  { %498 = vmatpush.msra.mxu0 %v2779_v63  ;;  %376 = vmatpush.msra.mxu1 %v2921_v60 }
  0x4d   :  { %557 = vmatpush.msra.mxu3 %v2776_v62  ;;  %539 = vmatpush.msra.mxu2 %v2772_v61 }
  0x4e   :  { %499 = vmatpush.msra.mxu0 %v2788_v2 }
  0x4f   :  { %558 = vmatpush.msra.mxu3 %v2785_v1  ;;  %540 = vmatpush.msra.mxu2 %v2781_v0 }
  0x50   :  { %500 = vmatpush.msra.mxu0 %v2797_v5 }
  0x51   :  { %559 = vmatpush.msra.mxu3 %v2794_v4  ;;  %541 = vmatpush.msra.mxu2 %v2790_v3 }
  0x52   :  { %501 = vmatpush.msra.mxu0 %v2806_v8 }
  0x53   :  { %2151 = vmatmul.msk.bf16.vlgmr.msrb.gmra.mxu1 %vm135_vm1, %v2649_v26  ;;  %357 = vmatmul.f32.vlgmr.msrb.gmra.mxu0 %v4144_v57  ;;  %v4145_v26 = vld [vmem:[#allocation6_spill] sm:$0xff] }
  0x54   :  { %417 = vmatmul.f32.vlgmr.msrb.gmra.mxu3 %v4144_v57  ;;  %508 = vmatpush.msrb.mxu1 %v2825_v13 }
  0x55   :  { %560 = vmatpush.msra.mxu3 %v2803_v7  ;;  %502 = vmatpush.msra.mxu0 %v2813_v10 }
  0x56   :  { %509 = vmatpush.msrb.mxu1 %v2834_v15  ;;  %542 = vmatpush.msra.mxu2 %v2799_v6 }
  0x57   :  { %561 = vmatpush.msra.mxu3 %v2817_v11  ;;  %503 = vmatpush.msra.mxu0 %v2823_v12 }
  0x58   :  { %510 = vmatpush.msrb.mxu1 %v2841_v17  ;;  %543 = vmatpush.msra.mxu2 %v2808_v9 }
  0x59   :  { %562 = vmatpush.msra.mxu3 %v2830_v14  ;;  %635 = vmatpush.msrb.mxu0 %v2667_v30 }
  0x5a   :  { %511 = vmatpush.msrb.mxu1 %v2847_v18  ;;  %675 = vmatpush.msrb.mxu2 %v2656_v28 }
  0x5b   :  { %563 = vmatpush.msra.mxu3 %v2837_v16  ;;  %636 = vmatpush.msrb.mxu0 %v2675_v33 }
  0x5c   :  { %512 = vmatpush.msrb.mxu1 %v2852_v19  ;;  %676 = vmatpush.msrb.mxu2 %v2662_v29 }
  0x5d   :  { %695 = vmatpush.msrb.mxu3 %v2669_v31  ;;  %637 = vmatpush.msrb.mxu0 %v2684_v36 }
  0x5e   :  { %513 = vmatpush.msrb.mxu1 %v2858_v20  ;;  %677 = vmatpush.msrb.mxu2 %v2673_v32 }
  0x5f   :  { %696 = vmatpush.msrb.mxu3 %v2679_v34  ;;  %638 = vmatpush.msrb.mxu0 %v2693_v39 }
  0x60   :  { %514 = vmatpush.msrb.mxu1 %v2864_v21  ;;  %678 = vmatpush.msrb.mxu2 %v2682_v35 }
  0x61   :  { %697 = vmatpush.msrb.mxu3 %v2688_v37  ;;  %639 = vmatpush.msrb.mxu0 %v2702_v42 }
  0x62   :  { %515 = vmatpush.msrb.mxu1 %v2870_v22  ;;  %679 = vmatpush.msrb.mxu2 %v2691_v38 }
  0x63   :  { %2152 = vmatmul.msk.bf16.gmra.mxu1 %vm135_vm1, %v2720_v47  ;;  %698 = vmatpush.msrb.mxu3 %v2697_v40  ;;  %v4146_v47 = vld [vmem:[#allocation8_spill] sm:$0xff] }
  0x64   :  { %516 = vmatpush.msrb.mxu1 %v2880_v23  ;;  %640 = vmatpush.msrb.mxu0 %v2711_v45 }
  0x65   :  { %699 = vmatpush.msrb.mxu3 %v2706_v43  ;;  %680 = vmatpush.msrb.mxu2 %v2700_v41 }
  0x66   :  { %517 = vmatpush.msrb.mxu1 %v2885_v24  ;;  %641 = vmatpush.msrb.mxu0 %v2725_v49 }
  0x67   :  { %700 = vmatpush.msrb.mxu3 %v2715_v46  ;;  %681 = vmatpush.msrb.mxu2 %v2709_v44 }
  0x68   :  { %518 = vmatpush.msrb.mxu1 %v2891_v25  ;;  %642 = vmatpush.msrb.mxu0 %v2745_v53 }
  0x69   :  { %701 = vmatpush.msrb.mxu3 %v2739_v52  ;;  %682 = vmatpush.msrb.mxu2 %v2723_v48  ;;  %v4147_v48 = vld [vmem:[#allocation7_spill] sm:$0xff] }
  0x6a   :  { %519 = vmatpush.msrb.mxu1 %v2897_v27  ;;  %643 = vmatpush.msrb.mxu0 %v4145_v26 }
  0x6b   :  { %702 = vmatpush.msrb.mxu3 %v2752_v55  ;;  %683 = vmatpush.msrb.mxu2 %v2735_v51 }
  0x6c   :  { %520 = vmatpush.msrb.mxu1 %v2903_v50  ;;  %644 = vmatpush.msrb.mxu0 %v4146_v47 }
  0x6d   :  { %703 = vmatpush.msrb.mxu3 %v2767_v59  ;;  %684 = vmatpush.msrb.mxu2 %v2747_v54 }
  0x6e   :  { %521 = vmatpush.msrb.mxu1 %v2909_v58  ;;  %645 = vmatpush.msrb.mxu0 %v2779_v63 }
  0x6f   :  { %704 = vmatpush.msrb.mxu3 %v2776_v62  ;;  %685 = vmatpush.msrb.mxu2 %v4147_v48 }
  0x70   :  { %522 = vmatpush.msrb.mxu1 %v2915_v56  ;;  %646 = vmatpush.msrb.mxu0 %v2788_v2 }
  0x71   :  { %705 = vmatpush.msrb.mxu3 %v2785_v1  ;;  %686 = vmatpush.msrb.mxu2 %v2772_v61 }
  0x72   :  { %523 = vmatpush.msrb.mxu1 %v2921_v60  ;;  %647 = vmatpush.msrb.mxu0 %v2797_v5 }
  0x73   :  { %377 = vmatmul.f32.vlgmr.msra.gmra.mxu1 %v4144_v57  ;;  %706 = vmatpush.msrb.mxu3 %v2794_v4 }
  0x74   :  { %655 = vmatpush.msra.mxu1 %v2825_v13  ;;  %687 = vmatpush.msrb.mxu2 %v2781_v0 }
  0x75   :  { %707 = vmatpush.msrb.mxu3 %v2803_v7  ;;  %648 = vmatpush.msrb.mxu0 %v2806_v8 }
  0x76   :  { %656 = vmatpush.msra.mxu1 %v2834_v15  ;;  %688 = vmatpush.msrb.mxu2 %v2790_v3 }
  0x77   :  { %708 = vmatpush.msrb.mxu3 %v2817_v11  ;;  %649 = vmatpush.msrb.mxu0 %v2813_v10 }
  0x78   :  { %657 = vmatpush.msra.mxu1 %v2841_v17  ;;  %689 = vmatpush.msrb.mxu2 %v2799_v6 }
  0x79   :  { %709 = vmatpush.msrb.mxu3 %v2830_v14  ;;  %650 = vmatpush.msrb.mxu0 %v2823_v12 }
  0x7a   :  { %658 = vmatpush.msra.mxu1 %v2847_v18  ;;  %690 = vmatpush.msrb.mxu2 %v2808_v9  ;;  %v75_v9 = vld [vmem:[%s4009_s4] sm:$0xf] }
  0x7b   :  { %710 = vmatpush.msrb.mxu3 %v2837_v16  ;;  %v77_v12 = vperm.slane %v75_v9, 0  ;;  %v3031_v14 = vperm.slane %v75_v9, 1  ;;  %v3040_v8 = vperm.slane %v75_v9, 3  ;;  %v3103_v2 = vperm.slane %v75_v9, 2 }
  0x7c   :  { %659 = vmatpush.msra.mxu1 %v2852_v19 }
  0x7d   :  { %4174 = vst [vmem:[#allocation57_spill] sm:$0xff] %v3103_v2 }
  0x7e   :  { %660 = vmatpush.msra.mxu1 %v2858_v20 }
  0x80   :  { %661 = vmatpush.msra.mxu1 %v2864_v21 }
  0x82   :  { %662 = vmatpush.msra.mxu1 %v2870_v22 }
  0x84   :  { %663 = vmatpush.msra.mxu1 %v2880_v23 }
  0x86   :  { %664 = vmatpush.msra.mxu1 %v2885_v24 }
  0x88   :  { %665 = vmatpush.msra.mxu1 %v2891_v25 }
  0x8a   :  { %666 = vmatpush.msra.mxu1 %v2897_v27 }
  0x8c   :  { %667 = vmatpush.msra.mxu1 %v2903_v50 }
  0x8e   :  { %668 = vmatpush.msra.mxu1 %v2909_v58 }
  0x8f   :  { %v170_v57 = vpop.f32.mrf.mxu0  ;;  %v3024_v16 = vpop.f32.mrf.mxu1 }
  0x90   :  { %669 = vmatpush.msra.mxu1 %v2915_v56 }
  0x92   :  { %670 = vmatpush.msra.mxu1 %v2921_v60 }
  0x96   :  { %v3033_v6 = vpop.f32.mrf.mxu3 }
  0x97   :  { %v172_v10 = vpop.f32.mrf.mxu0  ;;  %v201_v11 = vpop.f32.mrf.mxu1 }
  0x98   :  { %v3035_v3 = vadd.f32 %v172_v10, %v77_v12  ;;  %v3038_v58 = vadd.f32 %v201_v11, %v3031_v14 }
  0x9a   :  { %4148 = vst [vmem:[#allocation6_spill] sm:$0xff] %v3035_v3 }
  0x9b   :  { %4149 = vst [vmem:[#allocation8_spill] sm:$0xff] %v3038_v58 }
  0x9e   :  { %v259_v56 = vpop.f32.mrf.mxu3 }
  0x9f   :  { %v3043_v60 = vadd.f32 %v259_v56, %v3040_v8  ;;  %v175_v7 = vpop.f32.mrf.mxu0 }
  0xa0   :  { %v204_v0 = vpop.f32.mrf.mxu1  ;;  %v3045_v50 = vadd.f32 %v175_v7, %v77_v12 }
  0xa1   :  { %4150 = vst [vmem:[#allocation33_spill] sm:$0xff] %v3043_v60  ;;  %v3048_v5 = vadd.f32 %v204_v0, %v3031_v14 }
  0xa2   :  { %4151 = vst [vmem:[#allocation34_spill] sm:$0xff] %v3045_v50 }
  0xa3   :  { %4152 = vst [vmem:[#allocation35_spill] sm:$0xff] %v3048_v5 }
  0xa6   :  { %v262_v4 = vpop.f32.mrf.mxu3 }
  0xa7   :  { %v3051_v10 = vadd.f32 %v262_v4, %v3040_v8  ;;  %v177_v3 = vpop.f32.mrf.mxu0 }
  0xa8   :  { %v206_v11 = vpop.f32.mrf.mxu1  ;;  %v3053_v58 = vadd.f32 %v177_v3, %v77_v12 }
  0xa9   :  { %4153 = vst [vmem:[#allocation36_spill] sm:$0xff] %v3051_v10  ;;  %v3056_v61 = vadd.f32 %v206_v11, %v3031_v14 }
  0xaa   :  { %4154 = vst [vmem:[#allocation37_spill] sm:$0xff] %v3053_v58 }
  0xab   :  { %4155 = vst [vmem:[#allocation38_spill] sm:$0xff] %v3056_v61 }
  0xae   :  { %v264_v56 = vpop.f32.mrf.mxu3 }
  0xaf   :  { %v3059_v60 = vadd.f32 %v264_v56, %v3040_v8  ;;  %v180_v7 = vpop.f32.mrf.mxu0  ;;  %v3074_v56 = vpop.f32.mrf.mxu2 }
  0xb0   :  { %v209_v50 = vpop.f32.mrf.mxu1  ;;  %v3061_v27 = vadd.f32 %v180_v7, %v77_v12  ;;  %4162 = vst [vmem:[#allocation45_spill] sm:$0xff] %v3074_v56 }
  0xb1   :  { %4156 = vst [vmem:[#allocation39_spill] sm:$0xff] %v3059_v60  ;;  %v3064_v0 = vadd.f32 %v209_v50, %v3031_v14 }
  0xb2   :  { %4157 = vst [vmem:[#allocation40_spill] sm:$0xff] %v3061_v27 }
  0xb3   :  { %4158 = vst [vmem:[#allocation41_spill] sm:$0xff] %v3064_v0 }
  0xb6   :  { %v267_v4 = vpop.f32.mrf.mxu3 }
  0xb7   :  { %v3067_v10 = vadd.f32 %v267_v4, %v3040_v8  ;;  %v182_v3 = vpop.f32.mrf.mxu0 }
  0xb8   :  { %v211_v58 = vpop.f32.mrf.mxu1  ;;  %v3069_v5 = vadd.f32 %v182_v3, %v77_v12 }
  0xb9   :  { %4159 = vst [vmem:[#allocation42_spill] sm:$0xff] %v3067_v10  ;;  %v3072_v11 = vadd.f32 %v211_v58, %v3031_v14  ;;  %v3084_v10 = vpop.f32.mrf.mxu2 }
  0xba   :  { %4160 = vst [vmem:[#allocation43_spill] sm:$0xff] %v3069_v5 }
  0xbb   :  { %4161 = vst [vmem:[#allocation44_spill] sm:$0xff] %v3072_v11 }
  0xbc   :  { %4166 = vst [vmem:[#allocation49_spill] sm:$0xff] %v3084_v10  ;;  %v171_v10 = vadd.f32 %v170_v57, %v77_v12 }
  0xbe   :  { %v269_v60 = vpop.f32.mrf.mxu3 }
  0xbf   :  { %v3077_v7 = vadd.f32 %v269_v60, %v3040_v8 }
  0xc0   :  { %v185_v27 = vpop.f32.mrf.mxu0  ;;  %v214_v50 = vpop.f32.mrf.mxu1 }
  0xc1   :  { %4163 = vst [vmem:[#allocation46_spill] sm:$0xff] %v3077_v7  ;;  %v3079_v0 = vadd.f32 %v185_v27, %v77_v12  ;;  %v3082_v4 = vadd.f32 %v214_v50, %v3031_v14  ;;  %v3094_v61 = vpop.f32.mrf.mxu2 }
  0xc2   :  { %4170 = vst [vmem:[#allocation53_spill] sm:$0xff] %v3094_v61 }
  0xc3   :  { %4164 = vst [vmem:[#allocation47_spill] sm:$0xff] %v3079_v0 }
  0xc4   :  { %4165 = vst [vmem:[#allocation48_spill] sm:$0xff] %v3082_v4 }
  0xc7   :  { %v272_v3 = vpop.f32.mrf.mxu3 }
  0xc8   :  { %v3087_v5 = vadd.f32 %v272_v3, %v3040_v8  ;;  %v187_v58 = vpop.f32.mrf.mxu0  ;;  %v216_v11 = vpop.f32.mrf.mxu1 }
  0xc9   :  { %v3089_v56 = vadd.f32 %v187_v58, %v77_v12  ;;  %v3092_v60 = vadd.f32 %v216_v11, %v3031_v14  ;;  %v3101_v3 = vpop.f32.mrf.mxu2  ;;  %v200_v12 = vadd.f32 %v3024_v16, %v3031_v14  ;;  %v258_v14 = vadd.f32 %v3033_v6, %v3040_v8 }
  0xca   :  { %4167 = vst [vmem:[#allocation50_spill] sm:$0xff] %v3087_v5 }
  0xcb   :  { %4168 = vst [vmem:[#allocation51_spill] sm:$0xff] %v3089_v56 }
  0xcc   :  { %4169 = vst [vmem:[#allocation52_spill] sm:$0xff] %v3092_v60 }
  0xcd   :  { %4173 = vst [vmem:[#allocation56_spill] sm:$0xff] %v3101_v3 }
  0xcf   :  { %v274_v7 = vpop.f32.mrf.mxu3 }
  0xd0   :  { %v3097_v27 = vadd.f32 %v274_v7, %v3040_v8  ;;  %v228_v50 = vpop.f32.mrf.mxu1  ;;  %v358_v4 = vpop.f32.mrf.mxu0 }
  0xd1   :  { %v421_v5 = vadd.f32 %v358_v4, %v171_v10  ;;  %v229_v11 = vadd.f32 %v228_v50, %v3103_v2  ;;  %v398_v60 = vpop.f32.mrf.mxu2 }
  0xd2   :  { %4171 = vst [vmem:[#allocation54_spill] sm:$0xff] %v3097_v27 }
  0xd3   :  { %v2159_v58 = vmul.f32 -1.442695, %v421_v5  ;;  %v423_v61 = vadd.f32 %v398_v60, %v229_v11 }
  0xd5   :  { %2291 = vpow2.f32 %v2159_v58  ;;  %v2161_v1 = vmul.f32 -1.442695, %v423_v61 }
  0xd7   :  { %2293 = vpow2.f32 %v2161_v1  ;;  %v418_v61 = vpop.f32.mrf.mxu3 }
  0xd8   :  { %v3099_v0 = vpop.f32.mrf.mxu1 }
  0xd9   :  { %4172 = vst [vmem:[#allocation55_spill] sm:$0xff] %v3099_v0 }
  0xdb   :  { %v2292_v27 = vpop.eup %2291 }
  0xdc   :  { %v434_v48 = vadd.f32 1.0, %v2292_v27 }
  0xdd   :  { %v2294_v10 = vpop.eup %2293 }
  0xde   :  { %2295 = vrcp.f32 %v434_v48  ;;  %v436_v58 = vadd.f32 1.0, %v2294_v10  ;;  %vm442_vm3 = vweird.f32 %v434_v48  ;;  %v446_v10 = vand.u32 2147483647, %v434_v48 }
  0xe0   :  { %v3105_v56 = vpop.f32.mrf.mxu1  ;;  %vm447_vm6 = vcmp.eq.f32.partialorder %v446_v10, 8.507059e+37  ;;  %vm472_vm11 = vweird.f32 %v436_v58 }
  0xe1   :  { %4175 = vst [vmem:[#allocation58_spill] sm:$0xff] %v3105_v56 }
  0xe4   :  { %v2296_v4 = vpop.eup %2295 }
  0xe5   :  { %v438_v50 = vmul.f32 %v2296_v4, %v434_v48  ;;  %vm443_vm2 = vweird.f32 %v2296_v4 }
  0xe6   :  { %vm444_vm4 = vmor %vm442_vm3, %vm443_vm2 }
  0xe7   :  { %v439_v11 = vsub.f32 1.0, %v438_v50 }
  0xe8   :  { %v3108_v7 = vpop.f32.mrf.mxu1 }
  0xe9   :  { %4176 = vst [vmem:[#allocation59_spill] sm:$0xff] %v3108_v7  ;;  %v440_v27 = vmul.f32 %v2296_v4, %v439_v11  ;;  %v424_v7 = vadd.f32 %v418_v61, %v258_v14 }
  0xf0   :  { %v378_v9 = vpop.f32.mrf.mxu1 }
  0xf1   :  { %v422_v57 = vadd.f32 %v378_v9, %v200_v12  ;;  %v441_v12 = vadd.f32 %v2296_v4, %v440_v27 }
  0xf3   :  { %v2160_v5 = vmul.f32 -1.442695, %v422_v57  ;;  %v445_v50 = vsel %vm444_vm4, %v2296_v4, %v441_v12  ;;  %v478_v4 = vand.u32 2147483648, %v436_v58 }
  0xf5   :  { %2297 = vpow2.f32 %v2160_v5  ;;  %v448_v5 = vand.u32 2147483648, %v434_v48  ;;  %v479_v12 = vor.u32 1.1754944e-38, %v478_v4 }
  0xf6   :  { %2299 = vrcp.f32 %v436_v58 }
  0xf7   :  { %v449_v6 = vor.u32 1.1754944e-38, %v448_v5 }
  0xf9   :  { %v450_v61 = vsel %vm447_vm6, %v449_v6, %v445_v50  ;;  %v4206_v50 = vld [vmem:[#allocation55_spill] sm:$0xff] }
  0xfb   :  { %v2298_v3 = vpop.eup %2297 }
  0xfc   :  { %v435_v60 = vadd.f32 1.0, %v2298_v3  ;;  %v2300_v1 = vpop.eup %2299 }
  0xfd   :  { %v468_v57 = vmul.f32 %v2300_v1, %v436_v58  ;;  %vm473_vm10 = vweird.f32 %v2300_v1 }
  0xfe   :  { %2301 = vrcp.f32 %v435_v60  ;;  %v463_v3 = vand.u32 2147483648, %v435_v60  ;;  %v461_v11 = vand.u32 2147483647, %v435_v60  ;;  %vm457_vm7 = vweird.f32 %v435_v60  ;;  %vm474_vm12 = vmor %vm472_vm11, %vm473_vm10 }
  0xff   :  { %2303 = vtanh.f32 %v424_v7  ;;  %v469_v2 = vsub.f32 1.0, %v468_v57  ;;  %vm1615_vm10 = vcmask 1043456  }
 0x100   :  { %v464_v27 = vor.u32 1.1754944e-38, %v463_v3  ;;  %vm462_vm9 = vcmp.eq.f32.partialorder %v461_v11, 8.507059e+37  ;;  %v4205_v3 = vld [vmem:[#allocation57_spill] sm:$0xff] }
 0x101   :  { %v470_v48 = vmul.f32 %v2300_v1, %v469_v2  ;;  %v231_v11 = vadd.f32 %v4206_v50, %v4205_v3 }
 0x104   :  { %v2302_v16 = vpop.eup %2301 }
 0x105   :  { %v453_v9 = vmul.f32 %v2302_v16, %v435_v60  ;;  %vm458_vm5 = vweird.f32 %v2302_v16  ;;  %v2304_v25 = vpop.eup %2303 }
 0x106   :  { %vm459_vm8 = vmor %vm457_vm7, %vm458_vm5  ;;  %v484_v63 = vmul.f32 %v2304_v25, %v450_v61  ;;  %v4203_v25 = vld [vmem:[#allocation6_spill] sm:$0xff] }
 0x107   :  { %v454_v56 = vsub.f32 1.0, %v453_v9 }
 0x109   :  { %v455_v0 = vmul.f32 %v2302_v16, %v454_v56  ;;  %v471_v56 = vadd.f32 %v2300_v1, %v470_v48 }
 0x10b   :  { %v456_v8 = vadd.f32 %v2302_v16, %v455_v0  ;;  %v476_v0 = vand.u32 2147483647, %v436_v58  ;;  %v475_v60 = vsel %vm474_vm12, %v2300_v1, %v471_v56 }
 0x10d   :  { %v460_v14 = vsel %vm459_vm8, %v2302_v16, %v456_v8  ;;  %vm477_vm13 = vcmp.eq.f32.partialorder %v476_v0, 8.507059e+37 }
 0x10e   :  { %v465_v9 = vsel %vm462_vm9, %v464_v27, %v460_v14  ;;  %v480_v57 = vsel %vm477_vm13, %v479_v12, %v475_v60  ;;  %v4207_v60 = vld [vmem:[#allocation33_spill] sm:$0xff] }
 0x10f   :  { %v483_v7 = vmul.f32 0.0, %v465_v9 }
 0x111   :  { %v3114_v62 = vadd.f32 %v484_v63, %v483_v7 }
 0x113   :  { %2305 = vtanh.f32 %v3114_v62 }
 0x119   :  { %v2306_v16 = vpop.eup %2305 }
 0x11a   :  { %v3117_v5 = vmul.f32 %v2306_v16, %v480_v57 }
 0x11c   :  { %504 = vmatmul.f32.vlgmr.msra.gmra.mxu0 %v3117_v5  ;;  %524 = vmatmul.f32.vlgmr.msrb.gmra.mxu1 %v3117_v5  ;;  %v1595_v50 = vpack.c.bf16 %v3117_v5, %v3117_v5 }
 0x11d   :  { %544 = vmatmul.f32.vlgmr.msra.gmra.mxu2 %v3117_v5  ;;  %564 = vmatmul.f32.vlgmr.msra.gmra.mxu3 %v3117_v5 }
 0x11e   :  { %782 = vmatpush.msra.mxu0 %v2667_v30  ;;  %802 = vmatpush.msrb.mxu1 %v2825_v13  ;;  %v4179_v30 = vld [vmem:[#allocation11_spill] sm:$0xff] }
 0x11f   :  { %822 = vmatpush.msra.mxu2 %v2656_v28  ;;  %842 = vmatpush.msra.mxu3 %v2669_v31  ;;  %v4177_v28 = vld [vmem:[#allocation5_spill] sm:$0xff]  ;;  %v4180_v31 = vld [vmem:[#allocation27_spill] sm:$0xff] }
 0x120   :  { %783 = vmatpush.msra.mxu0 %v2675_v33  ;;  %803 = vmatpush.msrb.mxu1 %v2834_v15  ;;  %v4182_v33 = vld [vmem:[#allocation13_spill] sm:$0xff] }
 0x121   :  { %823 = vmatpush.msra.mxu2 %v2662_v29  ;;  %843 = vmatpush.msra.mxu3 %v2679_v34  ;;  %v4178_v29 = vld [vmem:[#allocation10_spill] sm:$0xff] }
 0x122   :  { %784 = vmatpush.msra.mxu0 %v2684_v36  ;;  %804 = vmatpush.msrb.mxu1 %v2841_v17  ;;  %v4183_v34 = vld [vmem:[#allocation14_spill] sm:$0xff]  ;;  %v4185_v36 = vld [vmem:[#allocation9_spill] sm:$0xff] }
 0x123   :  { %824 = vmatpush.msra.mxu2 %v2673_v32  ;;  %844 = vmatpush.msra.mxu3 %v2688_v37  ;;  %v4181_v32 = vld [vmem:[#allocation7_spill] sm:$0xff]  ;;  %v4186_v37 = vld [vmem:[#allocation16_spill] sm:$0xff] }
 0x124   :  { %785 = vmatpush.msra.mxu0 %v2693_v39  ;;  %805 = vmatpush.msrb.mxu1 %v2847_v18  ;;  %v4188_v39 = vld [vmem:[#allocation29_spill] sm:$0xff] }
 0x125   :  { %825 = vmatpush.msra.mxu2 %v2682_v35  ;;  %845 = vmatpush.msra.mxu3 %v2697_v40  ;;  %v4184_v35 = vld [vmem:[#allocation28_spill] sm:$0xff] }
 0x126   :  { %786 = vmatpush.msra.mxu0 %v2702_v42  ;;  %806 = vmatpush.msrb.mxu1 %v2852_v19  ;;  %v4189_v40 = vld [vmem:[#allocation12_spill] sm:$0xff] }
 0x127   :  { %826 = vmatpush.msra.mxu2 %v2691_v38  ;;  %846 = vmatpush.msra.mxu3 %v2706_v43  ;;  %v4187_v38 = vld [vmem:[#allocation17_spill] sm:$0xff]  ;;  %v4191_v42 = vld [vmem:[#allocation20_spill] sm:$0xff]  ;;  %v4192_v43 = vld [vmem:[#allocation30_spill] sm:$0xff] }
 0x128   :  { %787 = vmatpush.msra.mxu0 %v2711_v45  ;;  %807 = vmatpush.msrb.mxu1 %v2858_v20  ;;  %v4194_v45 = vld [vmem:[#allocation23_spill] sm:$0xff] }
 0x129   :  { %827 = vmatpush.msra.mxu2 %v2700_v41  ;;  %847 = vmatpush.msra.mxu3 %v2715_v46  ;;  %v4190_v41 = vld [vmem:[#allocation19_spill] sm:$0xff]  ;;  %v4195_v46 = vld [vmem:[#allocation22_spill] sm:$0xff] }
 0x12a   :  { %788 = vmatpush.msra.mxu0 %v2725_v49  ;;  %808 = vmatpush.msrb.mxu1 %v2864_v21  ;;  %v4196_v49 = vld [vmem:[#allocation31_spill] sm:$0xff] }
 0x12b   :  { %828 = vmatpush.msra.mxu2 %v2709_v44  ;;  %848 = vmatpush.msra.mxu3 %v2739_v52  ;;  %v4193_v44 = vld [vmem:[#allocation15_spill] sm:$0xff]  ;;  %v4198_v52 = vld [vmem:[#allocation25_spill] sm:$0xff] }
 0x12c   :  { %789 = vmatpush.msra.mxu0 %v2745_v53  ;;  %809 = vmatpush.msrb.mxu1 %v2870_v22  ;;  %v4199_v53 = vld [vmem:[#allocation24_spill] sm:$0xff] }
 0x12d   :  { %829 = vmatpush.msra.mxu2 %v4177_v28  ;;  %849 = vmatpush.msra.mxu3 %v2752_v55  ;;  %v4201_v55 = vld [vmem:[#allocation21_spill] sm:$0xff] }
 0x12e   :  { %790 = vmatpush.msra.mxu0 %v4145_v26  ;;  %810 = vmatpush.msrb.mxu1 %v2880_v23 }
 0x12f   :  { %830 = vmatpush.msra.mxu2 %v2735_v51  ;;  %850 = vmatpush.msra.mxu3 %v2767_v59  ;;  %v4197_v51 = vld [vmem:[#allocation18_spill] sm:$0xff] }
 0x130   :  { %791 = vmatpush.msra.mxu0 %v4146_v47  ;;  %811 = vmatpush.msrb.mxu1 %v2885_v24  ;;  %v4202_v59 = vld [vmem:[#allocation26_spill] sm:$0xff]  ;;  %v4204_v47 = vld [vmem:[#allocation8_spill] sm:$0xff] }
 0x131   :  { %831 = vmatpush.msra.mxu2 %v2747_v54  ;;  %851 = vmatpush.msra.mxu3 %v4178_v29  ;;  %v4200_v54 = vld [vmem:[#allocation32_spill] sm:$0xff] }
 0x132   :  { %792 = vmatpush.msra.mxu0 %v4179_v30  ;;  %812 = vmatpush.msrb.mxu1 %v4180_v31 }
 0x133   :  { %832 = vmatpush.msra.mxu2 %v4181_v32  ;;  %852 = vmatpush.msra.mxu3 %v4182_v33 }
 0x134   :  { %793 = vmatpush.msra.mxu0 %v4183_v34  ;;  %813 = vmatpush.msrb.mxu1 %v4184_v35 }
 0x135   :  { %833 = vmatpush.msra.mxu2 %v4185_v36  ;;  %853 = vmatpush.msra.mxu3 %v4186_v37 }
 0x136   :  { %794 = vmatpush.msra.mxu0 %v4187_v38  ;;  %814 = vmatpush.msrb.mxu1 %v4188_v39 }
 0x137   :  { %834 = vmatpush.msra.mxu2 %v4189_v40  ;;  %854 = vmatpush.msra.mxu3 %v4190_v41 }
 0x138   :  { %795 = vmatpush.msra.mxu0 %v4191_v42  ;;  %815 = vmatpush.msrb.mxu1 %v4192_v43 }
 0x139   :  { %835 = vmatpush.msra.mxu2 %v4193_v44  ;;  %855 = vmatpush.msra.mxu3 %v4194_v45 }
 0x13a   :  { %796 = vmatpush.msra.mxu0 %v4195_v46  ;;  %816 = vmatpush.msrb.mxu1 %v4196_v49 }
 0x13b   :  { %836 = vmatpush.msra.mxu2 %v4197_v51  ;;  %856 = vmatpush.msra.mxu3 %v4198_v52 }
 0x13c   :  { %797 = vmatpush.msra.mxu0 %v4199_v53  ;;  %817 = vmatpush.msrb.mxu1 %v4200_v54 }
 0x13d   :  { %837 = vmatpush.msra.mxu2 %v4201_v55  ;;  %857 = vmatpush.msra.mxu3 %v4202_v59 }
 0x199   :  { %v505_v63 = vpop.f32.mrf.mxu0  ;;  %v525_v2 = vpop.f32.mrf.mxu1 }
 0x19a   :  { %v568_v26 = vadd.f32 %v505_v63, %v4203_v25  ;;  %v569_v58 = vadd.f32 %v525_v2, %v4204_v47 }
 0x19c   :  { %v2162_v1 = vmul.f32 -1.442695, %v568_v26  ;;  %v2163_v10 = vmul.f32 -1.442695, %v569_v58 }
 0x19e   :  { %2307 = vpow2.f32 %v2162_v1 }
 0x19f   :  { %2309 = vpow2.f32 %v2163_v10 }
 0x1a0   :  { %v545_v6 = vpop.f32.mrf.mxu2  ;;  %v565_v7 = vpop.f32.mrf.mxu3 }
 0x1a1   :  { %v570_v8 = vadd.f32 %v545_v6, %v231_v11  ;;  %v571_v12 = vadd.f32 %v565_v7, %v4207_v60 }
 0x1a3   :  { %v2164_v61 = vmul.f32 -1.442695, %v570_v8  ;;  %v1642_v8 = vunpack.c.l.b16 %v1595_v50 }
 0x1a4   :  { %v2308_v27 = vpop.eup %2307 }
 0x1a5   :  { %v2310_v14 = vpop.eup %2309  ;;  %v581_v48 = vadd.f32 1.0, %v2308_v27  ;;  %2311 = vpow2.f32 %v2164_v61 }
 0x1a6   :  { %v582_v9 = vadd.f32 1.0, %v2310_v14 }
 0x1a7   :  { %2313 = vrcp.f32 %v581_v48  ;;  %v595_v32 = vand.u32 2147483648, %v581_v48  ;;  %v593_v36 = vand.u32 2147483647, %v581_v48  ;;  %vm589_vm0 = vweird.f32 %v581_v48 }
 0x1a8   :  { %2315 = vrcp.f32 %v582_v9  ;;  %v610_v33 = vand.u32 2147483648, %v582_v9  ;;  %v608_v38 = vand.u32 2147483647, %v582_v9  ;;  %vm604_vm1 = vweird.f32 %v582_v9 }
 0x1a9   :  { %v596_v44 = vor.u32 1.1754944e-38, %v595_v32  ;;  %vm594_vm4 = vcmp.eq.f32.partialorder %v593_v36, 8.507059e+37  ;;  %v3244_v32 = vld [vmem:[#allocation2 + $0x160] sm:$0xff]  ;;  %v3258_v36 = vld [vmem:[#allocation2 + $0x150] sm:$0xff] }
 0x1aa   :  { %v611_v46 = vor.u32 1.1754944e-38, %v610_v33  ;;  %vm609_vm5 = vcmp.eq.f32.partialorder %v608_v38, 8.507059e+37  ;;  %v3248_v33 = vld [vmem:[#allocation2 + $0x170] sm:$0xff] }
 0x1ab   :  { %v2312_v56 = vpop.eup %2311  ;;  %v3268_v38 = vld [vmem:[#allocation2 + $0x130] sm:$0xff] }
 0x1ac   :  { %v583_v4 = vadd.f32 1.0, %v2312_v56  ;;  %v3205_v56 = vld [vmem:[#allocation2 + $0x1f0] sm:$0xff] }
 0x1ad   :  { %v2314_v0 = vpop.eup %2313 }
 0x1ae   :  { %v2316_v16 = vpop.eup %2315  ;;  %v585_v57 = vmul.f32 %v2314_v0, %v581_v48  ;;  %2317 = vrcp.f32 %v583_v4  ;;  %vm590_vm14 = vweird.f32 %v2314_v0  ;;  %v625_v1 = vand.u32 2147483648, %v583_v4 }
 0x1af   :  { %v600_v28 = vmul.f32 %v2316_v16, %v582_v9  ;;  %2319 = vtanh.f32 %v571_v12  ;;  %vm605_vm15 = vweird.f32 %v2316_v16  ;;  %vm591_vm2 = vmor %vm589_vm0, %vm590_vm14  ;;  %vm619_vm7 = vweird.f32 %v583_v4  ;;  %v3198_v9 = vld [vmem:[#allocation2 + $0x1e0] sm:$0xff]  ;;  %v3218_v12 = vld [vmem:[#allocation2 + $0x1d8] sm:$0xff] }
 0x1b0   :  { %v586_v29 = vsub.f32 1.0, %v585_v57  ;;  %vm606_vm3 = vmor %vm604_vm1, %vm605_vm15  ;;  %v623_v10 = vand.u32 2147483647, %v583_v4  ;;  %v626_v6 = vor.u32 1.1754944e-38, %v625_v1  ;;  %v1643_v48 = vpack.c.b16 %v1642_v8, %v1642_v8  ;;  %v3351_v1 = vld [vmem:[#allocation2 + $0x38] sm:$0xff] }
 0x1b1   :  { %v601_v30 = vsub.f32 1.0, %v600_v28  ;;  %v3228_v28 = vld [vmem:[#allocation2 + $0x1b0] sm:$0xff]  ;;  %4226 = vst [vmem:[#allocation22_spill] sm:$0xff] %v3351_v1 }
 0x1b2   :  { %v587_v34 = vmul.f32 %v2314_v0, %v586_v29  ;;  %vm624_vm9 = vcmp.eq.f32.partialorder %v623_v10, 8.507059e+37  ;;  %v3234_v29 = vld [vmem:[#allocation2 + $0x180] sm:$0xff]  ;;  %v3358_v10 = vld [vmem:[#allocation2 + $0x10] sm:$0xff] }
 0x1b3   :  { %v602_v37 = vmul.f32 %v2316_v16, %v601_v30  ;;  %v3238_v30 = vld [vmem:[#allocation2 + $0x190] sm:$0xff]  ;;  %4228 = vst [vmem:[#allocation18_spill] sm:$0xff] %v3358_v10 }
 0x1b4   :  { %v2318_v40 = vpop.eup %2317  ;;  %v588_v41 = vadd.f32 %v2314_v0, %v587_v34  ;;  %v3251_v34 = vld [vmem:[#allocation2 + $0x178] sm:$0xff] }
 0x1b5   :  { %v615_v42 = vmul.f32 %v2318_v40, %v583_v4  ;;  %v603_v45 = vadd.f32 %v2316_v16, %v602_v37  ;;  %v2320_v52 = vpop.eup %2319  ;;  %vm620_vm6 = vweird.f32 %v2318_v40  ;;  %v3208_v4 = vld [vmem:[#allocation2 + $0x1f8] sm:$0xff] }
 0x1b6   :  { %v592_v51 = vsel %vm591_vm2, %v2314_v0, %v588_v41  ;;  %vm621_vm8 = vmor %vm619_vm7, %vm620_vm6  ;;  %v3211_v0 = vld [vmem:[#allocation2 + $0x1c0] sm:$0xff]  ;;  %v3261_v37 = vld [vmem:[#allocation2 + $0x158] sm:$0xff] }
 0x1b7   :  { %v616_v53 = vsub.f32 1.0, %v615_v42  ;;  %v597_v55 = vsel %vm594_vm4, %v596_v44, %v592_v51  ;;  %v607_v59 = vsel %vm606_vm3, %v2316_v16, %v603_v45  ;;  %v3221_v16 = vld [vmem:[#allocation2 + $0x1a0] sm:$0xff]  ;;  %v3278_v41 = vld [vmem:[#allocation2 + $0x110] sm:$0xff]  ;;  %v3281_v42 = vld [vmem:[#allocation2 + $0x118] sm:$0xff] }
 0x1b8   :  { %v612_v63 = vsel %vm609_vm5, %v611_v46, %v607_v59  ;;  %v631_v2 = vmul.f32 %v2320_v52, %v597_v55  ;;  %v3288_v44 = vld [vmem:[#allocation2 + $0xf0] sm:$0xff]  ;;  %v3291_v45 = vld [vmem:[#allocation2 + $0xf8] sm:$0xff] }
 0x1b9   :  { %v617_v25 = vmul.f32 %v2318_v40, %v616_v53  ;;  %v630_v26 = vmul.f32 %v612_v63, %v3114_v62  ;;  %v3298_v46 = vld [vmem:[#allocation2 + $0xd0] sm:$0xff]  ;;  %v3301_v51 = vld [vmem:[#allocation2 + $0xd8] sm:$0xff] }
 0x1ba   :  { %4210 = vst [vmem:[#allocation11_spill] sm:$0xff] %v3298_v46  ;;  %v3308_v52 = vld [vmem:[#allocation2 + $0xb0] sm:$0xff]  ;;  %v3311_v53 = vld [vmem:[#allocation2 + $0xb8] sm:$0xff] }
 0x1bb   :  { %v3193_v47 = vadd.f32 %v631_v2, %v630_v26  ;;  %v618_v58 = vadd.f32 %v2318_v40, %v617_v25  ;;  %4211 = vst [vmem:[#allocation27_spill] sm:$0xff] %v3301_v51  ;;  %v3318_v55 = vld [vmem:[#allocation2 + $0x90] sm:$0xff]  ;;  %v3321_v59 = vld [vmem:[#allocation2 + $0x98] sm:$0xff] }
 0x1bc   :  { %4213 = vst [vmem:[#allocation13_spill] sm:$0xff] %v3308_v52  ;;  %v3328_v63 = vld [vmem:[#allocation2 + $0x70] sm:$0xff]  ;;  %v3331_v2 = vld [vmem:[#allocation2 + $0x78] sm:$0xff] }
 0x1bd   :  { %2321 = vtanh.f32 %v3193_v47  ;;  %v622_v11 = vsel %vm621_vm8, %v2318_v40, %v618_v58  ;;  %v3271_v40 = vld [vmem:[#allocation2 + $0x138] sm:$0xff]  ;;  %4214 = vst [vmem:[#allocation14_spill] sm:$0xff] %v3311_v53  ;;  %v3338_v25 = vld [vmem:[#allocation2 + $0x50] sm:$0xff] }
 0x1be   :  { %v627_v27 = vsel %vm624_vm9, %v626_v6, %v622_v11  ;;  %4216 = vst [vmem:[#allocation9_spill] sm:$0xff] %v3318_v55  ;;  %v3341_v26 = vld [vmem:[#allocation2 + $0x58] sm:$0xff]  ;;  %v3348_v58 = vld [vmem:[#allocation2 + $0x30] sm:$0xff]  ;;  %v4230_v6 = vld [vmem:[#allocation34_spill] sm:$0xff] }
 0x1bf   :  { %4217 = vst [vmem:[#allocation16_spill] sm:$0xff] %v3321_v59 }
 0x1c0   :  { %4219 = vst [vmem:[#allocation29_spill] sm:$0xff] %v3328_v63 }
 0x1c1   :  { %4220 = vst [vmem:[#allocation12_spill] sm:$0xff] %v3331_v2 }
 0x1c2   :  { %4222 = vst [vmem:[#allocation20_spill] sm:$0xff] %v3338_v25 }
 0x1c3   :  { %v2322_v61 = vpop.eup %2321  ;;  %4223 = vst [vmem:[#allocation30_spill] sm:$0xff] %v3341_v26 }
 0x1c4   :  { %v634_v62 = vmul.f32 %v2322_v61, %v627_v27  ;;  %4225 = vst [vmem:[#allocation23_spill] sm:$0xff] %v3348_v58  ;;  %v4231_v61 = vld [vmem:[#allocation35_spill] sm:$0xff] }
 0x1c6   :  { %651 = vmatmul.f32.vlgmr.msrb.gmra.mxu0 %v634_v62  ;;  %671 = vmatmul.f32.vlgmr.msra.gmra.mxu1 %v634_v62  ;;  %v1596_v14 = vpack.c.bf16 %v634_v62, %v634_v62 }
 0x1c7   :  { %691 = vmatmul.f32.vlgmr.msrb.gmra.mxu2 %v634_v62  ;;  %711 = vmatmul.f32.vlgmr.msrb.gmra.mxu3 %v634_v62 }
 0x1c8   :  { %929 = vmatpush.msrb.mxu0 %v3198_v9  ;;  %949 = vmatpush.msra.mxu1 %v2825_v13  ;;  %v1604_v5 = vunpack.c.l.b16 %v1596_v14  ;;  %v3203_v7 = vsel %vm1615_vm10, %v1596_v14, %v1643_v48  ;;  %v3215_v13 = vld [vmem:[#allocation2 + $0x1d0] sm:$0xff]  ;;  %v4232_v48 = vld [vmem:[#allocation58_spill] sm:$0xff] }
 0x1c9   :  { %4208 = vst [vmem:[#allocation5_spill] sm:$0xff] %v3203_v7  ;;  %969 = vmatpush.msrb.mxu2 %v3205_v56  ;;  %989 = vmatpush.msrb.mxu3 %v3208_v4 }
 0x1ca   :  { %930 = vmatpush.msrb.mxu0 %v3211_v0  ;;  %950 = vmatpush.msra.mxu1 %v2834_v15  ;;  %v1605_v60 = vpack.c.b16 %v1604_v5, %v1604_v5  ;;  %v3231_v15 = vld [vmem:[#allocation2 + $0x1b8] sm:$0xff] }
 0x1cb   :  { %970 = vmatpush.msrb.mxu2 %v3215_v13  ;;  %990 = vmatpush.msrb.mxu3 %v3218_v12 }
 0x1cc   :  { %931 = vmatpush.msrb.mxu0 %v3221_v16  ;;  %951 = vmatpush.msra.mxu1 %v2841_v17  ;;  %v3226_v57 = vsel %vm1615_vm10, %v1595_v50, %v1605_v60  ;;  %v3241_v17 = vld [vmem:[#allocation2 + $0x198] sm:$0xff] }
 0x1cd   :  { %4209 = vst [vmem:[#allocation10_spill] sm:$0xff] %v3226_v57  ;;  %971 = vmatpush.msrb.mxu2 %v3228_v28  ;;  %991 = vmatpush.msrb.mxu3 %v3231_v15  ;;  %v3361_v50 = vld [vmem:[#allocation2 + $0x18] sm:$0xff] }
 0x1ce   :  { %932 = vmatpush.msrb.mxu0 %v3234_v29  ;;  %952 = vmatpush.msra.mxu1 %v2847_v18  ;;  %v3254_v18 = vld [vmem:[#allocation2 + $0x140] sm:$0xff]  ;;  %4229 = vst [vmem:[#allocation25_spill] sm:$0xff] %v3361_v50 }
 0x1cf   :  { %972 = vmatpush.msrb.mxu2 %v3238_v30  ;;  %992 = vmatpush.msrb.mxu3 %v3241_v17 }
 0x1d0   :  { %933 = vmatpush.msrb.mxu0 %v3244_v32  ;;  %953 = vmatpush.msra.mxu1 %v2852_v19  ;;  %v3264_v19 = vld [vmem:[#allocation2 + $0x120] sm:$0xff] }
 0x1d1   :  { %973 = vmatpush.msrb.mxu2 %v3248_v33  ;;  %993 = vmatpush.msrb.mxu3 %v3251_v34 }
 0x1d2   :  { %934 = vmatpush.msrb.mxu0 %v3254_v18  ;;  %954 = vmatpush.msra.mxu1 %v2858_v20  ;;  %v3274_v20 = vld [vmem:[#allocation2 + $0x100] sm:$0xff] }
 0x1d3   :  { %974 = vmatpush.msrb.mxu2 %v3258_v36  ;;  %994 = vmatpush.msrb.mxu3 %v3261_v37 }
 0x1d4   :  { %935 = vmatpush.msrb.mxu0 %v3264_v19  ;;  %955 = vmatpush.msra.mxu1 %v2864_v21  ;;  %v3284_v21 = vld [vmem:[#allocation2 + $0xe0] sm:$0xff] }
 0x1d5   :  { %975 = vmatpush.msrb.mxu2 %v3268_v38  ;;  %995 = vmatpush.msrb.mxu3 %v3271_v40 }
 0x1d6   :  { %936 = vmatpush.msrb.mxu0 %v3274_v20  ;;  %956 = vmatpush.msra.mxu1 %v2870_v22  ;;  %v3294_v22 = vld [vmem:[#allocation2 + $0xc0] sm:$0xff] }
 0x1d7   :  { %976 = vmatpush.msrb.mxu2 %v3278_v41  ;;  %996 = vmatpush.msrb.mxu3 %v3281_v42 }
 0x1d8   :  { %937 = vmatpush.msrb.mxu0 %v3284_v21  ;;  %957 = vmatpush.msra.mxu1 %v2880_v23  ;;  %v3304_v23 = vld [vmem:[#allocation2 + $0xa0] sm:$0xff] }
 0x1d9   :  { %977 = vmatpush.msrb.mxu2 %v3288_v44  ;;  %997 = vmatpush.msrb.mxu3 %v3291_v45  ;;  %4212 = vst [vmem:[#allocation7_spill] sm:$0xff] %v3304_v23 }
 0x1da   :  { %938 = vmatpush.msrb.mxu0 %v3294_v22  ;;  %958 = vmatpush.msra.mxu1 %v2885_v24  ;;  %v3314_v24 = vld [vmem:[#allocation2 + $0x80] sm:$0xff] }
 0x1db   :  { %978 = vmatpush.msrb.mxu2 %v3298_v46  ;;  %998 = vmatpush.msrb.mxu3 %v3301_v51  ;;  %4215 = vst [vmem:[#allocation28_spill] sm:$0xff] %v3314_v24 }
 0x1dc   :  { %939 = vmatpush.msrb.mxu0 %v3304_v23  ;;  %959 = vmatpush.msra.mxu1 %v4180_v31  ;;  %v3324_v31 = vld [vmem:[#allocation2 + $0x60] sm:$0xff] }
 0x1dd   :  { %979 = vmatpush.msrb.mxu2 %v3308_v52  ;;  %999 = vmatpush.msrb.mxu3 %v3311_v53  ;;  %4218 = vst [vmem:[#allocation17_spill] sm:$0xff] %v3324_v31 }
 0x1de   :  { %940 = vmatpush.msrb.mxu0 %v3314_v24  ;;  %960 = vmatpush.msra.mxu1 %v4184_v35  ;;  %v3334_v35 = vld [vmem:[#allocation2 + $0x40] sm:$0xff] }
 0x1df   :  { %980 = vmatpush.msrb.mxu2 %v3318_v55  ;;  %1000 = vmatpush.msrb.mxu3 %v3321_v59  ;;  %4221 = vst [vmem:[#allocation19_spill] sm:$0xff] %v3334_v35 }
 0x1e0   :  { %941 = vmatpush.msrb.mxu0 %v3324_v31  ;;  %961 = vmatpush.msra.mxu1 %v4188_v39  ;;  %v3344_v39 = vld [vmem:[#allocation2 + $0x20] sm:$0xff] }
 0x1e1   :  { %981 = vmatpush.msrb.mxu2 %v3328_v63  ;;  %1001 = vmatpush.msrb.mxu3 %v3331_v2  ;;  %4224 = vst [vmem:[#allocation15_spill] sm:$0xff] %v3344_v39 }
 0x1e2   :  { %942 = vmatpush.msrb.mxu0 %v3334_v35  ;;  %962 = vmatpush.msra.mxu1 %v4192_v43  ;;  %v3354_v43 = vld [vmem:[#allocation2] sm:$0xff] }
 0x1e3   :  { %982 = vmatpush.msrb.mxu2 %v3338_v25  ;;  %1002 = vmatpush.msrb.mxu3 %v3341_v26  ;;  %4227 = vst [vmem:[#allocation31_spill] sm:$0xff] %v3354_v43 }
 0x1e4   :  { %943 = vmatpush.msrb.mxu0 %v3344_v39  ;;  %963 = vmatpush.msra.mxu1 %v4196_v49 }
 0x1e5   :  { %983 = vmatpush.msrb.mxu2 %v3348_v58  ;;  %1003 = vmatpush.msrb.mxu3 %v3351_v1 }
 0x1e6   :  { %944 = vmatpush.msrb.mxu0 %v3354_v43  ;;  %964 = vmatpush.msra.mxu1 %v4200_v54  ;;  %v234_v54 = vadd.f32 %v4232_v48, %v4205_v3 }
 0x1e7   :  { %984 = vmatpush.msrb.mxu2 %v3358_v10  ;;  %1004 = vmatpush.msrb.mxu3 %v3361_v50 }
 0x243   :  { %v652_v49 = vpop.f32.mrf.mxu0  ;;  %v672_v11 = vpop.f32.mrf.mxu1 }
 0x244   :  { %v715_v8 = vadd.f32 %v652_v49, %v4230_v6  ;;  %v716_v27 = vadd.f32 %v672_v11, %v4231_v61  ;;  %v4233_v61 = vld [vmem:[#allocation36_spill] sm:$0xff] }
 0x246   :  { %v2165_v62 = vmul.f32 -1.442695, %v715_v8  ;;  %v2166_v14 = vmul.f32 -1.442695, %v716_v27 }
 0x248   :  { %2323 = vpow2.f32 %v2165_v62 }
 0x249   :  { %2325 = vpow2.f32 %v2166_v14 }
 0x24a   :  { %v692_v5 = vpop.f32.mrf.mxu2  ;;  %v712_v49 = vpop.f32.mrf.mxu3 }
 0x24b   :  { %v717_v60 = vadd.f32 %v692_v5, %v234_v54  ;;  %v718_v27 = vadd.f32 %v712_v49, %v4233_v61 }
 0x24d   :  { %v2167_v57 = vmul.f32 -1.442695, %v717_v60 }
 0x24e   :  { %v2324_v7 = vpop.eup %2323 }
 0x24f   :  { %v2326_v10 = vpop.eup %2325  ;;  %v728_v43 = vadd.f32 1.0, %v2324_v7  ;;  %2327 = vpow2.f32 %v2167_v57 }
 0x250   :  { %v729_v50 = vadd.f32 1.0, %v2326_v10 }
 0x251   :  { %2329 = vrcp.f32 %v728_v43  ;;  %v742_v5 = vand.u32 2147483648, %v728_v43  ;;  %v740_v57 = vand.u32 2147483647, %v728_v43  ;;  %vm736_vm13 = vweird.f32 %v728_v43 }
 0x252   :  { %2331 = vrcp.f32 %v729_v50  ;;  %v757_v60 = vand.u32 2147483648, %v729_v50  ;;  %v755_v3 = vand.u32 2147483647, %v729_v50  ;;  %vm751_vm14 = vweird.f32 %v729_v50 }
 0x253   :  { %v743_v61 = vor.u32 1.1754944e-38, %v742_v5  ;;  %vm741_vm1 = vcmp.eq.f32.partialorder %v740_v57, 8.507059e+37 }
 0x254   :  { %vm756_vm2 = vcmp.eq.f32.partialorder %v755_v3, 8.507059e+37 }
 0x255   :  { %v2328_v6 = vpop.eup %2327 }
 0x256   :  { %v730_v11 = vadd.f32 1.0, %v2328_v6 }
 0x257   :  { %v2330_v8 = vpop.eup %2329 }
 0x258   :  { %v2332_v62 = vpop.eup %2331  ;;  %v732_v1 = vmul.f32 %v2330_v8, %v728_v43  ;;  %2333 = vrcp.f32 %v730_v11  ;;  %vm737_vm11 = vweird.f32 %v2330_v8  ;;  %v772_v5 = vand.u32 2147483648, %v730_v11 }
 0x259   :  { %v747_v14 = vmul.f32 %v2332_v62, %v729_v50  ;;  %2335 = vtanh.f32 %v718_v27  ;;  %vm752_vm12 = vweird.f32 %v2332_v62  ;;  %vm738_vm15 = vmor %vm736_vm13, %vm737_vm11  ;;  %vm766_vm4 = vweird.f32 %v730_v11 }
 0x25a   :  { %v733_v48 = vsub.f32 1.0, %v732_v1  ;;  %vm753_vm0 = vmor %vm751_vm14, %vm752_vm12  ;;  %v758_v1 = vor.u32 1.1754944e-38, %v757_v60  ;;  %v773_v57 = vor.u32 1.1754944e-38, %v772_v5  ;;  %v4244_v5 = vld [vmem:[#allocation15_spill] sm:$0xff] }
 0x25b   :  { %v748_v54 = vsub.f32 1.0, %v747_v14 }
 0x25c   :  { %v734_v7 = vmul.f32 %v2330_v8, %v733_v48 }
 0x25d   :  { %v749_v10 = vmul.f32 %v2332_v62, %v748_v54 }
 0x25e   :  { %v2334_v58 = vpop.eup %2333  ;;  %v735_v6 = vadd.f32 %v2330_v8, %v734_v7 }
 0x25f   :  { %v762_v49 = vmul.f32 %v2334_v58, %v730_v11  ;;  %v750_v39 = vadd.f32 %v2332_v62, %v749_v10  ;;  %v2336_v27 = vpop.eup %2335  ;;  %vm767_vm3 = vweird.f32 %v2334_v58  ;;  %v3422_v10 = vld [vmem:[#allocation2 + $0x108] sm:$0xff] }
 0x260   :  { %v739_v14 = vsel %vm738_vm15, %v2330_v8, %v735_v6  ;;  %v770_v8 = vand.u32 2147483647, %v730_v11  ;;  %vm768_vm5 = vmor %vm766_vm4, %vm767_vm3  ;;  %v3410_v11 = vld [vmem:[#allocation2 + $0x148] sm:$0xff] }
 0x261   :  { %v763_v26 = vsub.f32 1.0, %v762_v49  ;;  %v744_v48 = vsel %vm741_vm1, %v743_v61, %v739_v14  ;;  %v754_v25 = vsel %vm753_vm0, %v2332_v62, %v750_v39  ;;  %v3416_v62 = vld [vmem:[#allocation2 + $0x128] sm:$0xff] }
 0x262   :  { %v759_v54 = vsel %vm756_vm2, %v758_v1, %v754_v25  ;;  %v778_v35 = vmul.f32 %v2336_v27, %v744_v48  ;;  %vm771_vm6 = vcmp.eq.f32.partialorder %v770_v8, 8.507059e+37  ;;  %v3428_v6 = vld [vmem:[#allocation2 + $0xe8] sm:$0xff]  ;;  %v4239_v27 = vld [vmem:[#allocation12_spill] sm:$0xff]  ;;  %v4240_v48 = vld [vmem:[#allocation19_spill] sm:$0xff] }
 0x263   :  { %v764_v2 = vmul.f32 %v2334_v58, %v763_v26  ;;  %v777_v7 = vmul.f32 %v759_v54, %v3193_v47  ;;  %v3380_v47 = vld [vmem:[#allocation2 + $0x1e8] sm:$0xff] }
 0x264   :  { %v3398_v26 = vld [vmem:[#allocation2 + $0x188] sm:$0xff] }
 0x265   :  { %v3370_v43 = vadd.f32 %v778_v35, %v777_v7  ;;  %v765_v50 = vadd.f32 %v2334_v58, %v764_v2  ;;  %v3386_v2 = vld [vmem:[#allocation2 + $0x1c8] sm:$0xff]  ;;  %v4242_v7 = vld [vmem:[#allocation20_spill] sm:$0xff] }
 0x266   :  { %v3392_v35 = vld [vmem:[#allocation2 + $0x1a8] sm:$0xff] }
 0x267   :  { %2337 = vtanh.f32 %v3370_v43  ;;  %v769_v60 = vsel %vm768_vm5, %v2334_v58, %v765_v50  ;;  %v3404_v58 = vld [vmem:[#allocation2 + $0x168] sm:$0xff] }
 0x268   :  { %v774_v3 = vsel %vm771_vm6, %v773_v57, %v769_v60  ;;  %v3434_v49 = vld [vmem:[#allocation2 + $0xc8] sm:$0xff]  ;;  %v4246_v60 = vld [vmem:[#allocation23_spill] sm:$0xff] }
 0x269   :  { %4235 = vst [vmem:[#allocation32_spill] sm:$0xff] %v3434_v49  ;;  %v3440_v61 = vld [vmem:[#allocation2 + $0xa8] sm:$0xff] }
 0x26a   :  { %4236 = vst [vmem:[#allocation21_spill] sm:$0xff] %v3440_v61  ;;  %v3446_v1 = vld [vmem:[#allocation2 + $0x88] sm:$0xff] }
 0x26b   :  { %4237 = vst [vmem:[#allocation26_spill] sm:$0xff] %v3446_v1  ;;  %v3452_v14 = vld [vmem:[#allocation2 + $0x68] sm:$0xff] }
 0x26c   :  { %4238 = vst [vmem:[#allocation6_spill] sm:$0xff] %v3452_v14  ;;  %v3458_v54 = vld [vmem:[#allocation2 + $0x48] sm:$0xff] }
 0x26d   :  { %v2338_v39 = vpop.eup %2337  ;;  %4241 = vst [vmem:[#allocation8_spill] sm:$0xff] %v3458_v54  ;;  %v4243_v50 = vld [vmem:[#allocation30_spill] sm:$0xff] }
 0x26e   :  { %v3373_v25 = vmul.f32 %v2338_v39, %v774_v3  ;;  %v3464_v8 = vld [vmem:[#allocation2 + $0x28] sm:$0xff]  ;;  %v4248_v39 = vld [vmem:[#allocation31_spill] sm:$0xff] }
 0x26f   :  { %4245 = vst [vmem:[#allocation55_spill] sm:$0xff] %v3464_v8  ;;  %v4247_v57 = vld [vmem:[#allocation22_spill] sm:$0xff] }
 0x270   :  { %4234 = vst [vmem:[#allocation24_spill] sm:$0xff] %v3373_v25  ;;  %798 = vmatmul.f32.vlgmr.msra.gmra.mxu0 %v3373_v25  ;;  %818 = vmatmul.f32.vlgmr.msrb.gmra.mxu1 %v3373_v25  ;;  %v3470_v3 = vld [vmem:[#allocation2 + $0x8] sm:$0xff] }
 0x271   :  { %838 = vmatmul.f32.vlgmr.msra.gmra.mxu2 %v3373_v25  ;;  %858 = vmatmul.f32.vlgmr.msra.gmra.mxu3 %v3373_v25  ;;  %4249 = vst [vmem:[#allocation33_spill] sm:$0xff] %v3470_v3  ;;  %v4250_v25 = vld [vmem:[#allocation18_spill] sm:$0xff] }
 0x272   :  { %1076 = vmatpush.msra.mxu0 %v3198_v9  ;;  %1096 = vmatpush.msrb.mxu1 %v3380_v47 }
 0x273   :  { %1116 = vmatpush.msra.mxu2 %v3205_v56  ;;  %1136 = vmatpush.msra.mxu3 %v3208_v4 }
 0x274   :  { %1077 = vmatpush.msra.mxu0 %v3211_v0  ;;  %1097 = vmatpush.msrb.mxu1 %v3386_v2 }
 0x275   :  { %1117 = vmatpush.msra.mxu2 %v3215_v13  ;;  %1137 = vmatpush.msra.mxu3 %v3218_v12 }
 0x276   :  { %1078 = vmatpush.msra.mxu0 %v3221_v16  ;;  %1098 = vmatpush.msrb.mxu1 %v3392_v35 }
 0x277   :  { %1118 = vmatpush.msra.mxu2 %v3228_v28  ;;  %1138 = vmatpush.msra.mxu3 %v3231_v15 }
 0x278   :  { %1079 = vmatpush.msra.mxu0 %v3234_v29  ;;  %1099 = vmatpush.msrb.mxu1 %v3398_v26 }
 0x279   :  { %1119 = vmatpush.msra.mxu2 %v3238_v30  ;;  %1139 = vmatpush.msra.mxu3 %v3241_v17 }
 0x27a   :  { %1080 = vmatpush.msra.mxu0 %v3244_v32  ;;  %1100 = vmatpush.msrb.mxu1 %v3404_v58 }
 0x27b   :  { %1120 = vmatpush.msra.mxu2 %v3248_v33  ;;  %1140 = vmatpush.msra.mxu3 %v3251_v34 }
 0x27c   :  { %1081 = vmatpush.msra.mxu0 %v3254_v18  ;;  %1101 = vmatpush.msrb.mxu1 %v3410_v11 }
 0x27d   :  { %1121 = vmatpush.msra.mxu2 %v3258_v36  ;;  %1141 = vmatpush.msra.mxu3 %v3261_v37 }
 0x27e   :  { %1082 = vmatpush.msra.mxu0 %v3264_v19  ;;  %1102 = vmatpush.msrb.mxu1 %v3416_v62 }
 0x27f   :  { %1122 = vmatpush.msra.mxu2 %v3268_v38  ;;  %1142 = vmatpush.msra.mxu3 %v3271_v40 }
 0x280   :  { %1083 = vmatpush.msra.mxu0 %v3274_v20  ;;  %1103 = vmatpush.msrb.mxu1 %v3422_v10 }
 0x281   :  { %1123 = vmatpush.msra.mxu2 %v3278_v41  ;;  %1143 = vmatpush.msra.mxu3 %v3281_v42 }
 0x282   :  { %1084 = vmatpush.msra.mxu0 %v3284_v21  ;;  %1104 = vmatpush.msrb.mxu1 %v3428_v6 }
 0x283   :  { %1124 = vmatpush.msra.mxu2 %v3288_v44  ;;  %1144 = vmatpush.msra.mxu3 %v3291_v45 }
 0x284   :  { %1085 = vmatpush.msra.mxu0 %v3294_v22  ;;  %1105 = vmatpush.msrb.mxu1 %v3434_v49 }
 0x285   :  { %1125 = vmatpush.msra.mxu2 %v3298_v46  ;;  %1145 = vmatpush.msra.mxu3 %v3301_v51 }
 0x286   :  { %1086 = vmatpush.msra.mxu0 %v3304_v23  ;;  %1106 = vmatpush.msrb.mxu1 %v3440_v61 }
 0x287   :  { %1126 = vmatpush.msra.mxu2 %v3308_v52  ;;  %1146 = vmatpush.msra.mxu3 %v3311_v53 }
 0x288   :  { %1087 = vmatpush.msra.mxu0 %v3314_v24  ;;  %1107 = vmatpush.msrb.mxu1 %v3446_v1 }
 0x289   :  { %1127 = vmatpush.msra.mxu2 %v3318_v55  ;;  %1147 = vmatpush.msra.mxu3 %v3321_v59 }
 0x28a   :  { %1088 = vmatpush.msra.mxu0 %v3324_v31  ;;  %1108 = vmatpush.msrb.mxu1 %v3452_v14  ;;  %v4255_v14 = vld [vmem:[#allocation59_spill] sm:$0xff] }
 0x28b   :  { %1128 = vmatpush.msra.mxu2 %v3328_v63  ;;  %1148 = vmatpush.msra.mxu3 %v4239_v27  ;;  %v4253_v27 = vld [vmem:[#allocation38_spill] sm:$0xff] }
 0x28c   :  { %1089 = vmatpush.msra.mxu0 %v4240_v48  ;;  %1109 = vmatpush.msrb.mxu1 %v3458_v54  ;;  %v4252_v54 = vld [vmem:[#allocation37_spill] sm:$0xff] }
 0x28d   :  { %1129 = vmatpush.msra.mxu2 %v4242_v7  ;;  %1149 = vmatpush.msra.mxu3 %v4243_v50  ;;  %v4251_v7 = vld [vmem:[#allocation25_spill] sm:$0xff] }
 0x28e   :  { %1090 = vmatpush.msra.mxu0 %v4244_v5  ;;  %1110 = vmatpush.msrb.mxu1 %v3464_v8 }
 0x28f   :  { %1130 = vmatpush.msra.mxu2 %v4246_v60  ;;  %1150 = vmatpush.msra.mxu3 %v4247_v57  ;;  %v4254_v57 = vld [vmem:[#allocation57_spill] sm:$0xff] }
 0x290   :  { %1091 = vmatpush.msra.mxu0 %v4248_v39  ;;  %1111 = vmatpush.msrb.mxu1 %v3470_v3  ;;  %v236_v39 = vadd.f32 %v4255_v14, %v4254_v57 }
 0x291   :  { %1131 = vmatpush.msra.mxu2 %v4250_v25  ;;  %1151 = vmatpush.msra.mxu3 %v4251_v7 }
 0x2ed   :  { %v799_v50 = vpop.f32.mrf.mxu0  ;;  %v819_v5 = vpop.f32.mrf.mxu1 }
 0x2ee   :  { %v862_v48 = vadd.f32 %v799_v50, %v4252_v54  ;;  %v863_v8 = vadd.f32 %v819_v5, %v4253_v27  ;;  %v4256_v5 = vld [vmem:[#allocation39_spill] sm:$0xff] }
 0x2f0   :  { %v2168_v63 = vmul.f32 -1.442695, %v862_v48  ;;  %v2169_v60 = vmul.f32 -1.442695, %v863_v8 }
 0x2f2   :  { %2339 = vpow2.f32 %v2168_v63 }
 0x2f3   :  { %2341 = vpow2.f32 %v2169_v60 }
 0x2f4   :  { %v839_v31 = vpop.f32.mrf.mxu2  ;;  %v859_v54 = vpop.f32.mrf.mxu3 }
 0x2f5   :  { %v864_v59 = vadd.f32 %v839_v31, %v236_v39  ;;  %v865_v63 = vadd.f32 %v859_v54, %v4256_v5 }
 0x2f7   :  { %v2170_v3 = vmul.f32 -1.442695, %v864_v59 }
 0x2f8   :  { %v2340_v55 = vpop.eup %2339 }
 0x2f9   :  { %v2342_v25 = vpop.eup %2341  ;;  %v875_v1 = vadd.f32 1.0, %v2340_v55  ;;  %2343 = vpow2.f32 %v2170_v3 }
 0x2fa   :  { %v876_v7 = vadd.f32 1.0, %v2342_v25 }
 0x2fb   :  { %2345 = vrcp.f32 %v875_v1  ;;  %v889_v59 = vand.u32 2147483648, %v875_v1  ;;  %v887_v25 = vand.u32 2147483647, %v875_v1  ;;  %vm883_vm9 = vweird.f32 %v875_v1 }
 0x2fc   :  { %2347 = vrcp.f32 %v876_v7  ;;  %v904_v39 = vand.u32 2147483648, %v876_v7  ;;  %v902_v57 = vand.u32 2147483647, %v876_v7  ;;  %vm898_vm11 = vweird.f32 %v876_v7 }
 0x2fd   :  { %v890_v5 = vor.u32 1.1754944e-38, %v889_v59  ;;  %vm888_vm14 = vcmp.eq.f32.partialorder %v887_v25, 8.507059e+37 }
 0x2fe   :  { %vm903_vm15 = vcmp.eq.f32.partialorder %v902_v57, 8.507059e+37 }
 0x2ff   :  { %v2344_v50 = vpop.eup %2343 }
 0x300   :  { %v877_v27 = vadd.f32 1.0, %v2344_v50 }
 0x301   :  { %v2346_v48 = vpop.eup %2345 }
 0x302   :  { %v2348_v8 = vpop.eup %2347  ;;  %v879_v24 = vmul.f32 %v2346_v48, %v875_v1  ;;  %2349 = vrcp.f32 %v877_v27  ;;  %vm884_vm7 = vweird.f32 %v2346_v48  ;;  %v919_v59 = vand.u32 2147483648, %v877_v27 }
 0x303   :  { %v894_v14 = vmul.f32 %v2348_v8, %v876_v7  ;;  %2351 = vtanh.f32 %v865_v63  ;;  %vm899_vm8 = vweird.f32 %v2348_v8  ;;  %vm885_vm12 = vmor %vm883_vm9, %vm884_vm7  ;;  %vm913_vm1 = vweird.f32 %v877_v27 }
 0x304   :  { %v880_v60 = vsub.f32 1.0, %v879_v24  ;;  %vm900_vm13 = vmor %vm898_vm11, %vm899_vm8  ;;  %v905_v24 = vor.u32 1.1754944e-38, %v904_v39  ;;  %v920_v25 = vor.u32 1.1754944e-38, %v919_v59  ;;  %v4276_v59 = vld [vmem:[#allocation15_spill] sm:$0xff] }
 0x305   :  { %v895_v31 = vsub.f32 1.0, %v894_v14 }
 0x306   :  { %v881_v55 = vmul.f32 %v2346_v48, %v880_v60 }
 0x307   :  { %v896_v3 = vmul.f32 %v2348_v8, %v895_v31 }
 0x308   :  { %v2350_v53 = vpop.eup %2349  ;;  %v882_v50 = vadd.f32 %v2346_v48, %v881_v55 }
 0x309   :  { %v909_v54 = vmul.f32 %v2350_v53, %v877_v27  ;;  %v897_v52 = vadd.f32 %v2348_v8, %v896_v3  ;;  %v2352_v63 = vpop.eup %2351  ;;  %vm914_vm0 = vweird.f32 %v2350_v53  ;;  %v4265_v3 = vld [vmem:[#allocation26_spill] sm:$0xff] }
 0x30a   :  { %v886_v14 = vsel %vm885_vm12, %v2346_v48, %v882_v50  ;;  %v917_v48 = vand.u32 2147483647, %v877_v27  ;;  %vm915_vm2 = vmor %vm913_vm1, %vm914_vm0  ;;  %v4263_v27 = vld [vmem:[#allocation14_spill] sm:$0xff]  ;;  %v4266_v50 = vld [vmem:[#allocation9_spill] sm:$0xff] }
 0x30b   :  { %v910_v61 = vsub.f32 1.0, %v909_v54  ;;  %v891_v60 = vsel %vm888_vm14, %v890_v5, %v886_v14  ;;  %v901_v23 = vsel %vm900_vm13, %v2348_v8, %v897_v52  ;;  %v4264_v8 = vld [vmem:[#allocation28_spill] sm:$0xff]  ;;  %v4268_v5 = vld [vmem:[#allocation17_spill] sm:$0xff] }
 0x30c   :  { %v906_v31 = vsel %vm903_vm15, %v905_v24, %v901_v23  ;;  %v925_v51 = vmul.f32 %v2352_v63, %v891_v60  ;;  %vm918_vm3 = vcmp.eq.f32.partialorder %v917_v48, 8.507059e+37  ;;  %v4267_v54 = vld [vmem:[#allocation16_spill] sm:$0xff]  ;;  %v4269_v24 = vld [vmem:[#allocation6_spill] sm:$0xff]  ;;  %v4270_v14 = vld [vmem:[#allocation29_spill] sm:$0xff] }
 0x30d   :  { %v911_v46 = vmul.f32 %v2350_v53, %v910_v61  ;;  %v924_v55 = vmul.f32 %v906_v31, %v3370_v43  ;;  %v4261_v43 = vld [vmem:[#allocation21_spill] sm:$0xff]  ;;  %v4271_v63 = vld [vmem:[#allocation12_spill] sm:$0xff]  ;;  %v4272_v60 = vld [vmem:[#allocation19_spill] sm:$0xff] }
 0x30e   :  { %v4262_v61 = vld [vmem:[#allocation13_spill] sm:$0xff]  ;;  %v4273_v31 = vld [vmem:[#allocation8_spill] sm:$0xff]  ;;  %v4277_v48 = vld [vmem:[#allocation55_spill] sm:$0xff] }
 0x30f   :  { %v3481_v1 = vadd.f32 %v925_v51, %v924_v55  ;;  %v912_v7 = vadd.f32 %v2350_v53, %v911_v46  ;;  %v4258_v46 = vld [vmem:[#allocation11_spill] sm:$0xff]  ;;  %v4274_v55 = vld [vmem:[#allocation20_spill] sm:$0xff] }
 0x310   :  { %v4259_v51 = vld [vmem:[#allocation27_spill] sm:$0xff] }
 0x311   :  { %2353 = vtanh.f32 %v3481_v1  ;;  %v916_v39 = vsel %vm915_vm2, %v2350_v53, %v912_v7  ;;  %v4260_v53 = vld [vmem:[#allocation7_spill] sm:$0xff]  ;;  %v4275_v7 = vld [vmem:[#allocation30_spill] sm:$0xff] }
 0x312   :  { %v921_v57 = vsel %vm918_vm3, %v920_v25, %v916_v39  ;;  %v4278_v39 = vld [vmem:[#allocation23_spill] sm:$0xff]  ;;  %v4279_v25 = vld [vmem:[#allocation22_spill] sm:$0xff] }
 0x317   :  { %v2354_v52 = vpop.eup %2353 }
 0x318   :  { %v3484_v23 = vmul.f32 %v2354_v52, %v921_v57  ;;  %v4280_v52 = vld [vmem:[#allocation31_spill] sm:$0xff]  ;;  %v4281_v57 = vld [vmem:[#allocation33_spill] sm:$0xff] }
 0x31a   :  { %4257 = vst [vmem:[#allocation34_spill] sm:$0xff] %v3484_v23  ;;  %945 = vmatmul.f32.vlgmr.msrb.gmra.mxu0 %v3484_v23  ;;  %965 = vmatmul.f32.vlgmr.msra.gmra.mxu1 %v3484_v23 }
 0x31b   :  { %985 = vmatmul.f32.vlgmr.msrb.gmra.mxu2 %v3484_v23  ;;  %1005 = vmatmul.f32.vlgmr.msrb.gmra.mxu3 %v3484_v23  ;;  %v4282_v23 = vld [vmem:[#allocation18_spill] sm:$0xff] }
 0x31c   :  { %1223 = vmatpush.msrb.mxu0 %v3198_v9  ;;  %1243 = vmatpush.msra.mxu1 %v3380_v47 }
 0x31d   :  { %1263 = vmatpush.msrb.mxu2 %v3205_v56  ;;  %1283 = vmatpush.msrb.mxu3 %v3208_v4 }
 0x31e   :  { %1224 = vmatpush.msrb.mxu0 %v3211_v0  ;;  %1244 = vmatpush.msra.mxu1 %v3386_v2 }
 0x31f   :  { %1264 = vmatpush.msrb.mxu2 %v3215_v13  ;;  %1284 = vmatpush.msrb.mxu3 %v3218_v12 }
 0x320   :  { %1225 = vmatpush.msrb.mxu0 %v3221_v16  ;;  %1245 = vmatpush.msra.mxu1 %v3392_v35 }
 0x321   :  { %1265 = vmatpush.msrb.mxu2 %v3228_v28  ;;  %1285 = vmatpush.msrb.mxu3 %v3231_v15 }
 0x322   :  { %1226 = vmatpush.msrb.mxu0 %v3234_v29  ;;  %1246 = vmatpush.msra.mxu1 %v3398_v26 }
 0x323   :  { %1266 = vmatpush.msrb.mxu2 %v3238_v30  ;;  %1286 = vmatpush.msrb.mxu3 %v3241_v17 }
 0x324   :  { %1227 = vmatpush.msrb.mxu0 %v3244_v32  ;;  %1247 = vmatpush.msra.mxu1 %v3404_v58 }
 0x325   :  { %1267 = vmatpush.msrb.mxu2 %v3248_v33  ;;  %1287 = vmatpush.msrb.mxu3 %v3251_v34 }
 0x326   :  { %1228 = vmatpush.msrb.mxu0 %v3254_v18  ;;  %1248 = vmatpush.msra.mxu1 %v3410_v11 }
 0x327   :  { %1268 = vmatpush.msrb.mxu2 %v3258_v36  ;;  %1288 = vmatpush.msrb.mxu3 %v3261_v37 }
 0x328   :  { %1229 = vmatpush.msrb.mxu0 %v3264_v19  ;;  %1249 = vmatpush.msra.mxu1 %v3416_v62 }
 0x329   :  { %1269 = vmatpush.msrb.mxu2 %v3268_v38  ;;  %1289 = vmatpush.msrb.mxu3 %v3271_v40 }
 0x32a   :  { %1230 = vmatpush.msrb.mxu0 %v3274_v20  ;;  %1250 = vmatpush.msra.mxu1 %v3422_v10 }
 0x32b   :  { %1270 = vmatpush.msrb.mxu2 %v3278_v41  ;;  %1290 = vmatpush.msrb.mxu3 %v3281_v42 }
 0x32c   :  { %1231 = vmatpush.msrb.mxu0 %v3284_v21  ;;  %1251 = vmatpush.msra.mxu1 %v3428_v6 }
 0x32d   :  { %1271 = vmatpush.msrb.mxu2 %v3288_v44  ;;  %1291 = vmatpush.msrb.mxu3 %v3291_v45 }
 0x32e   :  { %1232 = vmatpush.msrb.mxu0 %v3294_v22  ;;  %1252 = vmatpush.msra.mxu1 %v3434_v49 }
 0x32f   :  { %1272 = vmatpush.msrb.mxu2 %v4258_v46  ;;  %1292 = vmatpush.msrb.mxu3 %v4259_v51 }
 0x330   :  { %1233 = vmatpush.msrb.mxu0 %v4260_v53  ;;  %1253 = vmatpush.msra.mxu1 %v4261_v43 }
 0x331   :  { %1273 = vmatpush.msrb.mxu2 %v4262_v61  ;;  %1293 = vmatpush.msrb.mxu3 %v4263_v27 }
 0x332   :  { %1234 = vmatpush.msrb.mxu0 %v4264_v8  ;;  %1254 = vmatpush.msra.mxu1 %v4265_v3 }
 0x333   :  { %1274 = vmatpush.msrb.mxu2 %v4266_v50  ;;  %1294 = vmatpush.msrb.mxu3 %v4267_v54 }
 0x334   :  { %1235 = vmatpush.msrb.mxu0 %v4268_v5  ;;  %1255 = vmatpush.msra.mxu1 %v4269_v24  ;;  %v4285_v24 = vld [vmem:[#allocation41_spill] sm:$0xff] }
 0x335   :  { %1275 = vmatpush.msrb.mxu2 %v4270_v14  ;;  %1295 = vmatpush.msrb.mxu3 %v4271_v63  ;;  %v4284_v14 = vld [vmem:[#allocation40_spill] sm:$0xff]  ;;  %v4287_v63 = vld [vmem:[#allocation45_spill] sm:$0xff] }
 0x336   :  { %1236 = vmatpush.msrb.mxu0 %v4272_v60  ;;  %1256 = vmatpush.msra.mxu1 %v4273_v31  ;;  %v4283_v60 = vld [vmem:[#allocation25_spill] sm:$0xff] }
 0x337   :  { %1276 = vmatpush.msrb.mxu2 %v4274_v55  ;;  %1296 = vmatpush.msrb.mxu3 %v4275_v7 }
 0x338   :  { %1237 = vmatpush.msrb.mxu0 %v4276_v59  ;;  %1257 = vmatpush.msra.mxu1 %v4277_v48 }
 0x339   :  { %1277 = vmatpush.msrb.mxu2 %v4278_v39  ;;  %1297 = vmatpush.msrb.mxu3 %v4279_v25  ;;  %v4286_v39 = vld [vmem:[#allocation57_spill] sm:$0xff] }
 0x33a   :  { %1238 = vmatpush.msrb.mxu0 %v4280_v52  ;;  %1258 = vmatpush.msra.mxu1 %v4281_v57  ;;  %v239_v25 = vadd.f32 %v4287_v63, %v4286_v39 }
 0x33b   :  { %1278 = vmatpush.msrb.mxu2 %v4282_v23  ;;  %1298 = vmatpush.msrb.mxu3 %v4283_v60 }
 0x397   :  { %v946_v31 = vpop.f32.mrf.mxu0  ;;  %v966_v55 = vpop.f32.mrf.mxu1 }
 0x398   :  { %v1009_v7 = vadd.f32 %v946_v31, %v4284_v14  ;;  %v1010_v59 = vadd.f32 %v966_v55, %v4285_v24 }
 0x39a   :  { %v2171_v5 = vmul.f32 -1.442695, %v1009_v7  ;;  %v2172_v48 = vmul.f32 -1.442695, %v1010_v59  ;;  %v4288_v7 = vld [vmem:[#allocation42_spill] sm:$0xff] }
 0x39c   :  { %2355 = vpow2.f32 %v2171_v5 }
 0x39d   :  { %2357 = vpow2.f32 %v2172_v48 }
 0x39e   :  { %v986_v52 = vpop.f32.mrf.mxu2  ;;  %v1006_v14 = vpop.f32.mrf.mxu3 }
 0x39f   :  { %v1011_v50 = vadd.f32 %v986_v52, %v239_v25  ;;  %v1012_v5 = vadd.f32 %v1006_v14, %v4288_v7 }
 0x3a1   :  { %v2173_v57 = vmul.f32 -1.442695, %v1011_v50 }
 0x3a2   :  { %v2356_v3 = vpop.eup %2355 }
 0x3a3   :  { %v2358_v23 = vpop.eup %2357  ;;  %v1022_v8 = vadd.f32 1.0, %v2356_v3  ;;  %2359 = vpow2.f32 %v2173_v57 }
 0x3a4   :  { %v1023_v60 = vadd.f32 1.0, %v2358_v23 }
 0x3a5   :  { %2361 = vrcp.f32 %v1022_v8  ;;  %v1036_v50 = vand.u32 2147483648, %v1022_v8  ;;  %v1034_v23 = vand.u32 2147483647, %v1022_v8  ;;  %vm1030_vm6 = vweird.f32 %v1022_v8 }
 0x3a6   :  { %2363 = vrcp.f32 %v1023_v60  ;;  %v1051_v52 = vand.u32 2147483648, %v1023_v60  ;;  %v1049_v39 = vand.u32 2147483647, %v1023_v60  ;;  %vm1045_vm7 = vweird.f32 %v1023_v60 }
 0x3a7   :  { %v1037_v7 = vor.u32 1.1754944e-38, %v1036_v50  ;;  %vm1035_vm11 = vcmp.eq.f32.partialorder %v1034_v23, 8.507059e+37 }
 0x3a8   :  { %vm1050_vm12 = vcmp.eq.f32.partialorder %v1049_v39, 8.507059e+37 }
 0x3a9   :  { %v2360_v31 = vpop.eup %2359 }
 0x3aa   :  { %v1024_v24 = vadd.f32 1.0, %v2360_v31 }
 0x3ab   :  { %v2362_v55 = vpop.eup %2361 }
 0x3ac   :  { %v2364_v59 = vpop.eup %2363  ;;  %v1026_v54 = vmul.f32 %v2362_v55, %v1022_v8  ;;  %2365 = vrcp.f32 %v1024_v24  ;;  %vm1031_vm4 = vweird.f32 %v2362_v55  ;;  %v1066_v50 = vand.u32 2147483648, %v1024_v24 }
 0x3ad   :  { %v1041_v63 = vmul.f32 %v2364_v59, %v1023_v60  ;;  %2367 = vtanh.f32 %v1012_v5  ;;  %vm1046_vm5 = vweird.f32 %v2364_v59  ;;  %vm1032_vm8 = vmor %vm1030_vm6, %vm1031_vm4  ;;  %vm1060_vm14 = vweird.f32 %v1024_v24 }
 0x3ae   :  { %v1027_v48 = vsub.f32 1.0, %v1026_v54  ;;  %vm1047_vm9 = vmor %vm1045_vm7, %vm1046_vm5  ;;  %v1052_v54 = vor.u32 1.1754944e-38, %v1051_v52  ;;  %v1067_v23 = vor.u32 1.1754944e-38, %v1066_v50 }
 0x3af   :  { %v1042_v25 = vsub.f32 1.0, %v1041_v63 }
 0x3b0   :  { %v1028_v3 = vmul.f32 %v2362_v55, %v1027_v48 }
 0x3b1   :  { %v1043_v57 = vmul.f32 %v2364_v59, %v1042_v25 }
 0x3b2   :  { %v2366_v61 = vpop.eup %2365  ;;  %v1029_v31 = vadd.f32 %v2362_v55, %v1028_v3 }
 0x3b3   :  { %v1056_v14 = vmul.f32 %v2366_v61, %v1024_v24  ;;  %v1044_v43 = vadd.f32 %v2364_v59, %v1043_v57  ;;  %v2368_v5 = vpop.eup %2367  ;;  %vm1061_vm13 = vweird.f32 %v2366_v61 }
 0x3b4   :  { %v1033_v63 = vsel %vm1032_vm8, %v2362_v55, %v1029_v31  ;;  %v1064_v55 = vand.u32 2147483647, %v1024_v24  ;;  %vm1062_vm15 = vmor %vm1060_vm14, %vm1061_vm13 }
 0x3b5   :  { %v1057_v53 = vsub.f32 1.0, %v1056_v14  ;;  %v1038_v48 = vsel %vm1035_vm11, %v1037_v7, %v1033_v63  ;;  %v1048_v27 = vsel %vm1047_vm9, %v2364_v59, %v1044_v43  ;;  %v4319_v7 = vld [vmem:[#allocation46_spill] sm:$0xff] }
 0x3b6   :  { %v1053_v25 = vsel %vm1050_vm12, %v1052_v54, %v1048_v27  ;;  %v1072_v46 = vmul.f32 %v2368_v5, %v1038_v48  ;;  %vm1065_vm0 = vcmp.eq.f32.partialorder %v1064_v55, 8.507059e+37 }
 0x3b7   :  { %v1058_v49 = vmul.f32 %v2366_v61, %v1057_v53  ;;  %v1071_v3 = vmul.f32 %v1053_v25, %v3481_v1 }
 0x3b9   :  { %v3560_v8 = vadd.f32 %v1072_v46, %v1071_v3  ;;  %v1059_v60 = vadd.f32 %v2366_v61, %v1058_v49 }
 0x3bb   :  { %2369 = vtanh.f32 %v3560_v8  ;;  %v1063_v52 = vsel %vm1062_vm15, %v2366_v61, %v1059_v60 }
 0x3bc   :  { %v1068_v39 = vsel %vm1065_vm0, %v1067_v23, %v1063_v52 }
 0x3c1   :  { %v2370_v43 = vpop.eup %2369 }
 0x3c2   :  { %v3563_v27 = vmul.f32 %v2370_v43, %v1068_v39 }
 0x3c4   :  { %1092 = vmatmul.f32.vlgmr.msra.gmra.mxu0 %v3563_v27  ;;  %1112 = vmatmul.f32.vlgmr.msrb.gmra.mxu1 %v3563_v27 }
 0x3c5   :  { %1132 = vmatmul.f32.vlgmr.msra.gmra.mxu2 %v3563_v27  ;;  %1152 = vmatmul.f32.vlgmr.msra.gmra.mxu3 %v3563_v27 }
 0x3c6   :  { %1430 = vmatpush.msra.mxu3 %v3208_v4  ;;  %1370 = vmatpush.msra.mxu0 %v3198_v9  ;;  %v4289_v9 = vld [vmem:[#allocation32_spill] sm:$0xff]  ;;  %v4291_v4 = vld [vmem:[#allocation14_spill] sm:$0xff] }
 0x3c7   :  { %1390 = vmatpush.msrb.mxu1 %v3380_v47  ;;  %1410 = vmatpush.msra.mxu2 %v3205_v56  ;;  %v4290_v56 = vld [vmem:[#allocation11_spill] sm:$0xff] }
 0x3c8   :  { %1431 = vmatpush.msra.mxu3 %v3218_v12  ;;  %1371 = vmatpush.msra.mxu0 %v3211_v0  ;;  %v4292_v0 = vld [vmem:[#allocation7_spill] sm:$0xff]  ;;  %v4294_v12 = vld [vmem:[#allocation13_spill] sm:$0xff] }
 0x3c9   :  { %1391 = vmatpush.msrb.mxu1 %v3386_v2  ;;  %1411 = vmatpush.msra.mxu2 %v3215_v13  ;;  %v4293_v13 = vld [vmem:[#allocation21_spill] sm:$0xff]  ;;  %v4315_v47 = vld [vmem:[#allocation43_spill] sm:$0xff] }
 0x3ca   :  { %1432 = vmatpush.msra.mxu3 %v3231_v15  ;;  %1372 = vmatpush.msra.mxu0 %v3221_v16  ;;  %v4295_v16 = vld [vmem:[#allocation16_spill] sm:$0xff]  ;;  %v4297_v15 = vld [vmem:[#allocation26_spill] sm:$0xff] }
 0x3cb   :  { %1392 = vmatpush.msrb.mxu1 %v3392_v35  ;;  %1412 = vmatpush.msra.mxu2 %v3228_v28  ;;  %v4296_v28 = vld [vmem:[#allocation28_spill] sm:$0xff] }
 0x3cc   :  { %1433 = vmatpush.msra.mxu3 %v3241_v17  ;;  %1373 = vmatpush.msra.mxu0 %v3234_v29  ;;  %v4298_v29 = vld [vmem:[#allocation9_spill] sm:$0xff]  ;;  %v4316_v35 = vld [vmem:[#allocation44_spill] sm:$0xff] }
 0x3cd   :  { %1393 = vmatpush.msrb.mxu1 %v3398_v26  ;;  %1413 = vmatpush.msra.mxu2 %v3238_v30  ;;  %v4299_v30 = vld [vmem:[#allocation12_spill] sm:$0xff]  ;;  %v4300_v17 = vld [vmem:[#allocation17_spill] sm:$0xff] }
 0x3ce   :  { %1434 = vmatpush.msra.mxu3 %v3251_v34  ;;  %1374 = vmatpush.msra.mxu0 %v3244_v32  ;;  %v4301_v32 = vld [vmem:[#allocation6_spill] sm:$0xff] }
 0x3cf   :  { %1394 = vmatpush.msrb.mxu1 %v3404_v58  ;;  %1414 = vmatpush.msra.mxu2 %v3248_v33  ;;  %v4302_v33 = vld [vmem:[#allocation29_spill] sm:$0xff]  ;;  %v4303_v34 = vld [vmem:[#allocation30_spill] sm:$0xff] }
 0x3d0   :  { %1435 = vmatpush.msra.mxu3 %v3261_v37  ;;  %1375 = vmatpush.msra.mxu0 %v3254_v18  ;;  %v4304_v18 = vld [vmem:[#allocation19_spill] sm:$0xff]  ;;  %v4306_v37 = vld [vmem:[#allocation20_spill] sm:$0xff] }
 0x3d1   :  { %1395 = vmatpush.msrb.mxu1 %v3410_v11  ;;  %1415 = vmatpush.msra.mxu2 %v3258_v36  ;;  %v4305_v36 = vld [vmem:[#allocation8_spill] sm:$0xff] }
 0x3d2   :  { %1436 = vmatpush.msra.mxu3 %v3271_v40  ;;  %1376 = vmatpush.msra.mxu0 %v3264_v19  ;;  %v4307_v19 = vld [vmem:[#allocation22_spill] sm:$0xff]  ;;  %v4309_v40 = vld [vmem:[#allocation55_spill] sm:$0xff] }
 0x3d3   :  { %1396 = vmatpush.msrb.mxu1 %v3416_v62  ;;  %1416 = vmatpush.msra.mxu2 %v3268_v38  ;;  %v4308_v38 = vld [vmem:[#allocation15_spill] sm:$0xff]  ;;  %v4317_v62 = vld [vmem:[#allocation57_spill] sm:$0xff] }
 0x3d4   :  { %1437 = vmatpush.msra.mxu3 %v3281_v42  ;;  %1377 = vmatpush.msra.mxu0 %v3274_v20  ;;  %v4310_v20 = vld [vmem:[#allocation23_spill] sm:$0xff] }
 0x3d5   :  { %1397 = vmatpush.msrb.mxu1 %v3422_v10  ;;  %1417 = vmatpush.msra.mxu2 %v3278_v41  ;;  %v4311_v41 = vld [vmem:[#allocation25_spill] sm:$0xff]  ;;  %v4312_v42 = vld [vmem:[#allocation31_spill] sm:$0xff] }
 0x3d6   :  { %1438 = vmatpush.msra.mxu3 %v3291_v45  ;;  %1378 = vmatpush.msra.mxu0 %v3284_v21  ;;  %v4313_v21 = vld [vmem:[#allocation33_spill] sm:$0xff] }
 0x3d7   :  { %1398 = vmatpush.msrb.mxu1 %v3428_v6  ;;  %1418 = vmatpush.msra.mxu2 %v3288_v44  ;;  %v4314_v44 = vld [vmem:[#allocation18_spill] sm:$0xff]  ;;  %v4318_v10 = vld [vmem:[#allocation49_spill] sm:$0xff] }
 0x3d8   :  { %1439 = vmatpush.msra.mxu3 %v4259_v51  ;;  %1379 = vmatpush.msra.mxu0 %v3294_v22  ;;  %v241_v6 = vadd.f32 %v4318_v10, %v4317_v62  ;;  %v3677_v10 = vld [vmem:[%s4015_s10 + $0x18] sm:$0xff] }
 0x3d9   :  { %1399 = vmatpush.msrb.mxu1 %v4289_v9  ;;  %1419 = vmatpush.msra.mxu2 %v4290_v56 }
 0x3da   :  { %1440 = vmatpush.msra.mxu3 %v4291_v4  ;;  %1380 = vmatpush.msra.mxu0 %v4292_v0 }
 0x3db   :  { %1400 = vmatpush.msrb.mxu1 %v4293_v13  ;;  %1420 = vmatpush.msra.mxu2 %v4294_v12 }
 0x3dc   :  { %1441 = vmatpush.msra.mxu3 %v4295_v16  ;;  %1381 = vmatpush.msra.mxu0 %v4296_v28 }
 0x3dd   :  { %1401 = vmatpush.msrb.mxu1 %v4297_v15  ;;  %1421 = vmatpush.msra.mxu2 %v4298_v29 }
 0x3de   :  { %1442 = vmatpush.msra.mxu3 %v4299_v30  ;;  %1382 = vmatpush.msra.mxu0 %v4300_v17 }
 0x3df   :  { %1402 = vmatpush.msrb.mxu1 %v4301_v32  ;;  %1422 = vmatpush.msra.mxu2 %v4302_v33 }
 0x3e0   :  { %1443 = vmatpush.msra.mxu3 %v4303_v34  ;;  %1383 = vmatpush.msra.mxu0 %v4304_v18 }
 0x3e1   :  { %1403 = vmatpush.msrb.mxu1 %v4305_v36  ;;  %1423 = vmatpush.msra.mxu2 %v4306_v37 }
 0x3e2   :  { %1444 = vmatpush.msra.mxu3 %v4307_v19  ;;  %1384 = vmatpush.msra.mxu0 %v4308_v38 }
 0x3e3   :  { %1404 = vmatpush.msrb.mxu1 %v4309_v40  ;;  %1424 = vmatpush.msra.mxu2 %v4310_v20 }
 0x3e4   :  { %1445 = vmatpush.msra.mxu3 %v4311_v41  ;;  %1385 = vmatpush.msra.mxu0 %v4312_v42  ;;  %v3657_v42 = vld [vmem:[%s4015_s10 + $0x30] sm:$0xff] }
 0x3e5   :  { %1405 = vmatpush.msrb.mxu1 %v4313_v21  ;;  %1425 = vmatpush.msra.mxu2 %v4314_v44  ;;  %v3663_v21 = vld [vmem:[%s4015_s10 + $0x28] sm:$0xff] }
 0x441   :  { %v1093_v45 = vpop.f32.mrf.mxu0  ;;  %v1113_v22 = vpop.f32.mrf.mxu1 }
 0x442   :  { %v1156_v2 = vadd.f32 %v1093_v45, %v4315_v47  ;;  %v1157_v26 = vadd.f32 %v1113_v22, %v4316_v35  ;;  %v4320_v22 = vld [vmem:[#allocation47_spill] sm:$0xff] }
 0x444   :  { %v2174_v58 = vmul.f32 -1.442695, %v1156_v2  ;;  %v2175_v11 = vmul.f32 -1.442695, %v1157_v26  ;;  %v4321_v2 = vld [vmem:[#allocation48_spill] sm:$0xff]  ;;  %v3671_v26 = vld [vmem:[%s4015_s10 + $0x20] sm:$0xff] }
 0x446   :  { %2371 = vpow2.f32 %v2174_v58 }
 0x447   :  { %2373 = vpow2.f32 %v2175_v11 }
 0x448   :  { %v1133_v49 = vpop.f32.mrf.mxu2  ;;  %v1153_v59 = vpop.f32.mrf.mxu3 }
 0x449   :  { %v1158_v1 = vadd.f32 %v1133_v49, %v241_v6  ;;  %v1159_v54 = vadd.f32 %v1153_v59, %v4319_v7  ;;  %v4322_v6 = vld [vmem:[#allocation53_spill] sm:$0xff] }
 0x44a   :  { %v244_v49 = vadd.f32 %v4322_v6, %v4317_v62 }
 0x44b   :  { %v2176_v46 = vmul.f32 -1.442695, %v1158_v1 }
 0x44c   :  { %v2372_v51 = vpop.eup %2371 }
 0x44d   :  { %v2374_v53 = vpop.eup %2373  ;;  %v1169_v61 = vadd.f32 1.0, %v2372_v51  ;;  %2375 = vpow2.f32 %v2176_v46  ;;  %v3685_v46 = vld [vmem:[%s4015_s10 + $0x10] sm:$0xff] }
 0x44e   :  { %v1170_v24 = vadd.f32 1.0, %v2374_v53 }
 0x44f   :  { %2377 = vrcp.f32 %v1169_v61  ;;  %v1183_v60 = vand.u32 2147483648, %v1169_v61  ;;  %v1181_v52 = vand.u32 2147483647, %v1169_v61  ;;  %vm1177_vm3 = vweird.f32 %v1169_v61 }
 0x450   :  { %2379 = vrcp.f32 %v1170_v24  ;;  %v1198_v50 = vand.u32 2147483648, %v1170_v24  ;;  %v1196_v43 = vand.u32 2147483647, %v1170_v24  ;;  %vm1192_vm4 = vweird.f32 %v1170_v24 }
 0x451   :  { %v1184_v4 = vor.u32 1.1754944e-38, %v1183_v60  ;;  %vm1182_vm7 = vcmp.eq.f32.partialorder %v1181_v52, 8.507059e+37 }
 0x452   :  { %v1199_v13 = vor.u32 1.1754944e-38, %v1198_v50  ;;  %vm1197_vm8 = vcmp.eq.f32.partialorder %v1196_v43, 8.507059e+37 }
 0x453   :  { %v2376_v57 = vpop.eup %2375 }
 0x454   :  { %v1171_v31 = vadd.f32 1.0, %v2376_v57 }
 0x455   :  { %v2378_v14 = vpop.eup %2377 }
 0x456   :  { %v2380_v63 = vpop.eup %2379  ;;  %v1173_v5 = vmul.f32 %v2378_v14, %v1169_v61  ;;  %2381 = vrcp.f32 %v1171_v31  ;;  %vm1178_vm1 = vweird.f32 %v2378_v14  ;;  %v1213_v36 = vand.u32 2147483648, %v1171_v31 }
 0x457   :  { %v1188_v48 = vmul.f32 %v2380_v63, %v1170_v24  ;;  %2383 = vtanh.f32 %v1159_v54  ;;  %vm1193_vm2 = vweird.f32 %v2380_v63  ;;  %vm1179_vm5 = vmor %vm1177_vm3, %vm1178_vm1  ;;  %vm1207_vm11 = vweird.f32 %v1171_v31 }
 0x458   :  { %v1174_v25 = vsub.f32 1.0, %v1173_v5  ;;  %vm1194_vm6 = vmor %vm1192_vm4, %vm1193_vm2  ;;  %v1211_v37 = vand.u32 2147483647, %v1171_v31  ;;  %v1214_v38 = vor.u32 1.1754944e-38, %v1213_v36 }
 0x459   :  { %v1189_v3 = vsub.f32 1.0, %v1188_v48  ;;  %v4323_v48 = vld [vmem:[#allocation50_spill] sm:$0xff] }
 0x45a   :  { %v1175_v55 = vmul.f32 %v2378_v14, %v1174_v25  ;;  %vm1212_vm13 = vcmp.eq.f32.partialorder %v1211_v37, 8.507059e+37 }
 0x45b   :  { %v1190_v23 = vmul.f32 %v2380_v63, %v1189_v3 }
 0x45c   :  { %v2382_v39 = vpop.eup %2381  ;;  %v1176_v9 = vadd.f32 %v2378_v14, %v1175_v55 }
 0x45d   :  { %v1203_v56 = vmul.f32 %v2382_v39, %v1171_v31  ;;  %v1191_v0 = vadd.f32 %v2380_v63, %v1190_v23  ;;  %v2384_v16 = vpop.eup %2383  ;;  %vm1208_vm9 = vweird.f32 %v2382_v39  ;;  %v3691_v31 = vld [vmem:[%s4015_s10 + $0x8] sm:$0xff] }
 0x45e   :  { %v1180_v12 = vsel %vm1179_vm5, %v2378_v14, %v1176_v9  ;;  %vm1209_vm12 = vmor %vm1207_vm11, %vm1208_vm9  ;;  %v3697_v14 = vld [vmem:[%s4015_s10] sm:$0xff] }
 0x45f   :  { %v1204_v28 = vsub.f32 1.0, %v1203_v56  ;;  %v1185_v15 = vsel %vm1182_vm7, %v1184_v4, %v1180_v12  ;;  %v1195_v29 = vsel %vm1194_vm6, %v2380_v63, %v1191_v0 }
 0x460   :  { %v1200_v30 = vsel %vm1197_vm8, %v1199_v13, %v1195_v29  ;;  %v1219_v17 = vmul.f32 %v2384_v16, %v1185_v15 }
 0x461   :  { %v1205_v32 = vmul.f32 %v2382_v39, %v1204_v28  ;;  %v1218_v33 = vmul.f32 %v1200_v30, %v3560_v8  ;;  %v3651_v8 = vld [vmem:[%s4015_s10 + $0x38] sm:$0xff]  ;;  %s2537_s10 = smov 96  }
 0x463   :  { %v3639_v34 = vadd.f32 %v1219_v17, %v1218_v33  ;;  %v1206_v18 = vadd.f32 %v2382_v39, %v1205_v32 }
 0x465   :  { %2385 = vtanh.f32 %v3639_v34  ;;  %v1210_v19 = vsel %vm1209_vm12, %v2382_v39, %v1206_v18 }
 0x466   :  { %v1215_v20 = vsel %vm1212_vm13, %v1214_v38, %v1210_v19 }
 0x46b   :  { %v2386_v40 = vpop.eup %2385 }
 0x46c   :  { %v3642_v41 = vmul.f32 %v2386_v40, %v1215_v20 }
 0x46e   :  { %1239 = vmatmul.f32.vlgmr.msrb.gmra.mxu0 %v3642_v41  ;;  %1259 = vmatmul.f32.vlgmr.msra.gmra.mxu1 %v3642_v41 }
 0x46f   :  { %1279 = vmatmul.f32.vlgmr.msrb.gmra.mxu2 %v3642_v41  ;;  %1299 = vmatmul.f32.vlgmr.msrb.gmra.mxu3 %v3642_v41 }
 0x470   :  { %2273 = vmatpush.bf16.msrb.mxu3 %v3651_v8 }
 0x474   :  { %2274 = vmatpush.bf16.msrb.mxu3 %v3657_v42 }
 0x478   :  { %2275 = vmatpush.bf16.msrb.mxu3 %v3663_v21 }
 0x47c   :  { %2276 = vmatpush.bf16.msrb.mxu3 %v3671_v26 }
 0x480   :  { %2277 = vmatpush.bf16.msrb.mxu3 %v3677_v10 }
 0x484   :  { %2278 = vmatpush.bf16.msrb.mxu3 %v3685_v46 }
 0x488   :  { %2279 = vmatpush.bf16.msrb.mxu3 %v3691_v31 }
 0x48c   :  { %2280 = vmatpush.bf16.msrb.mxu3 %v3697_v14 }
 0x4eb   :  { %v1240_v44 = vpop.f32.mrf.mxu0  ;;  %v1260_v45 = vpop.f32.mrf.mxu1 }
 0x4ec   :  { %v1303_v47 = vadd.f32 %v1240_v44, %v4320_v22  ;;  %v1304_v35 = vadd.f32 %v1260_v45, %v4321_v2 }
 0x4ee   :  { %v2177_v58 = vmul.f32 -1.442695, %v1303_v47  ;;  %v2178_v11 = vmul.f32 -1.442695, %v1304_v35  ;;  %v4324_v47 = vld [vmem:[#allocation34_spill] sm:$0xff] }
 0x4ef   :  { %v3707_v2 = vpack.c.bf16 %v4324_v47, %v4324_v47 }
 0x4f0   :  { %2387 = vpow2.f32 %v2177_v58 }
 0x4f1   :  { %2389 = vpow2.f32 %v2178_v11  ;;  %v1607_v11 = vunpack.c.l.b16 %v3707_v2 }
 0x4f2   :  { %v1280_v1 = vpop.f32.mrf.mxu2  ;;  %v1300_v7 = vpop.f32.mrf.mxu3 }
 0x4f3   :  { %v1305_v51 = vadd.f32 %v1280_v1, %v244_v49  ;;  %v1306_v25 = vadd.f32 %v1300_v7, %v4323_v48  ;;  %v1608_v6 = vpack.c.b16 %v1607_v11, %v1607_v11  ;;  %v4325_v49 = vld [vmem:[#allocation24_spill] sm:$0xff]  ;;  %v1543_v48 = vld [vmem:[%s4012_s7 + $0x50] sm:$0xff] }
 0x4f4   :  { %v3718_v1 = vpack.c.bf16 %v4325_v49, %v4325_v49  ;;  %v1548_v7 = vld [vmem:[%s4012_s7 + $0x78] sm:$0xff] }
 0x4f5   :  { %v2179_v53 = vmul.f32 -1.442695, %v1305_v51  ;;  %1549 = vmatpush.msrb.mxu0 %v1548_v7  ;;  %v1520_v11 = vld [vmem:[%s4011_s6 + $0x18] sm:$0xff] }
 0x4f6   :  { %v2388_v61 = vpop.eup %2387  ;;  %v1622_v51 = vsel %vm1615_vm10, %v3718_v1, %v1608_v6  ;;  %v4328_v6 = vld [vmem:[#allocation56_spill] sm:$0xff] }
 0x4f7   :  { %v2390_v24 = vpop.eup %2389  ;;  %v1316_v59 = vadd.f32 1.0, %v2388_v61  ;;  %2391 = vpow2.f32 %v2179_v53  ;;  %v3724_v53 = vpack.c.bf16 %v3642_v41, %v3642_v41  ;;  %v1547_v41 = vld [vmem:[%s4012_s7 + $0x70] sm:$0xff]  ;;  %v246_v49 = vadd.f32 %v4328_v6, %v4317_v62  ;;  %v1517_v62 = vld [vmem:[%s4011_s6] sm:$0xff] }
 0x4f8   :  { %v1317_v57 = vadd.f32 1.0, %v2390_v24  ;;  %1550 = vmatpush.msrb.mxu0 %v1547_v41 }
 0x4f9   :  { %2393 = vrcp.f32 %v1316_v59  ;;  %v1330_v23 = vand.u32 2147483648, %v1316_v59  ;;  %v1328_v9 = vand.u32 2147483647, %v1316_v59  ;;  %vm1324_vm0 = vweird.f32 %v1316_v59 }
 0x4fa   :  { %2395 = vrcp.f32 %v1317_v57  ;;  %v1345_v43 = vand.u32 2147483648, %v1317_v57  ;;  %v1343_v4 = vand.u32 2147483647, %v1317_v57  ;;  %vm1339_vm1 = vweird.f32 %v1317_v57 }
 0x4fb   :  { %v1331_v16 = vor.u32 1.1754944e-38, %v1330_v23  ;;  %vm1329_vm4 = vcmp.eq.f32.partialorder %v1328_v9, 8.507059e+37  ;;  %v1610_v61 = vunpack.c.l.b16 %v3724_v53  ;;  %v2269_v23 = vld [vmem:[%s4016_s11 + $0x30] sm:$0xff] }
 0x4fc   :  { %v1346_v15 = vor.u32 1.1754944e-38, %v1345_v43  ;;  %vm1344_vm5 = vcmp.eq.f32.partialorder %v1343_v4, 8.507059e+37  ;;  %v1540_v43 = vld [vmem:[%s4012_s7 + $0x38] sm:$0xff]  ;;  %v1539_v9 = vld [vmem:[%s4012_s7 + $0x30] sm:$0xff]  ;;  %v2268_v4 = vld [vmem:[%s4016_s11 + $0x28] sm:$0xff] }
 0x4fd   :  { %v2392_v54 = vpop.eup %2391  ;;  %v1611_v24 = vpack.c.b16 %v1610_v61, %v1610_v61  ;;  %v1519_v61 = vld [vmem:[%s4011_s6 + $0x10] sm:$0xff] }
 0x4fe   :  { %v1318_v63 = vadd.f32 1.0, %v2392_v54  ;;  %v1546_v54 = vld [vmem:[%s4012_s7 + $0x68] sm:$0xff] }
 0x4ff   :  { %v2394_v5 = vpop.eup %2393  ;;  %1551 = vmatpush.msrb.mxu0 %v1546_v54 }
 0x500   :  { %v2396_v3 = vpop.eup %2395  ;;  %v1320_v60 = vmul.f32 %v2394_v5, %v1316_v59  ;;  %2397 = vrcp.f32 %v1318_v63  ;;  %vm1325_vm14 = vweird.f32 %v2394_v5  ;;  %v1360_v20 = vand.u32 2147483648, %v1318_v63 }
 0x501   :  { %v1335_v50 = vmul.f32 %v2396_v3, %v1317_v57  ;;  %2399 = vtanh.f32 %v1306_v25  ;;  %vm1340_vm15 = vweird.f32 %v2396_v3  ;;  %vm1326_vm2 = vmor %vm1324_vm0, %vm1325_vm14  ;;  %vm1354_vm7 = vweird.f32 %v1318_v63  ;;  %v1531_v25 = vld [vmem:[%s4011_s6 + $0x70] sm:$0xff] }
 0x502   :  { %v1321_v55 = vsub.f32 1.0, %v1320_v60  ;;  %vm1341_vm3 = vmor %vm1339_vm1, %vm1340_vm15  ;;  %v1358_v44 = vand.u32 2147483647, %v1318_v63  ;;  %v1361_v22 = vor.u32 1.1754944e-38, %v1360_v20  ;;  %v3729_v59 = vpack.c.bf16 %v3563_v27, %v3563_v27  ;;  %v1545_v27 = vld [vmem:[%s4012_s7 + $0x60] sm:$0xff]  ;;  %v1542_v60 = vld [vmem:[%s4012_s7 + $0x48] sm:$0xff] }
 0x503   :  { %v1336_v52 = vsub.f32 1.0, %v1335_v50  ;;  %1552 = vmatpush.msrb.mxu0 %v1545_v27  ;;  %v1530_v50 = vld [vmem:[%s4011_s6 + $0x68] sm:$0xff] }
 0x504   :  { %v1322_v39 = vmul.f32 %v2394_v5, %v1321_v55  ;;  %vm1359_vm9 = vcmp.eq.f32.partialorder %v1358_v44, 8.507059e+37  ;;  %v1626_v57 = vsel %vm1615_vm10, %v3729_v59, %v1611_v24  ;;  %v1541_v55 = vld [vmem:[%s4012_s7 + $0x40] sm:$0xff]  ;;  %v4327_v44 = vld [vmem:[#allocation52_spill] sm:$0xff]  ;;  %v2264_v24 = vld [vmem:[%s4016_s11 + $0x8] sm:$0xff] }
 0x505   :  { %v1337_v56 = vmul.f32 %v2396_v3, %v1336_v52  ;;  %v1529_v52 = vld [vmem:[%s4011_s6 + $0x60] sm:$0xff] }
 0x506   :  { %v2398_v0 = vpop.eup %2397  ;;  %v1323_v13 = vadd.f32 %v2394_v5, %v1322_v39  ;;  %v1528_v39 = vld [vmem:[%s4011_s6 + $0x58] sm:$0xff] }
 0x507   :  { %v1350_v12 = vmul.f32 %v2398_v0, %v1318_v63  ;;  %v1338_v28 = vadd.f32 %v2396_v3, %v1337_v56  ;;  %v2400_v30 = vpop.eup %2399  ;;  %vm1355_vm6 = vweird.f32 %v2398_v0  ;;  %v1544_v63 = vld [vmem:[%s4012_s7 + $0x58] sm:$0xff]  ;;  %v1527_v56 = vld [vmem:[%s4011_s6 + $0x50] sm:$0xff] }
 0x508   :  { %v1327_v29 = vsel %vm1326_vm2, %v2394_v5, %v1323_v13  ;;  %vm1356_vm8 = vmor %vm1354_vm7, %vm1355_vm6  ;;  %1553 = vmatpush.msrb.mxu0 %v1544_v63  ;;  %v1532_v5 = vld [vmem:[%s4011_s6 + $0x78] sm:$0xff]  ;;  %v1526_v13 = vld [vmem:[%s4011_s6 + $0x48] sm:$0xff]  ;;  %vm2014_vm7 = vcmask 1041409  }
 0x509   :  { %v1351_v17 = vsub.f32 1.0, %v1350_v12  ;;  %v1332_v32 = vsel %vm1329_vm4, %v1331_v16, %v1327_v29  ;;  %v1342_v33 = vsel %vm1341_vm3, %v2396_v3, %v1338_v28  ;;  %1569 = vmatpush.msra.mxu1 %v1532_v5  ;;  %v2270_v3 = vld [vmem:[%s4016_s11 + $0x38] sm:$0xff]  ;;  %v1537_v12 = vld [vmem:[%s4012_s7 + $0x20] sm:$0xff] }
 0x50a   :  { %v1347_v18 = vsel %vm1344_vm5, %v1346_v15, %v1342_v33  ;;  %v1366_v36 = vmul.f32 %v2400_v30, %v1332_v32  ;;  %1554 = vmatpush.msrb.mxu0 %v1543_v48  ;;  %1740 = vmatpush.bf16.msrb.mxu2 %v2270_v3  ;;  %v1525_v16 = vld [vmem:[%s4011_s6 + $0x40] sm:$0xff]  ;;  %v1536_v15 = vld [vmem:[%s4012_s7 + $0x18] sm:$0xff]  ;;  %v1535_v30 = vld [vmem:[%s4012_s7 + $0x10] sm:$0xff] }
 0x50b   :  { %v1352_v37 = vmul.f32 %v2398_v0, %v1351_v17  ;;  %v1365_v19 = vmul.f32 %v1347_v18, %v3639_v34  ;;  %1570 = vmatpush.msra.mxu1 %v1531_v25  ;;  %v2267_v28 = vld [vmem:[%s4016_s11 + $0x20] sm:$0xff]  ;;  %v1524_v29 = vld [vmem:[%s4011_s6 + $0x38] sm:$0xff]  ;;  %v1523_v17 = vld [vmem:[%s4011_s6 + $0x30] sm:$0xff] }
 0x50c   :  { %1555 = vmatpush.msrb.mxu0 %v1542_v60  ;;  %v1534_v32 = vld [vmem:[%s4012_s7 + $0x8] sm:$0xff]  ;;  %v2266_v33 = vld [vmem:[%s4016_s11 + $0x18] sm:$0xff]  ;;  %v2263_v5 = vld [vmem:[%s4016_s11] sm:$0xff] }
 0x50d   :  { %v3702_v38 = vadd.f32 %v1366_v36, %v1365_v19  ;;  %v1353_v40 = vadd.f32 %v2398_v0, %v1352_v37  ;;  %1571 = vmatpush.msra.mxu1 %v1530_v50  ;;  %v1522_v37 = vld [vmem:[%s4011_s6 + $0x28] sm:$0xff]  ;;  %v1533_v19 = vld [vmem:[%s4012_s7] sm:$0xff] }
 0x50e   :  { %1556 = vmatpush.msrb.mxu0 %v1541_v55  ;;  %1741 = vmatpush.bf16.msrb.mxu2 %v2269_v23  ;;  %v4329_v55 = vld [vmem:[#allocation54_spill] sm:$0xff] }
 0x50f   :  { %2401 = vtanh.f32 %v3702_v38  ;;  %v1357_v45 = vsel %vm1356_vm8, %v2398_v0, %v1353_v40  ;;  %1572 = vmatpush.msra.mxu1 %v1529_v52  ;;  %v1538_v0 = vld [vmem:[%s4012_s7 + $0x28] sm:$0xff]  ;;  %v4326_v40 = vld [vmem:[#allocation51_spill] sm:$0xff]  ;;  %vm2016_vm8 = vcmask 1042434  }
 0x510   :  { %v1362_v58 = vsel %vm1359_vm9, %v1361_v22, %v1357_v45  ;;  %1557 = vmatpush.msrb.mxu0 %v1540_v43  ;;  %vm2018_vm9 = vcmask 1043459  }
 0x511   :  { %1573 = vmatpush.msra.mxu1 %v1528_v39 }
 0x512   :  { %1558 = vmatpush.msrb.mxu0 %v1539_v9  ;;  %1742 = vmatpush.bf16.msrb.mxu2 %v2268_v4 }
 0x513   :  { %1574 = vmatpush.msra.mxu1 %v1527_v56 }
 0x514   :  { %1559 = vmatpush.msrb.mxu0 %v1538_v0 }
 0x515   :  { %v2402_v35 = vpop.eup %2401  ;;  %1575 = vmatpush.msra.mxu1 %v1526_v13 }
 0x516   :  { %v3709_v34 = vmul.f32 %v2402_v35, %v1362_v58  ;;  %1560 = vmatpush.msrb.mxu0 %v1537_v12  ;;  %1743 = vmatpush.bf16.msrb.mxu2 %v2267_v28  ;;  %v1521_v35 = vld [vmem:[%s4011_s6 + $0x20] sm:$0xff]  ;;  %v2265_v58 = vld [vmem:[%s4016_s11 + $0x10] sm:$0xff] }
 0x517   :  { %1576 = vmatpush.msra.mxu1 %v1525_v16 }
 0x518   :  { %1386 = vmatmul.f32.vlgmr.msra.gmra.mxu0 %v3709_v34  ;;  %1406 = vmatmul.f32.vlgmr.msrb.gmra.mxu1 %v3709_v34 }
 0x519   :  { %1426 = vmatmul.f32.vlgmr.msra.gmra.mxu2 %v3709_v34  ;;  %1446 = vmatmul.f32.vlgmr.msra.gmra.mxu3 %v3709_v34 }
 0x51a   :  { %1561 = vmatpush.msrb.mxu0 %v1536_v15  ;;  %1577 = vmatpush.msra.mxu1 %v1524_v29 }
 0x51b   :  { %1744 = vmatpush.bf16.msrb.mxu2 %v2266_v33 }
 0x51c   :  { %1562 = vmatpush.msrb.mxu0 %v1535_v30  ;;  %1578 = vmatpush.msra.mxu1 %v1523_v17 }
 0x51e   :  { %1563 = vmatpush.msrb.mxu0 %v1534_v32  ;;  %1579 = vmatpush.msra.mxu1 %v1522_v37 }
 0x51f   :  { %1745 = vmatpush.bf16.msrb.mxu2 %v2265_v58 }
 0x520   :  { %1564 = vmatpush.msrb.mxu0 %v1533_v19  ;;  %1580 = vmatpush.msra.mxu1 %v1521_v35 }
 0x521   :  { %1830 = vmatmul.bf16.vlgmr.msrb.gmra.mxu3 %v1622_v51 }
 0x522   :  { %1581 = vmatpush.msra.mxu1 %v1520_v11 }
 0x523   :  { %1746 = vmatpush.bf16.msrb.mxu2 %v2264_v24 }
 0x524   :  { %1582 = vmatpush.msra.mxu1 %v1519_v61 }
 0x527   :  { %1747 = vmatpush.bf16.msrb.mxu2 %v2263_v5  ;;  %v1854_v5 = vld [vmem:[%s4014_s9 + $0x40] sm:$0xff] }
 0x52b   :  { %1817 = vmatpush.bf16.msra.mxu2 %v3651_v8 }
 0x52f   :  { %1818 = vmatpush.bf16.msra.mxu2 %v3657_v42 }
 0x531   :  { %1835 = vmatmul.bf16.gmra.mxu3 %v1626_v57  ;;  %v1518_v57 = vld [vmem:[%s4011_s6 + $0x8] sm:$0xff] }
 0x532   :  { %1583 = vmatpush.msra.mxu1 %v1518_v57 }
 0x533   :  { %1819 = vmatpush.bf16.msra.mxu2 %v3663_v21 }
 0x534   :  { %1584 = vmatpush.msra.mxu1 %v1517_v62 }
 0x537   :  { %1820 = vmatpush.bf16.msra.mxu2 %v3671_v26 }
 0x53b   :  { %1821 = vmatpush.bf16.msra.mxu2 %v3677_v10 }
 0x53f   :  { %1822 = vmatpush.bf16.msra.mxu2 %v3685_v46 }
 0x543   :  { %1823 = vmatpush.bf16.msra.mxu2 %v3691_v31  ;;  %v1636_v31 = vunpack.c.l.b16 %v3729_v59  ;;  %v1860_v59 = vld [vmem:[%s4014_s9 + $0x70] sm:$0xff] }
 0x545   :  { %v1637_v57 = vpack.c.b16 %v1636_v31, %v1636_v31 }
 0x547   :  { %1824 = vmatpush.bf16.msra.mxu2 %v3697_v14  ;;  %v1639_v14 = vunpack.c.l.b16 %v3718_v1  ;;  %v1858_v1 = vld [vmem:[%s4014_s9 + $0x60] sm:$0xff] }
 0x549   :  { %v1640_v62 = vpack.c.b16 %v1639_v14, %v1639_v14 }
 0x595   :  { %v1387_v18 = vpop.f32.mrf.mxu0  ;;  %v1407_v36 = vpop.f32.mrf.mxu1 }
 0x596   :  { %v1450_v20 = vadd.f32 %v1387_v18, %v4326_v40  ;;  %v1451_v45 = vadd.f32 %v1407_v36, %v4327_v44 }
 0x598   :  { %v2180_v22 = vmul.f32 -1.442695, %v1450_v20  ;;  %v2181_v47 = vmul.f32 -1.442695, %v1451_v45 }
 0x59a   :  { %2403 = vpow2.f32 %v2180_v22 }
 0x59b   :  { %2405 = vpow2.f32 %v2181_v47  ;;  %v1601_v47 = vpack.c.bf16 %v3709_v34, %v3709_v34 }
 0x59c   :  { %v1427_v51 = vpop.f32.mrf.mxu2  ;;  %v1447_v25 = vpop.f32.mrf.mxu3 }
 0x59d   :  { %v1452_v7 = vadd.f32 %v1427_v51, %v246_v49  ;;  %v1453_v52 = vadd.f32 %v1447_v25, %v4329_v55  ;;  %v4331_v25 = vld [vmem:[#allocation10_spill] sm:$0xff]  ;;  %v1850_v55 = vld [vmem:[%s4014_s9 + $0x20] sm:$0xff] }
 0x59f   :  { %v2182_v41 = vmul.f32 -1.442695, %v1452_v7  ;;  %v1650_v7 = vsel %vm1615_vm10, %v3724_v53, %v1637_v57  ;;  %v1859_v53 = vld [vmem:[%s4014_s9 + $0x68] sm:$0xff] }
 0x5a0   :  { %v2404_v54 = vpop.eup %2403 }
 0x5a1   :  { %v2406_v27 = vpop.eup %2405  ;;  %v1463_v63 = vadd.f32 1.0, %v2404_v54  ;;  %2407 = vpow2.f32 %v2182_v41  ;;  %v1654_v41 = vsel %vm1615_vm10, %v3707_v2, %v1640_v62  ;;  %v1861_v54 = vld [vmem:[%s4014_s9 + $0x78] sm:$0xff] }
 0x5a2   :  { %v1464_v48 = vadd.f32 1.0, %v2406_v27  ;;  %1862 = vmatpush.msra.mxu0 %v1861_v54  ;;  %v1857_v2 = vld [vmem:[%s4014_s9 + $0x58] sm:$0xff]  ;;  %v1856_v27 = vld [vmem:[%s4014_s9 + $0x50] sm:$0xff] }
 0x5a3   :  { %2409 = vrcp.f32 %v1463_v63  ;;  %v1477_v4 = vand.u32 2147483648, %v1463_v63  ;;  %v1475_v8 = vand.u32 2147483647, %v1463_v63  ;;  %vm1471_vm13 = vweird.f32 %v1463_v63 }
 0x5a4   :  { %2411 = vrcp.f32 %v1464_v48  ;;  %v1492_v13 = vand.u32 2147483648, %v1464_v48  ;;  %v1490_v42 = vand.u32 2147483647, %v1464_v48  ;;  %vm1486_vm14 = vweird.f32 %v1464_v48  ;;  %1863 = vmatpush.msra.mxu0 %v1860_v59 }
 0x5a5   :  { %v1478_v29 = vor.u32 1.1754944e-38, %v1477_v4  ;;  %vm1476_vm0 = vcmp.eq.f32.partialorder %v1475_v8, 8.507059e+37 }
 0x5a6   :  { %v1493_v17 = vor.u32 1.1754944e-38, %v1492_v13  ;;  %vm1491_vm2 = vcmp.eq.f32.partialorder %v1490_v42, 8.507059e+37  ;;  %1864 = vmatpush.msra.mxu0 %v1859_v53 }
 0x5a7   :  { %v2408_v3 = vpop.eup %2407 }
 0x5a8   :  { %v1465_v60 = vadd.f32 1.0, %v2408_v3  ;;  %1865 = vmatpush.msra.mxu0 %v1858_v1  ;;  %v1853_v3 = vld [vmem:[%s4014_s9 + $0x38] sm:$0xff] }
 0x5a9   :  { %v2410_v50 = vpop.eup %2409 }
 0x5aa   :  { %v2412_v23 = vpop.eup %2411  ;;  %v1467_v43 = vmul.f32 %v2410_v50, %v1463_v63  ;;  %2413 = vrcp.f32 %v1465_v60  ;;  %vm1472_vm11 = vweird.f32 %v2410_v50  ;;  %v1507_v45 = vand.u32 2147483648, %v1465_v60  ;;  %1866 = vmatpush.msra.mxu0 %v1857_v2  ;;  %v1855_v63 = vld [vmem:[%s4014_s9 + $0x48] sm:$0xff] }
 0x5ab   :  { %v1482_v39 = vmul.f32 %v2412_v23, %v1464_v48  ;;  %2415 = vtanh.f32 %v1453_v52  ;;  %vm1487_vm12 = vweird.f32 %v2412_v23  ;;  %vm1473_vm15 = vmor %vm1471_vm13, %vm1472_vm11  ;;  %vm1501_vm4 = vweird.f32 %v1465_v60  ;;  %v4330_v48 = vld [vmem:[#allocation5_spill] sm:$0xff]  ;;  %v1849_v52 = vld [vmem:[%s4014_s9 + $0x18] sm:$0xff] }
 0x5ac   :  { %v1468_v9 = vsub.f32 1.0, %v1467_v43  ;;  %vm1488_vm1 = vmor %vm1486_vm14, %vm1487_vm12  ;;  %v1505_v22 = vand.u32 2147483647, %v1465_v60  ;;  %v1508_v10 = vor.u32 1.1754944e-38, %v1507_v45  ;;  %1867 = vmatpush.msra.mxu0 %v1856_v27  ;;  %v1847_v43 = vld [vmem:[%s4014_s9 + $0x8] sm:$0xff]  ;;  %vm2020_vm11 = vcmask 1044484  }
 0x5ad   :  { %v1483_v56 = vsub.f32 1.0, %v1482_v39  ;;  %v1846_v39 = vld [vmem:[%s4014_s9] sm:$0xff]  ;;  %vm2022_vm12 = vcmask 1045509   ;;  %vm2024_vm13 = vcmask 1046534   ;;  %vm2026_vm14 = vcmask 1047559  }
 0x5ae   :  { %v1469_v0 = vmul.f32 %v2410_v50, %v1468_v9  ;;  %vm1506_vm6 = vcmp.eq.f32.partialorder %v1505_v22, 8.507059e+37  ;;  %1868 = vmatpush.msra.mxu0 %v1855_v63  ;;  %v2287_v9 = vld [vmem:[%s4013_s8] ss:$0 sm:$0xff] }
 0x5af   :  { %v1484_v12 = vmul.f32 %v2412_v23, %v1483_v56 }
 0x5b0   :  { %v2414_v16 = vpop.eup %2413  ;;  %v1470_v28 = vadd.f32 %v2410_v50, %v1469_v0  ;;  %1869 = vmatpush.msra.mxu0 %v1854_v5 }
 0x5b1   :  { %v1497_v15 = vmul.f32 %v2414_v16, %v1465_v60  ;;  %v1485_v21 = vadd.f32 %v2412_v23, %v1484_v12  ;;  %v2416_v32 = vpop.eup %2415  ;;  %vm1502_vm3 = vweird.f32 %v2414_v16  ;;  %v1852_v60 = vld [vmem:[%s4014_s9 + $0x30] sm:$0xff] }
 0x5b2   :  { %v1474_v30 = vsel %vm1473_vm15, %v2410_v50, %v1470_v28  ;;  %vm1503_vm5 = vmor %vm1501_vm4, %vm1502_vm3  ;;  %1870 = vmatpush.msra.mxu0 %v1853_v3  ;;  %v1851_v50 = vld [vmem:[%s4014_s9 + $0x28] sm:$0xff] }
 0x5b3   :  { %v1498_v33 = vsub.f32 1.0, %v1497_v15  ;;  %v1479_v18 = vsel %vm1476_vm0, %v1478_v29, %v1474_v30  ;;  %v1489_v36 = vsel %vm1488_vm1, %v2412_v23, %v1485_v21  ;;  %v1848_v23 = vld [vmem:[%s4014_s9 + $0x10] sm:$0xff]  ;;  %v1831_v21 = vpop.f32.mrf.mxu3  ;;  %vm2030_vm0 = vcmask 64512  }
 0x5b4   :  { %v1513_v37 = vmul.f32 %v2416_v32, %v1479_v18  ;;  %v1494_v19 = vsel %vm1491_vm2, %v1493_v17, %v1489_v36  ;;  %1871 = vmatpush.msra.mxu0 %v1852_v60  ;;  %vm2104_vm2 = vcmask 130112  }
 0x5b5   :  { %v1512_v26 = vmul.f32 %v1494_v19, %v3702_v38  ;;  %v1499_v40 = vmul.f32 %v2414_v16, %v1498_v33  ;;  %v1633_v38 = vunpack.c.l.b16 %v1601_v47 }
 0x5b6   :  { %1872 = vmatpush.msra.mxu0 %v1851_v50 }
 0x5b7   :  { %v1514_v20 = vadd.f32 %v1513_v37, %v1512_v26  ;;  %v1500_v44 = vadd.f32 %v2414_v16, %v1499_v40  ;;  %v1634_v49 = vpack.c.b16 %v1633_v38, %v1633_v38 }
 0x5b8   :  { %1873 = vmatpush.msra.mxu0 %v1850_v55 }
 0x5b9   :  { %2417 = vtanh.f32 %v1514_v20  ;;  %1565 = vmatmul.f32.vlgmr.msrb.gmra.mxu0 %v1514_v20  ;;  %v1504_v35 = vsel %vm1503_vm5, %v2414_v16, %v1500_v44 }
 0x5ba   :  { %v1509_v11 = vsel %vm1506_vm6, %v1508_v10, %v1504_v35  ;;  %1874 = vmatpush.msra.mxu0 %v1849_v52 }
 0x5bb   :  { %v1833_v17 = vpop.f32.mrf.mxu3 }
 0x5bc   :  { %1875 = vmatpush.msra.mxu0 %v1848_v23 }
 0x5be   :  { %1876 = vmatpush.msra.mxu0 %v1847_v43 }
 0x5bf   :  { %v2418_v58 = vpop.eup %2417 }
 0x5c0   :  { %v1516_v6 = vmul.f32 %v2418_v58, %v1509_v11  ;;  %1877 = vmatpush.msra.mxu0 %v1846_v39  ;;  %v2288_v11 = vld [vmem:[%s4017_s12] ss:$0 sm:$0xff] }
 0x5c2   :  { %1585 = vmatmul.f32.vlgmr.msra.gmra.mxu1 %v1516_v6  ;;  %v1602_v46 = vpack.c.bf16 %v1516_v6, %v1516_v6 }
 0x5c3   :  { %v1836_v33 = vpop.f32.mrf.mxu3 }
 0x5c4   :  { %v1646_v51 = vsel %vm1615_vm10, %v1602_v46, %v1634_v49  ;;  %v1613_v61 = vunpack.c.l.b16 %v1602_v46 }
 0x5c5   :  { %1748 = vmatmul.bf16.vlgmr.msrb.gmra.mxu2 %v1646_v51 }
 0x5c6   :  { %v1614_v34 = vpack.c.b16 %v1613_v61, %v1613_v61 }
 0x5c8   :  { %v1630_v24 = vsel %vm1615_vm10, %v1601_v47, %v1614_v34  ;;  %vm1910_vm10 = vcmask 261120  }
 0x5c9   :  { %1840 = vmatmul.bf16.gmra.mxu3 %v1630_v24 }
 0x5cb   :  { %v1838_v36 = vpop.f32.mrf.mxu3 }
 0x5d5   :  { %1753 = vmatmul.bf16.gmra.mxu2 %v1650_v7 }
 0x5e5   :  { %1758 = vmatmul.bf16.gmra.mxu2 %v1654_v41 }
 0x5f5   :  { %1763 = vmatmul.bf16.gmra.mxu2 %v4330_v48 }
 0x605   :  { %1825 = vmatmul.bf16.vlgmr.msra.gmra.mxu2 %v4331_v25 }
 0x636   :  { %v1566_v56 = vpop.f32.mrf.mxu0 }
 0x63f   :  { %v1586_v4 = vpop.f32.mrf.mxu1 }
 0x640   :  { %v1587_v0 = vadd.f32 %v1586_v4, %v1566_v56 }
 0x642   :  { %v1593_v8 = vadd.f32 %v2287_v9, %v1587_v0 }
 0x644   :  { %v1594_v13 = vmax.f32 %v1593_v8, 0.0 }
 0x646   :  { %2097 = vst [vmem:[%s4018_s13] sm:$0xff] %v1594_v13  ;;  %1878 = vmatmul.f32.vlgmr.msra.gmra.mxu0 %v1594_v13 }
 0x648   :  { %v1749_v12 = vpop.f32.mrf.mxu2 }
 0x64c   :  { %v1841_v20 = vpop.f32.mrf.mxu3 }
 0x650   :  { %v1751_v42 = vpop.f32.mrf.mxu2 }
 0x654   :  { %v1843_v24 = vpop.f32.mrf.mxu3 }
 0x658   :  { %v1754_v16 = vpop.f32.mrf.mxu2 }
 0x659   :  { %v1832_v37 = vadd.f32 %v1831_v21, %v1754_v16 }
 0x660   :  { %v1756_v28 = vpop.f32.mrf.mxu2 }
 0x661   :  { %v1834_v10 = vadd.f32 %v1833_v17, %v1756_v28 }
 0x668   :  { %v1759_v15 = vpop.f32.mrf.mxu2 }
 0x669   :  { %v1837_v19 = vadd.f32 %v1836_v33, %v1759_v15 }
 0x670   :  { %v1761_v29 = vpop.f32.mrf.mxu2 }
 0x671   :  { %v1839_v35 = vadd.f32 %v1838_v36, %v1761_v29 }
 0x678   :  { %v1764_v30 = vpop.f32.mrf.mxu2 }
 0x679   :  { %v1842_v14 = vadd.f32 %v1841_v20, %v1764_v30 }
 0x680   :  { %v1766_v32 = vpop.f32.mrf.mxu2 }
 0x681   :  { %v1844_v57 = vadd.f32 %v1843_v24, %v1766_v32 }
 0x688   :  { %v1826_v18 = vpop.f32.mrf.mxu2 }
 0x689   :  { %v1827_v26 = vadd.f32 %v1826_v18, %v1749_v12  ;;  %v1991_v18 = vlaneseq }
 0x68b   :  { %v3956_v36 = vand.u32 127, %v1991_v18 }
 0x690   :  { %v1828_v47 = vpop.f32.mrf.mxu2 }
 0x691   :  { %v1829_v38 = vadd.f32 %v1828_v47, %v1751_v42 }
 0x6c3   :  { %v1879_v40 = vpop.f32.mrf.mxu0 }
 0x6c4   :  { %v1886_v44 = vadd.f32 %v1879_v40, %v1837_v19  ;;  %v1884_v45 = vadd.f32 %v1879_v40, %v1832_v37  ;;  %v1882_v22 = vadd.f32 %v1879_v40, %v1827_v26  ;;  %v1887_v58 = vadd.f32 %v1879_v40, %v1839_v35 }
 0x6c5   :  { %v1885_v6 = vadd.f32 %v1879_v40, %v1834_v10  ;;  %v1883_v46 = vadd.f32 %v1879_v40, %v1829_v38  ;;  %v1889_v62 = vadd.f32 %v1879_v40, %v1844_v57  ;;  %v1888_v54 = vadd.f32 %v1879_v40, %v1842_v14 }
 0x6c6   :  { %2419 = vtanh.f32 %v1886_v44 }
 0x6c7   :  { %2421 = vtanh.f32 %v1884_v45 }
 0x6c8   :  { %2423 = vtanh.f32 %v1882_v22 }
 0x6c9   :  { %2425 = vtanh.f32 %v1887_v58 }
 0x6ca   :  { %2427 = vtanh.f32 %v1885_v6 }
 0x6cb   :  { %2429 = vtanh.f32 %v1883_v46 }
 0x6cc   :  { %v2420_v49 = vpop.eup %2419  ;;  %2431 = vtanh.f32 %v1889_v62 }
 0x6cd   :  { %v2422_v51 = vpop.eup %2421  ;;  %v3936_v61 = vmul.f32 %v2420_v49, %v2288_v11  ;;  %2433 = vtanh.f32 %v1888_v54  ;;  %v1992_v49 = vshrl.u32 %v1991_v18, 7 }
 0x6ce   :  { %v2424_v34 = vpop.eup %2423  ;;  %v1904_v31 = vmul.f32 %v2422_v51, %v2288_v11  ;;  %v2289_v51 = vld [vmem:[%s4006_s1] ss:$0 sm:$0xff] }
 0x6cf   :  { %1951 = vrot.lane.b32.xlu2 %v3936_v61, %s2537_s10  ;;  %v1902_v7 = vmul.f32 %v2424_v34, %v2288_v11  ;;  %v2426_v41 = vpop.eup %2425  ;;  %v1923_v21 = vsel %vm1910_vm10, %v3936_v61, 0.0  ;;  %vm2052_vm15 = vcmp.lt.s32.totalorder %v1992_v49, %v2289_v51 }
 0x6d0   :  { %1947 = vrot.lane.b32.xlu1 %v1904_v31, %s2537_s10  ;;  %v2428_v59 = vpop.eup %2427  ;;  %v1907_v1 = vmul.f32 %v2426_v41, %v2288_v11  ;;  %v1917_v15 = vsel %vm1910_vm10, %v1904_v31, 0.0 }
 0x6d1   :  { %1943 = vrot.lane.b32.xlu0 %v1902_v7, %s2537_s10  ;;  %v2430_v53 = vpop.eup %2429  ;;  %v1905_v2 = vmul.f32 %v2428_v59, %v2288_v11  ;;  %v1911_v16 = vsel %vm1910_vm10, %v1902_v7, 0.0 }
 0x6d2   :  { %v1903_v27 = vmul.f32 %v2430_v53, %v2288_v11  ;;  %v2432_v63 = vpop.eup %2431  ;;  %v1926_v30 = vsel %vm1910_vm10, %v1907_v1, 0.0 }
 0x6d3   :  { %v2434_v5 = vpop.eup %2433  ;;  %v1909_v48 = vmul.f32 %v2432_v63, %v2288_v11  ;;  %v1920_v29 = vsel %vm1910_vm10, %v1905_v2, 0.0 }
 0x6d4   :  { %v1908_v25 = vmul.f32 %v2434_v5, %v2288_v11  ;;  %v1914_v28 = vsel %vm1910_vm10, %v1903_v27, 0.0 }
 0x6d5   :  { %v1932_v32 = vsel %vm1910_vm10, %v1909_v48, 0.0 }
 0x6d6   :  { %v1929_v17 = vsel %vm1910_vm10, %v1908_v25, 0.0 }
 0x6d7   :  { %1953 = vrot.lane.b32.xlu2 %v1907_v1, %s2537_s10 }
 0x6d8   :  { %1949 = vrot.lane.b32.xlu1 %v1905_v2, %s2537_s10 }
 0x6d9   :  { %1945 = vrot.lane.b32.xlu0 %v1903_v27, %s2537_s10 }
 0x6e0   :  { %1957 = vrot.lane.b32.xlu1 %v1909_v48, %s2537_s10 }
 0x6e1   :  { %1955 = vrot.lane.b32.xlu0 %v1908_v25, %s2537_s10 }
 0x729   :  { %v1952_v52 = vpop.permute.xlu2 %1951 }
 0x72a   :  { %v1979_v0 = vsel %vm1910_vm10, %v1952_v52, 0.0 }
 0x731   :  { %v1954_v56 = vpop.permute.xlu2 %1953 }
 0x732   :  { %v1982_v8 = vsel %vm1910_vm10, %v1954_v56, 0.0 }
 0x742   :  { %v1948_v3 = vpop.permute.xlu1 %1947 }
 0x743   :  { %v1944_v60 = vpop.permute.xlu0 %1943  ;;  %v1973_v50 = vsel %vm1910_vm10, %v1948_v3, 0.0 }
 0x744   :  { %1974 = vadd.xlane.f32.xlu1 %v1973_v50  ;;  %v1967_v55 = vsel %vm1910_vm10, %v1944_v60, 0.0 }
 0x745   :  { %1968 = vadd.xlane.f32.xlu2 %v1967_v55 }
 0x74a   :  { %v1950_v23 = vpop.permute.xlu1 %1949 }
 0x74b   :  { %v1946_v43 = vpop.permute.xlu0 %1945  ;;  %v1976_v39 = vsel %vm1910_vm10, %v1950_v23, 0.0 }
 0x74c   :  { %v1970_v9 = vsel %vm1910_vm10, %v1946_v43, 0.0  ;;  %v2290_v43 = vld [vmem:[%s4005_s0] ss:$0 sm:$0xff]  ;;  %s2538_s0 = smov 8  }
 0x74d   :  { %1977 = vadd.xlane.f32.xlu2 %v1976_v39  ;;  %1971 = vadd.xlane.f32.xlu0 %v1970_v9  ;;  %vm1995_vm1 = vcmp.lt.s32.totalorder %v1992_v49, %v2290_v43 }
 0x752   :  { %v1958_v12 = vpop.permute.xlu1 %1957 }
 0x753   :  { %v1956_v4 = vpop.permute.xlu0 %1955  ;;  %v1988_v42 = vsel %vm1910_vm10, %v1958_v12, 0.0 }
 0x754   :  { %v1985_v13 = vsel %vm1910_vm10, %v1956_v4, 0.0 }
 0x755   :  { %1980 = vadd.xlane.f32.xlu2 %v1979_v0  ;;  %1983 = vadd.xlane.f32.xlu0 %v1982_v8 }
 0x756   :  { %1986 = vadd.xlane.f32.xlu1 %v1985_v13 }
 0x75d   :  { %1989 = vadd.xlane.f32.xlu2 %v1988_v42  ;;  %1912 = vadd.xlane.f32.xlu0 %v1911_v16 }
 0x75e   :  { %1915 = vadd.xlane.f32.xlu1 %v1914_v28 }
 0x765   :  { %1918 = vadd.xlane.f32.xlu2 %v1917_v15  ;;  %1921 = vadd.xlane.f32.xlu0 %v1920_v29 }
 0x766   :  { %1924 = vadd.xlane.f32.xlu1 %v1923_v21 }
 0x76d   :  { %1927 = vadd.xlane.f32.xlu2 %v1926_v30  ;;  %1930 = vadd.xlane.f32.xlu0 %v1929_v17 }
 0x76e   :  { %1933 = vadd.xlane.f32.xlu1 %v1932_v32 }
 0x7b7   :  { %v1975_v26 = vpop.xlane.xlu1 %1974 }
 0x7b8   :  { %v1969_v33 = vpop.xlane.xlu2 %1968  ;;  %v2063_v45 = vperm.slane %v1975_v26, %v3956_v36 }
 0x7b9   :  { %v2061_v20 = vperm.slane %v1969_v33, %v3956_v36 }
 0x7c0   :  { %v1978_v37 = vpop.xlane.xlu2 %1977  ;;  %v1972_v19 = vpop.xlane.xlu0 %1971 }
 0x7c1   :  { %v2062_v40 = vperm.slane %v1972_v19, %v3956_v36  ;;  %v2064_v10 = vperm.slane %v1978_v37, %v3956_v36 }
 0x7c3   :  { %v2069_v44 = vsel %vm2014_vm7, %v2062_v40, %v2061_v20 }
 0x7c4   :  { %v2070_v22 = vsel %vm2016_vm8, %v2063_v45, %v2069_v44 }
 0x7c5   :  { %v2071_v11 = vsel %vm2018_vm9, %v2064_v10, %v2070_v22 }
 0x7c8   :  { %v1981_v47 = vpop.xlane.xlu2 %1980  ;;  %v1984_v35 = vpop.xlane.xlu0 %1983 }
 0x7c9   :  { %v2065_v38 = vperm.slane %v1981_v47, %v3956_v36  ;;  %v1987_v58 = vpop.xlane.xlu1 %1986  ;;  %v2066_v6 = vperm.slane %v1984_v35, %v3956_v36 }
 0x7ca   :  { %v2067_v34 = vperm.slane %v1987_v58, %v3956_v36 }
 0x7cb   :  { %v2072_v46 = vsel %vm2020_vm11, %v2065_v38, %v2071_v11 }
 0x7cc   :  { %v2073_v61 = vsel %vm2022_vm12, %v2066_v6, %v2072_v46 }
 0x7cd   :  { %v2074_v14 = vsel %vm2024_vm13, %v2067_v34, %v2073_v61 }
 0x7d0   :  { %v1990_v24 = vpop.xlane.xlu2 %1989  ;;  %v1913_v31 = vpop.xlane.xlu0 %1912 }
 0x7d1   :  { %v2068_v57 = vperm.slane %v1990_v24, %v3956_v36  ;;  %v1916_v7 = vpop.xlane.xlu1 %1915  ;;  %v2006_v1 = vperm.slane %v1913_v31, %v3956_v36 }
 0x7d2   :  { %v2007_v53 = vperm.slane %v1916_v7, %v3956_v36 }
 0x7d3   :  { %v2075_v62 = vsel %vm2026_vm14, %v2068_v57, %v2074_v14 }
 0x7d4   :  { %v2077_v41 = vsel %vm2052_vm15, %v2075_v62, -1e+30  ;;  %v2015_v3 = vsel %vm2014_vm7, %v2007_v53, %v2006_v1 }
 0x7d5   :  { %v2078_v54 = vsel %vm2030_vm0, %v2077_v41, -inf }
 0x7d6   :  { %v2079_v59 = vrot.slane %v2078_v54, 4 }
 0x7d8   :  { %v2080_v2 = vmax.f32 %v2078_v54, %v2079_v59  ;;  %v1919_v27 = vpop.xlane.xlu2 %1918  ;;  %v1922_v63 = vpop.xlane.xlu0 %1921 }
 0x7d9   :  { %v2008_v5 = vperm.slane %v1919_v27, %v3956_v36  ;;  %v1925_v48 = vpop.xlane.xlu1 %1924  ;;  %v2009_v60 = vperm.slane %v1922_v63, %v3956_v36 }
 0x7da   :  { %v2081_v25 = vrot.slane %v2080_v2, 2  ;;  %v2010_v9 = vperm.slane %v1925_v48, %v3956_v36 }
 0x7db   :  { %v2017_v55 = vsel %vm2016_vm8, %v2008_v5, %v2015_v3 }
 0x7dc   :  { %v2082_v50 = vmax.f32 %v2080_v2, %v2081_v25  ;;  %v2019_v23 = vsel %vm2018_vm9, %v2009_v60, %v2017_v55 }
 0x7dd   :  { %v2021_v42 = vsel %vm2020_vm11, %v2010_v9, %v2019_v23 }
 0x7de   :  { %v2083_v52 = vrot.slane %v2082_v50, 1 }
 0x7e0   :  { %v2084_v39 = vmax.f32 %v2082_v50, %v2083_v52  ;;  %v1928_v56 = vpop.xlane.xlu2 %1927  ;;  %v1931_v4 = vpop.xlane.xlu0 %1930 }
 0x7e1   :  { %v2011_v0 = vperm.slane %v1928_v56, %v3956_v36  ;;  %v1934_v8 = vpop.xlane.xlu1 %1933  ;;  %v2012_v13 = vperm.slane %v1931_v4, %v3956_v36 }
 0x7e2   :  { %v2085_v12 = vsub.f32 %v2077_v41, %v2084_v39  ;;  %v2013_v28 = vperm.slane %v1934_v8, %v3956_v36 }
 0x7e3   :  { %v2023_v16 = vsel %vm2022_vm12, %v2011_v0, %v2021_v42 }
 0x7e4   :  { %v2086_v15 = vmul.f32 1.442695, %v2085_v12  ;;  %v2025_v29 = vsel %vm2024_vm13, %v2012_v13, %v2023_v16 }
 0x7e5   :  { %v2027_v21 = vsel %vm2026_vm14, %v2013_v28, %v2025_v29 }
 0x7e6   :  { %2435 = vpow2.f32 %v2086_v15  ;;  %v2029_v30 = vsel %vm1995_vm1, %v2027_v21, -1e+30 }
 0x7e7   :  { %v2031_v17 = vsel %vm2030_vm0, %v2029_v30, -inf }
 0x7e8   :  { %v2032_v32 = vrot.slane %v2031_v17, 4 }
 0x7ea   :  { %v2033_v33 = vmax.f32 %v2031_v17, %v2032_v32 }
 0x7ec   :  { %v2436_v18 = vpop.eup %2435  ;;  %v2034_v37 = vrot.slane %v2033_v33, 2 }
 0x7ed   :  { %v2088_v19 = vsel %vm2030_vm0, %v2436_v18, 0.0 }
 0x7ee   :  { %v2089_v26 = vrot.slane %v2088_v19, 4  ;;  %v2035_v40 = vmax.f32 %v2033_v33, %v2034_v37 }
 0x7f0   :  { %v2036_v20 = vrot.slane %v2035_v40, 1  ;;  %v2090_v36 = vadd.f32 %v2089_v26, %v2088_v19 }
 0x7f2   :  { %v2037_v44 = vmax.f32 %v2035_v40, %v2036_v20  ;;  %v2091_v45 = vrot.slane %v2090_v36, 2 }
 0x7f4   :  { %v2038_v22 = vsub.f32 %v2029_v30, %v2037_v44  ;;  %v2092_v47 = vadd.f32 %v2091_v45, %v2090_v36 }
 0x7f6   :  { %v2039_v35 = vmul.f32 1.442695, %v2038_v22  ;;  %v2093_v10 = vrot.slane %v2092_v47, 1 }
 0x7f8   :  { %2437 = vpow2.f32 %v2039_v35  ;;  %v2094_v38 = vadd.f32 %v2093_v10, %v2092_v47 }
 0x7fa   :  { %2439 = vrcp.f32 %v2094_v38 }
 0x7fe   :  { %v2438_v58 = vpop.eup %2437 }
 0x7ff   :  { %v2041_v11 = vsel %vm2030_vm0, %v2438_v58, 0.0 }
 0x800   :  { %v2440_v6 = vpop.eup %2439  ;;  %v2042_v46 = vrot.slane %v2041_v11, 4 }
 0x801   :  { %v2096_v49 = vmul.f32 %v2440_v6, %v2436_v18 }
 0x802   :  { %v2043_v51 = vadd.f32 %v2042_v46, %v2041_v11 }
 0x803   :  { %2101 = vrot.lane.b32.xlu2 %v2096_v49, %s2538_s0 }
 0x804   :  { %v2044_v61 = vrot.slane %v2043_v51, 2 }
 0x806   :  { %v2045_v34 = vadd.f32 %v2044_v61, %v2043_v51 }
 0x808   :  { %v2046_v24 = vrot.slane %v2045_v34, 1 }
 0x80a   :  { %v2047_v31 = vadd.f32 %v2046_v24, %v2045_v34 }
 0x80c   :  { %2441 = vrcp.f32 %v2047_v31 }
 0x812   :  { %v2442_v57 = vpop.eup %2441 }
 0x813   :  { %v2049_v7 = vmul.f32 %v2442_v57, %v2438_v58 }
 0x815   :  { %2099 = vst.msk [vmem:[%s4018_s13 + $0x8] sm:$0xff] %vm2030_vm0, %v2049_v7 }
 0x85d   :  { %v2102_v14 = vpop.permute.xlu2 %2101 }
 0x85e   :  { %2105 = vst.msk [vmem:[%s4018_s13 + $0x8] sm:$0xff] %vm2104_vm2, %v2102_v14 }
 0x85f   :  { %2110 = vsyncpa [#allocation3], 1 }

</bundles_post_ra>
